<compile_context>
chip_gen: v7x
topology: tpu7x:2x2x1
jax: 0.10.0
libtpu: 0.0.40
codegen_flags: <defaults>
</compile_context>

<pallas_src>
import functools

import jax
import jax.numpy as jnp
from jax import lax
from jax.experimental import pallas as pl
from jax.experimental.pallas import tpu as pltpu


# ----------------------------------------------------------------------------
# Fused conv block kernel: 3x3 conv (padding=1) + bias + ReLU + 2x2 max-pool
# ----------------------------------------------------------------------------
def _conv_block_kernel(x_ref, w_ref, b_ref, o_ref, vp_ref, *,
                       W, Cin, Cout, ROWS_P):
    """One grid step = one batch element x one slab of ROWS_P pooled rows.

    x_ref : (1, H+2, W+2, Cin)  zero-padded NHWC image (resident across slabs)
    w_ref : (9*Cin, Cout) bf16  conv weights, tap (dy, dx, cin)-major
    b_ref : (1, Cout) f32       bias
    o_ref : (1, ROWS_P*Wo, Cout) pooled output slab, (h, w) rows flattened
    vp_ref: VMEM (ROWS_P*W, Cout) scratch for the horizontal-pool strided reads
    """
    CONV_ROWS = 2 * ROWS_P            # conv rows feeding this slab of pooled rows
    M = CONV_ROWS * W
    Wo = W // 2
    r0 = pl.program_id(1) * CONV_ROWS  # first padded-input row of the slab

    # In-kernel im2col: 9 shifted windows -> single (M, 9*Cin) slab so the MXU
    # sees one matmul with K = 9*Cin (27/144/288) instead of 9 dots with K=Cin.
    patches = []
    for dy in range(3):
        for dx in range(3):
            p = x_ref[0, pl.ds(r0 + dy, CONV_ROWS), pl.ds(dx, W), :]  # (CONV_ROWS, W, Cin)
            patches.append(p.reshape(M, Cin))
    slab = jnp.concatenate(patches, axis=-1).astype(jnp.bfloat16)     # (M, 9*Cin)

    acc = jnp.dot(slab, w_ref[...], preferred_element_type=jnp.float32)
    acc = jnp.maximum(acc + b_ref[...], 0.0)                          # bias + ReLU

    # 2x2 max-pool.  Vertical (row-pair) max stays in registers:
    a4 = acc.reshape(ROWS_P, 2, W, Cout)
    vmax = jnp.maximum(a4[:, 0], a4[:, 1]).reshape(ROWS_P * W, Cout)
    # Horizontal (col-pair) max: one scratch store + two strided reads per slab.
    # TODO(synk): could be done fully in-register with a lane-dense (Wo*Cout)
    #             output store; kept as a proven ref-strided read for robustness.
    vp_ref[...] = vmax
    o_ref[0] = jnp.maximum(vp_ref[pl.ds(0, ROWS_P * Wo, 2), :],
                           vp_ref[pl.ds(1, ROWS_P * Wo, 2), :])       # (ROWS_P*Wo, Cout)


def conv_block(x_nhwc, w_taps, bias, rows_per_block=8):
    """x_nhwc: (N, H, W, Cin) f32; w_taps: (9*Cin, Cout) bf16; bias: (1, Cout) f32.

    Returns pooled activations with (h, w) flattened: (N, (H//2)*(W//2), Cout) f32.
    """
    N, H, W, Cin = x_nhwc.shape
    Cout = w_taps.shape[1]
    assert w_taps.shape[0] == 9 * Cin
    assert H % 2 == 0 and W % 2 == 0 and W % 8 == 0
    Ho, Wo = H // 2, W // 2

    rows_p = min(rows_per_block, Ho)
    while Ho % rows_p:
        rows_p -= 1
    assert rows_p == Ho or (rows_p * Wo) % 8 == 0

    # TODO(synk): at full 224x224 resolution conv1's Cin=3 lane padding and the
    #             whole-image block should move to host-side tap folding + an
    #             H-tiled halo DMA; at these sizes the whole image fits VMEM.
    xp = jnp.pad(x_nhwc, ((0, 0), (1, 1), (1, 1), (0, 0)))

    kern = functools.partial(_conv_block_kernel,
                             W=W, Cin=Cin, Cout=Cout, ROWS_P=rows_p)
    return pl.pallas_call(
        kern,
        out_shape=jax.ShapeDtypeStruct((N, Ho * Wo, Cout), jnp.float32),
        grid_spec=pltpu.PrefetchScalarGridSpec(
            num_scalar_prefetch=0,
            grid=(N, Ho // rows_p),
            in_specs=[
                pl.BlockSpec((1, H + 2, W + 2, Cin), lambda n, j: (n, 0, 0, 0)),
                pl.BlockSpec((9 * Cin, Cout), lambda n, j: (0, 0)),
                pl.BlockSpec((1, Cout), lambda n, j: (0, 0)),
            ],
            out_specs=pl.BlockSpec((1, rows_p * Wo, Cout), lambda n, j: (n, j, 0)),
            scratch_shapes=[pltpu.VMEM((rows_p * W, Cout), jnp.float32)],
        ),
        compiler_params=pltpu.CompilerParams(
            dimension_semantics=("parallel", "parallel"),
            vmem_limit_bytes=32 * 1024 * 1024,
        ),
    )(xp, w_taps, bias)


# ----------------------------------------------------------------------------
# Head kernel: fc1 (K-tiled, BN pre-folded) -> ReLU -> fc2
# ----------------------------------------------------------------------------
def _head_kernel(x_ref, w1_ref, b1_ref, w2_ref, b2_ref, o_ref, h_acc):
    k = pl.program_id(0)

    @pl.when(k == 0)
    def _():
        h_acc[...] = jnp.zeros_like(h_acc)

    h_acc[...] += jnp.dot(x_ref[...].astype(jnp.bfloat16), w1_ref[...],
                          preferred_element_type=jnp.float32)

    @pl.when(k == pl.num_programs(0) - 1)
    def _():
        h = jnp.maximum(h_acc[...] + b1_ref[...], 0.0)        # folded BN + ReLU
        o_ref[...] = jnp.dot(h.astype(jnp.bfloat16), w2_ref[...],
                             preferred_element_type=jnp.float32) + b2_ref[...]


def head(x_flat, w1, b1, w2, b2, tk=256):
    """x_flat: (N, feat) f32; w1: (feat, Hp) bf16 (BN folded in); w2: (Hp, Cp) bf16."""
    N, feat = x_flat.shape
    Hp = w1.shape[1]
    Cp = w2.shape[1]
    if feat % tk:
        tk = feat
    return pl.pallas_call(
        _head_kernel,
        out_shape=jax.ShapeDtypeStruct((N, Cp), jnp.float32),
        grid_spec=pltpu.PrefetchScalarGridSpec(
            num_scalar_prefetch=0,
            grid=(feat // tk,),
            in_specs=[
                pl.BlockSpec((N, tk), lambda k: (0, k)),
                pl.BlockSpec((tk, Hp), lambda k: (k, 0)),   # streams w1 over K
                pl.BlockSpec((1, Hp), lambda k: (0, 0)),
                pl.BlockSpec((Hp, Cp), lambda k: (0, 0)),
                pl.BlockSpec((1, Cp), lambda k: (0, 0)),
            ],
            out_specs=pl.BlockSpec((N, Cp), lambda k: (0, 0)),
            scratch_shapes=[pltpu.VMEM((N, Hp), jnp.float32)],
        ),
        compiler_params=pltpu.CompilerParams(
            dimension_semantics=("arbitrary",),
            vmem_limit_bytes=32 * 1024 * 1024,
        ),
    )(x_flat, w1, b1, w2, b2)


# ----------------------------------------------------------------------------
# Parameter preparation (host, once): layout + BN folding + lane padding
# ----------------------------------------------------------------------------
def prepare_params(p, num_classes):
    def conv_prep(w_oihw, b):
        Cout, Cin = w_oihw.shape[0], w_oihw.shape[1]
        # (Cout, Cin, ky, kx) -> (ky, kx, Cin, Cout) -> (9*Cin, Cout), bf16
        w_taps = jnp.transpose(w_oihw, (2, 3, 1, 0)).reshape(9 * Cin, Cout)
        return w_taps.astype(jnp.bfloat16), b.reshape(1, Cout).astype(jnp.float32)

    convs = [conv_prep(p["conv1_w"], p["conv1_b"]),
             conv_prep(p["conv2_w"], p["conv2_b"]),
             conv_prep(p["conv3_w"], p["conv3_b"])]

    feat, hidden = p["fc1_w"].shape
    C3 = p["conv3_w"].shape[0]
    side = int(round((feat // C3) ** 0.5))

    # Fold eval-mode BatchNorm1d into fc1: y = x @ (W1*s) + ((b1-mu)*s + beta)
    s = p["bn_gamma"] * lax.rsqrt(p["bn_var"] + 1e-5)
    w1 = p["fc1_w"] * s[None, :]
    b1 = (p["fc1_b"] - p["bn_mean"]) * s + p["bn_beta"]
    # Permute fc1 input rows from torch's NCHW-flatten order to NHWC-flatten
    # order so the activations can be flattened directly from NHWC (no transpose).
    w1 = w1.reshape(C3, side, side, hidden).transpose(1, 2, 0, 3).reshape(feat, hidden)

    # Pad hidden/classes to lane multiples (500->512, 133->256): unmasked stores.
    hidden_p = ((hidden + 127) // 128) * 128
    classes_p = ((num_classes + 127) // 128) * 128
    w1p = jnp.pad(w1, ((0, 0), (0, hidden_p - hidden))).astype(jnp.bfloat16)
    b1p = jnp.pad(b1, (0, hidden_p - hidden)).reshape(1, hidden_p).astype(jnp.float32)
    w2p = jnp.pad(p["fc2_w"], ((0, hidden_p - hidden),
                               (0, classes_p - num_classes))).astype(jnp.bfloat16)
    b2p = jnp.pad(p["fc2_b"], (0, classes_p - num_classes)
                  ).reshape(1, classes_p).astype(jnp.float32)
    return dict(convs=convs, w1=w1p, b1=b1p, w2=w2p, b2=b2p)


# ----------------------------------------------------------------------------
# Net.forward
# ----------------------------------------------------------------------------
def net_forward(x_nchw, params, num_classes):
    prep = prepare_params(params, num_classes)
    x = jnp.transpose(x_nchw, (0, 2, 3, 1)).astype(jnp.float32)   # NCHW -> NHWC
    N, H, W, _ = x.shape
    for w_taps, b in prep["convs"]:
        y = conv_block(x, w_taps, b)           # (N, (H//2)*(W//2), Cout)
        H, W = H // 2, W // 2
        x = y.reshape(N, H, W, -1)             # free contiguous HBM reshape
    x_flat = x.reshape(N, -1)                  # NHWC flatten (fc1 rows permuted to match)
    # TODO(synk): nn.Dropout(0.25) is identity at inference; training-mode RNG
    #             masking and BatchNorm batch statistics are not implemented.
    out = head(x_flat, prep["w1"], prep["b1"], prep["w2"], prep["b2"])
    return out[:, :num_classes]


# ----------------------------------------------------------------------------
# Deterministic parameter init + pure-JAX f32 reference
# ----------------------------------------------------------------------------
def init_params(key, spatial, hidden, num_classes):
    ks = jax.random.split(key, 14)
    rnd = lambda k, s, scale=0.05: scale * jax.random.normal(k, s, jnp.float32)
    feat = (spatial // 8) ** 2 * 64   # analogue of 28*28*64 in the original
    return dict(
        conv1_w=rnd(ks[0], (16, 3, 3, 3)),   conv1_b=rnd(ks[1], (16,)),
        conv2_w=rnd(ks[2], (32, 16, 3, 3)),  conv2_b=rnd(ks[3], (32,)),
        conv3_w=rnd(ks[4], (64, 32, 3, 3)),  conv3_b=rnd(ks[5], (64,)),
        fc1_w=rnd(ks[6], (feat, hidden)),    fc1_b=rnd(ks[7], (hidden,)),
        bn_gamma=1.0 + rnd(ks[8], (hidden,)),
        bn_beta=rnd(ks[9], (hidden,)),
        bn_mean=rnd(ks[10], (hidden,)),
        bn_var=jnp.abs(rnd(ks[11], (hidden,))) + 1.0,
        fc2_w=rnd(ks[12], (hidden, num_classes)),
        fc2_b=rnd(ks[13], (num_classes,)),
    )


def reference_forward(x_nchw, p):
    x = jnp.transpose(x_nchw, (0, 2, 3, 1)).astype(jnp.float32)

    def block(x, w, b):
        w_hwio = jnp.transpose(w, (2, 3, 1, 0))
        y = lax.conv_general_dilated(
            x, w_hwio, (1, 1), "SAME",
            dimension_numbers=("NHWC", "HWIO", "NHWC"))
        y = jnp.maximum(y + b, 0.0)
        return lax.reduce_window(y, -jnp.inf, lax.max,
                                 (1, 2, 2, 1), (1, 2, 2, 1), "VALID")

    x = block(x, p["conv1_w"], p["conv1_b"])
    x = block(x, p["conv2_w"], p["conv2_b"])
    x = block(x, p["conv3_w"], p["conv3_b"])
    x = jnp.transpose(x, (0, 3, 1, 2)).reshape(x.shape[0], -1)   # torch NCHW flatten
    h = x @ p["fc1_w"] + p["fc1_b"]
    h = (h - p["bn_mean"]) * lax.rsqrt(p["bn_var"] + 1e-5) * p["bn_gamma"] + p["bn_beta"]
    h = jnp.maximum(h, 0.0)
    return h @ p["fc2_w"] + p["fc2_b"]


if __name__ == "__main__":
    # Small shapes consistent with the module: batch=2, 3x32x32 input
    # (original uses 3x224x224; fc1 in-features scale with spatial:
    #  (32/8)^2 * 64 = 1024).  param_output_size = 133 (dogImages breeds).
    N, SPATIAL, HIDDEN, NUM_CLASSES = 2, 32, 500, 133

    key = jax.random.PRNGKey(0)
    pkey, xkey = jax.random.split(key)
    params = init_params(pkey, SPATIAL, HIDDEN, NUM_CLASSES)
    x = jax.random.normal(xkey, (N, 3, SPATIAL, SPATIAL), jnp.float32)

    out = jax.block_until_ready(net_forward(x, params, NUM_CLASSES))
    assert out.shape == (N, NUM_CLASSES), out.shape

    ref = jax.block_until_ready(reference_forward(x, params))
    max_err = float(jnp.max(jnp.abs(out - ref)))
    # bf16 matmul inputs with f32 accumulation -> slightly looser atol than f32.
    assert jnp.allclose(out, ref, rtol=5e-2, atol=1e-2), max_err

    print("KERNEL_OK")
</pallas_src>

<mosaic_0001>
module attributes {stable_mosaic.version = 11 : i64} {
  func.func @_conv_block_kernel(%arg0: i32, %arg1: i32, %arg2: memref<1x34x34x3xf32, #tpu.memory_space<vmem>>, %arg3: memref<27x16xbf16, #tpu.memory_space<vmem>>, %arg4: memref<1x16xf32, #tpu.memory_space<vmem>>, %arg5: memref<1x128x16xf32, #tpu.memory_space<vmem>>, %arg6: memref<256x16xf32, #tpu.memory_space<vmem>>) attributes {dimension_semantics = [#tpu.dimension_semantics<parallel>, #tpu.dimension_semantics<parallel>], iteration_bounds = array<i64: 2, 2>, scalar_prefetch = 0 : i64, scratch_operands = 1 : i64, tpu.core_type = #tpu.core_type<tc>, window_params = [{transform_indices = @transform_0, window_bounds = array<i64: 1, 34, 34, 3>}, {pipeline_mode = #tpu.pipeline_mode<synchronous>, transform_indices = @transform_1, window_bounds = array<i64: 27, 16>}, {pipeline_mode = #tpu.pipeline_mode<synchronous>, transform_indices = @transform_2, window_bounds = array<i64: 1, 16>}, {transform_indices = @transform_3, window_bounds = array<i64: 1, 128, 16>}]} {
    %c16_i32 = arith.constant 16 : i32
    %0 = arith.muli %arg1, %c16_i32 : i32
    %c0_i32 = arith.constant 0 : i32
    %1 = arith.addi %0, %c0_i32 : i32
    %c0 = arith.constant 0 : index
    %2 = arith.index_cast %1 : i32 to index
    %c0_0 = arith.constant 0 : index
    %c0_1 = arith.constant 0 : index
    %3 = vector.load %arg2[%c0, %2, %c0_0, %c0_1] : memref<1x34x34x3xf32, #tpu.memory_space<vmem>>, vector<1x16x32x3xf32>
    %4 = vector.shape_cast %3 : vector<1x16x32x3xf32> to vector<16x32x3xf32>
    %5 = vector.shape_cast %4 : vector<16x32x3xf32> to vector<512x3xf32>
    %c0_i32_2 = arith.constant 0 : i32
    %6 = arith.addi %0, %c0_i32_2 : i32
    %c0_3 = arith.constant 0 : index
    %7 = arith.index_cast %6 : i32 to index
    %c1 = arith.constant 1 : index
    %c0_4 = arith.constant 0 : index
    %8 = vector.load %arg2[%c0_3, %7, %c1, %c0_4] : memref<1x34x34x3xf32, #tpu.memory_space<vmem>>, vector<1x16x32x3xf32>
    %9 = vector.shape_cast %8 : vector<1x16x32x3xf32> to vector<16x32x3xf32>
    %10 = vector.shape_cast %9 : vector<16x32x3xf32> to vector<512x3xf32>
    %c0_i32_5 = arith.constant 0 : i32
    %11 = arith.addi %0, %c0_i32_5 : i32
    %c0_6 = arith.constant 0 : index
    %12 = arith.index_cast %11 : i32 to index
    %c2 = arith.constant 2 : index
    %c0_7 = arith.constant 0 : index
    %13 = vector.load %arg2[%c0_6, %12, %c2, %c0_7] : memref<1x34x34x3xf32, #tpu.memory_space<vmem>>, vector<1x16x32x3xf32>
    %14 = vector.shape_cast %13 : vector<1x16x32x3xf32> to vector<16x32x3xf32>
    %15 = vector.shape_cast %14 : vector<16x32x3xf32> to vector<512x3xf32>
    %c1_i32 = arith.constant 1 : i32
    %16 = arith.addi %0, %c1_i32 : i32
    %c0_8 = arith.constant 0 : index
    %17 = arith.index_cast %16 : i32 to index
    %c0_9 = arith.constant 0 : index
    %c0_10 = arith.constant 0 : index
    %18 = vector.load %arg2[%c0_8, %17, %c0_9, %c0_10] : memref<1x34x34x3xf32, #tpu.memory_space<vmem>>, vector<1x16x32x3xf32>
    %19 = vector.shape_cast %18 : vector<1x16x32x3xf32> to vector<16x32x3xf32>
    %20 = vector.shape_cast %19 : vector<16x32x3xf32> to vector<512x3xf32>
    %c1_i32_11 = arith.constant 1 : i32
    %21 = arith.addi %0, %c1_i32_11 : i32
    %c0_12 = arith.constant 0 : index
    %22 = arith.index_cast %21 : i32 to index
    %c1_13 = arith.constant 1 : index
    %c0_14 = arith.constant 0 : index
    %23 = vector.load %arg2[%c0_12, %22, %c1_13, %c0_14] : memref<1x34x34x3xf32, #tpu.memory_space<vmem>>, vector<1x16x32x3xf32>
    %24 = vector.shape_cast %23 : vector<1x16x32x3xf32> to vector<16x32x3xf32>
    %25 = vector.shape_cast %24 : vector<16x32x3xf32> to vector<512x3xf32>
    %c1_i32_15 = arith.constant 1 : i32
    %26 = arith.addi %0, %c1_i32_15 : i32
    %c0_16 = arith.constant 0 : index
    %27 = arith.index_cast %26 : i32 to index
    %c2_17 = arith.constant 2 : index
    %c0_18 = arith.constant 0 : index
    %28 = vector.load %arg2[%c0_16, %27, %c2_17, %c0_18] : memref<1x34x34x3xf32, #tpu.memory_space<vmem>>, vector<1x16x32x3xf32>
    %29 = vector.shape_cast %28 : vector<1x16x32x3xf32> to vector<16x32x3xf32>
    %30 = vector.shape_cast %29 : vector<16x32x3xf32> to vector<512x3xf32>
    %c2_i32 = arith.constant 2 : i32
    %31 = arith.addi %0, %c2_i32 : i32
    %c0_19 = arith.constant 0 : index
    %32 = arith.index_cast %31 : i32 to index
    %c0_20 = arith.constant 0 : index
    %c0_21 = arith.constant 0 : index
    %33 = vector.load %arg2[%c0_19, %32, %c0_20, %c0_21] : memref<1x34x34x3xf32, #tpu.memory_space<vmem>>, vector<1x16x32x3xf32>
    %34 = vector.shape_cast %33 : vector<1x16x32x3xf32> to vector<16x32x3xf32>
    %35 = vector.shape_cast %34 : vector<16x32x3xf32> to vector<512x3xf32>
    %c2_i32_22 = arith.constant 2 : i32
    %36 = arith.addi %0, %c2_i32_22 : i32
    %c0_23 = arith.constant 0 : index
    %37 = arith.index_cast %36 : i32 to index
    %c1_24 = arith.constant 1 : index
    %c0_25 = arith.constant 0 : index
    %38 = vector.load %arg2[%c0_23, %37, %c1_24, %c0_25] : memref<1x34x34x3xf32, #tpu.memory_space<vmem>>, vector<1x16x32x3xf32>
    %39 = vector.shape_cast %38 : vector<1x16x32x3xf32> to vector<16x32x3xf32>
    %40 = vector.shape_cast %39 : vector<16x32x3xf32> to vector<512x3xf32>
    %c2_i32_26 = arith.constant 2 : i32
    %41 = arith.addi %0, %c2_i32_26 : i32
    %c0_27 = arith.constant 0 : index
    %42 = arith.index_cast %41 : i32 to index
    %c2_28 = arith.constant 2 : index
    %c0_29 = arith.constant 0 : index
    %43 = vector.load %arg2[%c0_27, %42, %c2_28, %c0_29] : memref<1x34x34x3xf32, #tpu.memory_space<vmem>>, vector<1x16x32x3xf32>
    %44 = vector.shape_cast %43 : vector<1x16x32x3xf32> to vector<16x32x3xf32>
    %45 = vector.shape_cast %44 : vector<16x32x3xf32> to vector<512x3xf32>
    %46 = tpu.concatenate %5, %10, %15, %20, %25, %30, %35, %40, %45 in 1 : vector<512x3xf32>, vector<512x3xf32>, vector<512x3xf32>, vector<512x3xf32>, vector<512x3xf32>, vector<512x3xf32>, vector<512x3xf32>, vector<512x3xf32>, vector<512x3xf32> -> vector<512x27xf32>
    %47 = arith.truncf %46 : vector<512x27xf32> to vector<512x27xbf16>
    %c0_30 = arith.constant 0 : index
    %c0_31 = arith.constant 0 : index
    %48 = vector.load %arg3[%c0_30, %c0_31] : memref<27x16xbf16, #tpu.memory_space<vmem>>, vector<27x16xbf16>
    %cst = arith.constant dense<0.000000e+00> : vector<512x16xf32>
    %49 = tpu.matmul %47, %48, %cst {dimension_numbers = #tpu.dot_dimension_numbers<[1], [0], [0], [1], [0, 0, 1, 1], [], []>} : vector<512x27xbf16>, vector<27x16xbf16>, vector<512x16xf32> -> vector<512x16xf32>
    %c0_32 = arith.constant 0 : index
    %c0_33 = arith.constant 0 : index
    %50 = vector.load %arg4[%c0_32, %c0_33] : memref<1x16xf32, #tpu.memory_space<vmem>>, vector<1x16xf32>
    %51 = vector.broadcast %50 : vector<1x16xf32> to vector<512x16xf32>
    %52 = arith.addf %49, %51 : vector<512x16xf32>
    %cst_34 = arith.constant 0.000000e+00 : f32
    %53 = vector.broadcast %cst_34 : f32 to vector<512x16xf32>
    %54 = arith.maximumf %52, %53 : vector<512x16xf32>
    %55 = vector.shape_cast %54 : vector<512x16xf32> to vector<8x2x32x16xf32>
    %56 = vector.extract_strided_slice %55 {offsets = [0, 0, 0, 0], sizes = [8, 1, 32, 16], strides = [1, 1, 1, 1]} : vector<8x2x32x16xf32> to vector<8x1x32x16xf32>
    %57 = vector.shape_cast %56 : vector<8x1x32x16xf32> to vector<8x32x16xf32>
    %58 = vector.extract_strided_slice %55 {offsets = [0, 1, 0, 0], sizes = [8, 1, 32, 16], strides = [1, 1, 1, 1]} : vector<8x2x32x16xf32> to vector<8x1x32x16xf32>
    %59 = vector.shape_cast %58 : vector<8x1x32x16xf32> to vector<8x32x16xf32>
    %60 = arith.maximumf %57, %59 : vector<8x32x16xf32>
    %61 = vector.shape_cast %60 : vector<8x32x16xf32> to vector<256x16xf32>
    %c0_35 = arith.constant 0 : index
    %c0_36 = arith.constant 0 : index
    %62 = vector.load %arg6[%c0_35, %c0_36] : memref<256x16xf32, #tpu.memory_space<vmem>>, vector<256x16xf32>
    tpu.vector_store %arg6[%c0_35, %c0_36], %61 {strides = array<i32>} : memref<256x16xf32, #tpu.memory_space<vmem>>, vector<256x16xf32>,
    %c0_37 = arith.constant 0 : index
    %c0_38 = arith.constant 0 : index
    %63 = tpu.strided_load %arg6[%c0_37, %c0_38] {strides = array<i32: 2, 1>} : memref<256x16xf32, #tpu.memory_space<vmem>>, vector<128x16xf32>
    %c1_39 = arith.constant 1 : index
    %c0_40 = arith.constant 0 : index
    %64 = tpu.strided_load %arg6[%c1_39, %c0_40] {strides = array<i32: 2, 1>} : memref<256x16xf32, #tpu.memory_space<vmem>>, vector<128x16xf32>
    %65 = arith.maximumf %63, %64 : vector<128x16xf32>
    %c0_41 = arith.constant 0 : index
    %c0_42 = arith.constant 0 : index
    %c0_43 = arith.constant 0 : index
    %66 = vector.load %arg5[%c0_41, %c0_42, %c0_43] : memref<1x128x16xf32, #tpu.memory_space<vmem>>, vector<1x128x16xf32>
    %67 = vector.shape_cast %66 : vector<1x128x16xf32> to vector<128x16xf32>
    %68 = vector.shape_cast %65 : vector<128x16xf32> to vector<1x128x16xf32>
    tpu.vector_store %arg5[%c0_41, %c0_42, %c0_43], %68 {strides = array<i32>} : memref<1x128x16xf32, #tpu.memory_space<vmem>>, vector<1x128x16xf32>,
    return
  }
  func.func @transform_0(%arg0: i32, %arg1: i32) -> (i32, i32, i32, i32) {
    %c0_i32 = arith.constant 0 : i32
    %c0_i32_0 = arith.constant 0 : i32
    %c0_i32_1 = arith.constant 0 : i32
    %c0_i32_2 = arith.constant 0 : i32
    return %arg0, %c0_i32, %c0_i32_0, %c0_i32_1 : i32, i32, i32, i32
  }
  func.func @transform_1(%arg0: i32, %arg1: i32) -> (i32, i32) {
    %c0_i32 = arith.constant 0 : i32
    %c0_i32_0 = arith.constant 0 : i32
    %c0_i32_1 = arith.constant 0 : i32
    return %c0_i32, %c0_i32_0 : i32, i32
  }
  func.func @transform_2(%arg0: i32, %arg1: i32) -> (i32, i32) {
    %c0_i32 = arith.constant 0 : i32
    %c0_i32_0 = arith.constant 0 : i32
    %c0_i32_1 = arith.constant 0 : i32
    return %c0_i32, %c0_i32_0 : i32, i32
  }
  func.func @transform_3(%arg0: i32, %arg1: i32) -> (i32, i32, i32) {
    %c0_i32 = arith.constant 0 : i32
    %c0_i32_0 = arith.constant 0 : i32
    return %arg0, %arg1, %c0_i32 : i32, i32, i32
  }
}

</mosaic_0001>

<bundles_post_ra>
// kernel: tpu_custom_call.1
= control target key start
LH: loop header
LB: loop body
LE: loop exit
PB: predicated region body
PF: predicated region fallthrough
CT: control target
= control target key end

     0   :  { %s6078_s12 = smov 0   ;;  %s6080_s13 = smov 0   ;;  %s9223_s0 = inlined_call_operand.vmem [shape: f32[2,34,34,3], index: 0, kind: input, shape index: {}]   ;;  %s9224_s1 = inlined_call_operand.vmem [shape: bf16[27,16], index: 1, kind: input, shape index: {}]   ;;  %s9225_s2 = inlined_call_operand.vmem [shape: f32[1,16], index: 2, kind: input, shape index: {}]   ;;  %s9226_s3 = inlined_call_operand.vmem [shape: f32[2,256,16], index: 3, kind: output, shape index: {}]  }
   0x1   :  { %s6082_s14 = smov 0   ;;  %s6084_s15 = smov 0  }
   0x2   :  { %s6086_s16 = smov 0  }
   0x3 LB: > { %s22_s17 = sadd.s32 1, %s6039_s14  ;;  %s25_s18 = sadd.s32 1, %s6043_s15  ;;  %s6047_s16 = sphi %s6086_s16, %s13_s16   ;;  %s6043_s15 = sphi %s6084_s15, %s9605_s15   ;;  %s6039_s14 = sphi %s6082_s14, %s9604_s14   ;;  %s6035_s13 = sphi %s6080_s13, %s9603_s13   ;;  %s6031_s12 = sphi %s6078_s12, %s9602_s12  }
   0x4   : > { %p23_p0 = scmp.ge.s32.totalorder %s22_s17, 2  ;;  %p4117_p1 = scmp.ge.s32.totalorder %s6047_s16, 1 }
   0x5   : > { %p151_p2 = scmp.lt.s32.totalorder %s6047_s16, 5 }
   0x6   : > { %s9607_s17 = smov (%p23_p0, %s22_s17), 0  ;;  %s9609_s18 = smov (!%p23_p0, %s25_s18), %s6043_s15 }
   0x7   : > { %p152_p3 = pnand %p4117_p1, %p151_p2  ;;  %p27_p4 = scmp.ge.s32.totalorder %s9609_s18, 2 }
   0x9   : > { %s9611_s18 = smov (%p27_p4, %s9609_s18), 0  ;;  %155 = sbr.rel (%p152_p3) target bundleno = 891 (0x37b), region = 32 }
  0x10   : > { %p179_p5 = scmp.lt.s32.totalorder %s6035_s13, 1  ;;  %s4123_s19 = smul.u32 640, %s6031_s12  ;;  %vm2828_vm0 = vcmask 23552   ;;  %vm2893_vm1 = vcmask 48128   ;;  %vm2958_vm2 = vcmask 72704   ;;  %vm3023_vm3 = vcmask 97280  }
  0x11   : > { %s6049_s25 = smov 3   ;;  %s6050_s26 = smov 6   ;;  %vm3499_vm4 = vcmask 1044480   ;;  %vm3500_vm5 = vcmask 1045504   ;;  %vm3088_vm6 = vcmask 121856   ;;  %vm3153_vm7 = vcmask 146432  }
  0x12   : > { %s9613_s13 = smov (!%p179_p5, %s6035_s13), 1  ;;  %s6051_s27 = smov 9   ;;  %vm3218_vm8 = vcmask 171008   ;;  %vm3283_vm9 = vcmask 195584   ;;  %vm3402_vm10 = vcmask 220160   ;;  %vm3891_vm11 = vcmask 130048  }
  0x13   : > { %s4655_s20 = smul.u32 1360, %s9613_s13  ;;  %s6052_s28 = smov 12  }
  0x14   : > { %s6053_s29 = smov 15   ;;  %s6054_s30 = smov 18  }
  0x15   : > { %s183_s23 = scalar_lea.vmem %s9223_s0, %s4655_s20  ;;  %s6056_s8 = smov 21  }
  0x16   : > { %s6117_s24 = scalar_lea.vmem %s183_s23, %s4123_s19  ;;  %s6057_s9 = smov 24  }
  0x17   : > { %v266_v0 = vld [vmem:[%s6117_s24 + $0x29] sm:$0xff]  ;;  %v267_v1 = vld [vmem:[%s6117_s24 + $0x31] sm:$0xff]  ;;  %v262_v2 = vld [vmem:[%s6117_s24 + $0x1] sm:$0xff]  ;;  %s4119_s19 = sshll.u32 %s6031_s12, 4  ;;  %s4120_s12 = sshll.u32 %s9613_s13, 5 }
  0x18   : > { %v4715_v3 = vpack.i.bf16 %v267_v1, %v266_v0  ;;  %v263_v4 = vld [vmem:[%s6117_s24 + $0x9] sm:$0xff]  ;;  %v268_v5 = vld [vmem:[%s6117_s24 + $0x39] sm:$0xff]  ;;  %v269_v6 = vld [vmem:[%s6117_s24 + $0x41] sm:$0xff]  ;;  %p9074_p6 = scmp.lt.s32.totalorder %s4119_s19, 31 }
  0x19   : > { %v4705_v7 = vpack.i.bf16 %v263_v4, %v262_v2  ;;  %v264_v8 = vld [vmem:[%s6117_s24 + $0x11] sm:$0xff]  ;;  %v265_v9 = vld [vmem:[%s6117_s24 + $0x19] sm:$0xff]  ;;  %v4720_v10 = vpack.i.bf16 %v269_v6, %v268_v5  ;;  %v272_v12 = vld [vmem:[%s6117_s24 + $0x61] sm:$0xff] }
  0x1a   : > { %4716 = vrot.lane.b32.xlu1 %v4715_v3, %s6049_s25  ;;  %v4710_v11 = vpack.i.bf16 %v265_v9, %v264_v8  ;;  %v273_v13 = vld [vmem:[%s6117_s24 + $0x69] sm:$0xff]  ;;  %v270_v14 = vld [vmem:[%s6117_s24 + $0x51] sm:$0xff]  ;;  %v271_v15 = vld [vmem:[%s6117_s24 + $0x59] sm:$0xff]  ;;  %s9615_s19 = smov (!%p9074_p6, %s4119_s19), 31 }
  0x1b   : > { %4706 = vrot.lane.b32.xlu0 %v4705_v7, %s6049_s25  ;;  %v4730_v16 = vpack.i.bf16 %v273_v13, %v272_v12  ;;  %v4725_v17 = vpack.i.bf16 %v271_v15, %v270_v14  ;;  %v276_v18 = vld [vmem:[%s6117_s24 + $0x89] sm:$0xff]  ;;  %v277_v19 = vld [vmem:[%s6117_s24 + $0x91] sm:$0xff]  ;;  %v274_v20 = vld [vmem:[%s6117_s24 + $0x79] sm:$0xff]  ;;  %s190_s13 = sadd.s32 %s4120_s12, %s9615_s19 }
  0x1c   : > { %v275_v21 = vld [vmem:[%s6117_s24 + $0x81] sm:$0xff]  ;;  %v4740_v22 = vpack.i.bf16 %v277_v19, %v276_v18  ;;  %v280_v24 = vld [vmem:[%s6117_s24 + $0xb1] sm:$0xff]  ;;  %v281_v25 = vld [vmem:[%s6117_s24 + $0xb9] sm:$0xff]  ;;  %s4121_s21 = sshll.u32 %s190_s13, 3 }
  0x1d   : > { %v4735_v23 = vpack.i.bf16 %v275_v21, %v274_v20  ;;  %v278_v26 = vld [vmem:[%s6117_s24 + $0xa1] sm:$0xff]  ;;  %v279_v27 = vld [vmem:[%s6117_s24 + $0xa9] sm:$0xff]  ;;  %v4750_v28 = vpack.i.bf16 %v281_v25, %v280_v24  ;;  %v284_v30 = vld [vmem:[%s6117_s24 + $0xd9] sm:$0xff] }
  0x1e   : > { %4721 = vrot.lane.b32.xlu1 %v4720_v10, %s6049_s25  ;;  %v4745_v29 = vpack.i.bf16 %v279_v27, %v278_v26  ;;  %v285_v31 = vld [vmem:[%s6117_s24 + $0xe1] sm:$0xff]  ;;  %v282_v32 = vld [vmem:[%s6117_s24 + $0xc9] sm:$0xff]  ;;  %v283_v33 = vld [vmem:[%s6117_s24 + $0xd1] sm:$0xff] }
  0x1f   : > { %4711 = vrot.lane.b32.xlu0 %v4710_v11, %s6049_s25  ;;  %v4760_v34 = vpack.i.bf16 %v285_v31, %v284_v30  ;;  %v4755_v35 = vpack.i.bf16 %v283_v33, %v282_v32  ;;  %v288_v36 = vld [vmem:[%s6117_s24 + $0x101] sm:$0xff]  ;;  %v289_v37 = vld [vmem:[%s6117_s24 + $0x109] sm:$0xff]  ;;  %v286_v38 = vld [vmem:[%s6117_s24 + $0xf1] sm:$0xff] }
  0x20   : > { %v287_v39 = vld [vmem:[%s6117_s24 + $0xf9] sm:$0xff]  ;;  %v4770_v40 = vpack.i.bf16 %v289_v37, %v288_v36  ;;  %v292_v42 = vld [vmem:[%s6117_s24 + $0x129] sm:$0xff]  ;;  %v293_v43 = vld [vmem:[%s6117_s24 + $0x131] sm:$0xff] }
  0x21   : > { %v4765_v41 = vpack.i.bf16 %v287_v39, %v286_v38  ;;  %v290_v44 = vld [vmem:[%s6117_s24 + $0x119] sm:$0xff]  ;;  %v291_v45 = vld [vmem:[%s6117_s24 + $0x121] sm:$0xff]  ;;  %v4780_v46 = vpack.i.bf16 %v293_v43, %v292_v42  ;;  %v296_v48 = vld [vmem:[%s6117_s24 + $0x151] sm:$0xff] }
  0x22   : > { %4731 = vrot.lane.b32.xlu1 %v4730_v16, %s6049_s25  ;;  %v4775_v47 = vpack.i.bf16 %v291_v45, %v290_v44  ;;  %v297_v49 = vld [vmem:[%s6117_s24 + $0x159] sm:$0xff]  ;;  %v294_v50 = vld [vmem:[%s6117_s24 + $0x141] sm:$0xff]  ;;  %v295_v51 = vld [vmem:[%s6117_s24 + $0x149] sm:$0xff] }
  0x23   : > { %4726 = vrot.lane.b32.xlu0 %v4725_v17, %s6049_s25  ;;  %v4790_v52 = vpack.i.bf16 %v297_v49, %v296_v48  ;;  %v4785_v53 = vpack.i.bf16 %v295_v51, %v294_v50  ;;  %v300_v54 = vld [vmem:[%s6117_s24 + $0x179] sm:$0xff]  ;;  %v301_v55 = vld [vmem:[%s6117_s24 + $0x181] sm:$0xff]  ;;  %v298_v56 = vld [vmem:[%s6117_s24 + $0x169] sm:$0xff] }
  0x24   : > { %v299_v57 = vld [vmem:[%s6117_s24 + $0x171] sm:$0xff]  ;;  %v4800_v58 = vpack.i.bf16 %v301_v55, %v300_v54  ;;  %v304_v60 = vld [vmem:[%s6117_s24 + $0x1a1] sm:$0xff]  ;;  %v305_v61 = vld [vmem:[%s6117_s24 + $0x1a9] sm:$0xff] }
  0x25   : > { %v4795_v59 = vpack.i.bf16 %v299_v57, %v298_v56  ;;  %v302_v62 = vld [vmem:[%s6117_s24 + $0x191] sm:$0xff]  ;;  %v303_v63 = vld [vmem:[%s6117_s24 + $0x199] sm:$0xff]  ;;  %v4810_v0 = vpack.i.bf16 %v305_v61, %v304_v60  ;;  %v308_v2 = vld [vmem:[%s6117_s24 + $0x1c9] sm:$0xff] }
  0x26   : > { %4741 = vrot.lane.b32.xlu1 %v4740_v22, %s6049_s25  ;;  %v4805_v1 = vpack.i.bf16 %v303_v63, %v302_v62  ;;  %v309_v3 = vld [vmem:[%s6117_s24 + $0x1d1] sm:$0xff]  ;;  %v306_v4 = vld [vmem:[%s6117_s24 + $0x1b9] sm:$0xff]  ;;  %v307_v5 = vld [vmem:[%s6117_s24 + $0x1c1] sm:$0xff] }
  0x27   : > { %4736 = vrot.lane.b32.xlu0 %v4735_v23, %s6049_s25  ;;  %v4820_v6 = vpack.i.bf16 %v309_v3, %v308_v2  ;;  %v4815_v7 = vpack.i.bf16 %v307_v5, %v306_v4  ;;  %v312_v8 = vld [vmem:[%s6117_s24 + $0x1f1] sm:$0xff]  ;;  %v313_v9 = vld [vmem:[%s6117_s24 + $0x1f9] sm:$0xff]  ;;  %v310_v10 = vld [vmem:[%s6117_s24 + $0x1e1] sm:$0xff] }
  0x28   : > { %v311_v11 = vld [vmem:[%s6117_s24 + $0x1e9] sm:$0xff]  ;;  %v4830_v12 = vpack.i.bf16 %v313_v9, %v312_v8  ;;  %v316_v14 = vld [vmem:[%s6117_s24 + $0x219] sm:$0xff]  ;;  %v317_v15 = vld [vmem:[%s6117_s24 + $0x221] sm:$0xff] }
  0x29   : > { %v4825_v13 = vpack.i.bf16 %v311_v11, %v310_v10  ;;  %v314_v16 = vld [vmem:[%s6117_s24 + $0x209] sm:$0xff]  ;;  %v315_v17 = vld [vmem:[%s6117_s24 + $0x211] sm:$0xff]  ;;  %v4840_v18 = vpack.i.bf16 %v317_v15, %v316_v14  ;;  %v320_v20 = vld [vmem:[%s6117_s24 + $0x241] sm:$0xff] }
  0x2a   : > { %4751 = vrot.lane.b32.xlu1 %v4750_v28, %s6049_s25  ;;  %v4835_v19 = vpack.i.bf16 %v315_v17, %v314_v16  ;;  %v321_v21 = vld [vmem:[%s6117_s24 + $0x249] sm:$0xff]  ;;  %v318_v22 = vld [vmem:[%s6117_s24 + $0x231] sm:$0xff]  ;;  %v319_v23 = vld [vmem:[%s6117_s24 + $0x239] sm:$0xff] }
  0x2b   : > { %4746 = vrot.lane.b32.xlu0 %v4745_v29, %s6049_s25  ;;  %v4850_v24 = vpack.i.bf16 %v321_v21, %v320_v20  ;;  %v4845_v25 = vpack.i.bf16 %v319_v23, %v318_v22  ;;  %v324_v26 = vld [vmem:[%s6117_s24 + $0x269] sm:$0xff]  ;;  %v325_v27 = vld [vmem:[%s6117_s24 + $0x271] sm:$0xff]  ;;  %v322_v28 = vld [vmem:[%s6117_s24 + $0x259] sm:$0xff] }
  0x2c   : > { %v323_v29 = vld [vmem:[%s6117_s24 + $0x261] sm:$0xff]  ;;  %v4860_v30 = vpack.i.bf16 %v325_v27, %v324_v26  ;;  %v328_v32 = vld [vmem:[%s6117_s24 + $0x12] sm:$0xff]  ;;  %v337_v45 = vld [vmem:[%s6117_s24 + $0x6a] sm:$0xff] }
  0x2d   : > { %v4855_v31 = vpack.i.bf16 %v323_v29, %v322_v28  ;;  %v329_v33 = vld [vmem:[%s6117_s24 + $0x1a] sm:$0xff]  ;;  %v333_v39 = vld [vmem:[%s6117_s24 + $0x42] sm:$0xff]  ;;  %v340_v50 = vld [vmem:[%s6117_s24 + $0x8a] sm:$0xff] }
  0x2e   : > { %4761 = vrot.lane.b32.xlu1 %v4760_v34, %s6049_s25  ;;  %v326_v34 = vld [vmem:[%s6117_s24 + $0x2] sm:$0xff]  ;;  %v4870_v36 = vpack.i.bf16 %v329_v33, %v328_v32  ;;  %v332_v38 = vld [vmem:[%s6117_s24 + $0x3a] sm:$0xff]  ;;  %v341_v51 = vld [vmem:[%s6117_s24 + $0x92] sm:$0xff] }
  0x2f   : > { %4756 = vrot.lane.b32.xlu0 %v4755_v35, %s6049_s25  ;;  %v327_v35 = vld [vmem:[%s6117_s24 + $0xa] sm:$0xff]  ;;  %v4880_v42 = vpack.i.bf16 %v333_v39, %v332_v38  ;;  %v336_v44 = vld [vmem:[%s6117_s24 + $0x62] sm:$0xff]  ;;  %v4900_v54 = vpack.i.bf16 %v341_v51, %v340_v50  ;;  %v344_v56 = vld [vmem:[%s6117_s24 + $0xb2] sm:$0xff] }
  0x30   : > { %v4865_v37 = vpack.i.bf16 %v327_v35, %v326_v34  ;;  %v4890_v48 = vpack.i.bf16 %v337_v45, %v336_v44  ;;  %v345_v57 = vld [vmem:[%s6117_s24 + $0xba] sm:$0xff]  ;;  %v349_v63 = vld [vmem:[%s6117_s24 + $0xe2] sm:$0xff]  ;;  %v353_v5 = vld [vmem:[%s6117_s24 + $0x10a] sm:$0xff] }
  0x31   : > { %v4910_v60 = vpack.i.bf16 %v345_v57, %v344_v56  ;;  %v348_v62 = vld [vmem:[%s6117_s24 + $0xda] sm:$0xff]  ;;  %v352_v4 = vld [vmem:[%s6117_s24 + $0x102] sm:$0xff]  ;;  %v356_v10 = vld [vmem:[%s6117_s24 + $0x12a] sm:$0xff] }
  0x32   : > { %4771 = vrot.lane.b32.xlu1 %v4770_v40, %s6049_s25  ;;  %v330_v40 = vld [vmem:[%s6117_s24 + $0x2a] sm:$0xff]  ;;  %v4920_v2 = vpack.i.bf16 %v349_v63, %v348_v62  ;;  %v4930_v8 = vpack.i.bf16 %v353_v5, %v352_v4  ;;  %v357_v11 = vld [vmem:[%s6117_s24 + $0x132] sm:$0xff]  ;;  %v361_v17 = vld [vmem:[%s6117_s24 + $0x15a] sm:$0xff] }
  0x33   : > { %4766 = vrot.lane.b32.xlu0 %v4765_v41, %s6049_s25  ;;  %v331_v41 = vld [vmem:[%s6117_s24 + $0x32] sm:$0xff]  ;;  %v4940_v14 = vpack.i.bf16 %v357_v11, %v356_v10  ;;  %v364_v22 = vld [vmem:[%s6117_s24 + $0x17a] sm:$0xff]  ;;  %v365_v23 = vld [vmem:[%s6117_s24 + $0x182] sm:$0xff] }
  0x34   : > { %v4875_v43 = vpack.i.bf16 %v331_v41, %v330_v40  ;;  %v360_v16 = vld [vmem:[%s6117_s24 + $0x152] sm:$0xff]  ;;  %v4960_v26 = vpack.i.bf16 %v365_v23, %v364_v22  ;;  %v368_v28 = vld [vmem:[%s6117_s24 + $0x1a2] sm:$0xff]  ;;  %v369_v29 = vld [vmem:[%s6117_s24 + $0x1aa] sm:$0xff] }
  0x35   : > { %v4950_v20 = vpack.i.bf16 %v361_v17, %v360_v16  ;;  %v4970_v32 = vpack.i.bf16 %v369_v29, %v368_v28  ;;  %v372_v34 = vld [vmem:[%s6117_s24 + $0x1ca] sm:$0xff]  ;;  %v373_v35 = vld [vmem:[%s6117_s24 + $0x1d2] sm:$0xff]  ;;  %v377_v41 = vld [vmem:[%s6117_s24 + $0x1fa] sm:$0xff] }
  0x36   : > { %4781 = vrot.lane.b32.xlu1 %v4780_v46, %s6049_s25  ;;  %v334_v46 = vld [vmem:[%s6117_s24 + $0x52] sm:$0xff]  ;;  %v4980_v38 = vpack.i.bf16 %v373_v35, %v372_v34  ;;  %v383_v56 = vld [vmem:[%s6117_s24 + $0x23a] sm:$0xff] }
  0x37   : > { %4776 = vrot.lane.b32.xlu0 %v4775_v47, %s6049_s25  ;;  %v335_v47 = vld [vmem:[%s6117_s24 + $0x5a] sm:$0xff]  ;;  %v376_v40 = vld [vmem:[%s6117_s24 + $0x1f2] sm:$0xff] }
  0x38   : > { %v4885_v49 = vpack.i.bf16 %v335_v47, %v334_v46  ;;  %v4990_v44 = vpack.i.bf16 %v377_v41, %v376_v40  ;;  %v380_v46 = vld [vmem:[%s6117_s24 + $0x21a] sm:$0xff]  ;;  %v381_v47 = vld [vmem:[%s6117_s24 + $0x222] sm:$0xff]  ;;  %v206_v16 = vld [vmem:[%s6117_s24 + $0x50] sm:$0xff] }
  0x39   : > { %v5000_v50 = vpack.i.bf16 %v381_v47, %v380_v46  ;;  %v386_v63 = vld [vmem:[%s6117_s24 + $0x25a] sm:$0xff]  ;;  %v6343_v22 = vld [vmem:[%s6117_s24 + $0x90] sm:$0xff]  ;;  %v6386_v40 = vld [vmem:[%s6117_s24 + $0xc8] sm:$0xff] }
  0x3a   : > { %4791 = vrot.lane.b32.xlu1 %v4790_v52, %s6049_s25  ;;  %v338_v52 = vld [vmem:[%s6117_s24 + $0x7a] sm:$0xff]  ;;  %v6356_v29 = vld [vmem:[%s6117_s24 + $0xb0] sm:$0xff]  ;;  %v6403_v46 = vld [vmem:[%s6117_s24 + $0x108] sm:$0xff] }
  0x3b   : > { %4786 = vrot.lane.b32.xlu0 %v4785_v53, %s6049_s25  ;;  %v339_v53 = vld [vmem:[%s6117_s24 + $0x82] sm:$0xff]  ;;  %v204_v5 = vld [vmem:[%s6117_s24 + $0x38] sm:$0xff]  ;;  %v6389_v41 = vld [vmem:[%s6117_s24 + $0xd0] sm:$0xff] }
  0x3c   : > { %v4895_v55 = vpack.i.bf16 %v339_v53, %v338_v52  ;;  %v384_v52 = vld [vmem:[%s6117_s24 + $0x242] sm:$0xff]  ;;  %v385_v53 = vld [vmem:[%s6117_s24 + $0x24a] sm:$0xff]  ;;  %v207_v17 = vld [vmem:[%s6117_s24 + $0x58] sm:$0xff] }
  0x3e   : > { %4801 = vrot.lane.b32.xlu1 %v4800_v58, %s6049_s25  ;;  %v342_v58 = vld [vmem:[%s6117_s24 + $0xa2] sm:$0xff] }
  0x3f   : > { %4796 = vrot.lane.b32.xlu0 %v4795_v59, %s6049_s25  ;;  %v343_v59 = vld [vmem:[%s6117_s24 + $0xaa] sm:$0xff] }
  0x40   : > { %v4905_v61 = vpack.i.bf16 %v343_v59, %v342_v58  ;;  %v5010_v58 = vpack.i.bf16 %v385_v53, %v384_v52  ;;  %v6422_v53 = vld [vmem:[%s6117_s24 + $0x128] sm:$0xff] }
  0x42   : > { %4811 = vrot.lane.b32.xlu1 %v4810_v0, %s6049_s25  ;;  %v346_v0 = vld [vmem:[%s6117_s24 + $0xca] sm:$0xff] }
  0x43   : > { %4806 = vrot.lane.b32.xlu0 %v4805_v1, %s6049_s25  ;;  %v347_v1 = vld [vmem:[%s6117_s24 + $0xd2] sm:$0xff] }
  0x44   : > { %v4915_v3 = vpack.i.bf16 %v347_v1, %v346_v0  ;;  %v387_v0 = vld [vmem:[%s6117_s24 + $0x262] sm:$0xff] }
  0x46   : > { %4821 = vrot.lane.b32.xlu1 %v4820_v6, %s6049_s25  ;;  %v350_v6 = vld [vmem:[%s6117_s24 + $0xf2] sm:$0xff] }
  0x47   : > { %4816 = vrot.lane.b32.xlu0 %v4815_v7, %s6049_s25  ;;  %v351_v7 = vld [vmem:[%s6117_s24 + $0xfa] sm:$0xff] }
  0x48   : > { %v4925_v9 = vpack.i.bf16 %v351_v7, %v350_v6  ;;  %v205_v6 = vld [vmem:[%s6117_s24 + $0x40] sm:$0xff] }
  0x49   : > { %v5030_v10 = vpack.i.bf16 %v205_v6, %v204_v5  ;;  %v230_v5 = vld [vmem:[%s6117_s24 + $0x140] sm:$0xff]  ;;  %v231_v6 = vld [vmem:[%s6117_s24 + $0x148] sm:$0xff] }
  0x4a   : > { %4831 = vrot.lane.b32.xlu1 %v4830_v12, %s6049_s25  ;;  %v354_v12 = vld [vmem:[%s6117_s24 + $0x11a] sm:$0xff] }
  0x4b   : > { %4826 = vrot.lane.b32.xlu0 %v4825_v13, %s6049_s25  ;;  %v355_v13 = vld [vmem:[%s6117_s24 + $0x122] sm:$0xff] }
  0x4c   : > { %v4935_v15 = vpack.i.bf16 %v355_v13, %v354_v12  ;;  %v208_v13 = vld [vmem:[%s6117_s24 + $0x60] sm:$0xff] }
  0x4e   : > { %4841 = vrot.lane.b32.xlu1 %v4840_v18, %s6049_s25  ;;  %v358_v18 = vld [vmem:[%s6117_s24 + $0x142] sm:$0xff] }
  0x4f   : > { %4836 = vrot.lane.b32.xlu0 %v4835_v19, %s6049_s25  ;;  %v359_v19 = vld [vmem:[%s6117_s24 + $0x14a] sm:$0xff] }
  0x50   : > { %v4945_v21 = vpack.i.bf16 %v359_v19, %v358_v18  ;;  %v5035_v19 = vpack.i.bf16 %v207_v17, %v206_v16  ;;  %v234_v16 = vld [vmem:[%s6117_s24 + $0x168] sm:$0xff]  ;;  %v235_v17 = vld [vmem:[%s6117_s24 + $0x170] sm:$0xff] }
  0x52   : > { %4851 = vrot.lane.b32.xlu1 %v4850_v24, %s6049_s25  ;;  %v362_v24 = vld [vmem:[%s6117_s24 + $0x16a] sm:$0xff] }
  0x53   : > { %4846 = vrot.lane.b32.xlu0 %v4845_v25, %s6049_s25  ;;  %v363_v25 = vld [vmem:[%s6117_s24 + $0x172] sm:$0xff] }
  0x54   : > { %v4955_v27 = vpack.i.bf16 %v363_v25, %v362_v24  ;;  %v210_v24 = vld [vmem:[%s6117_s24 + $0x78] sm:$0xff]  ;;  %v211_v25 = vld [vmem:[%s6117_s24 + $0x80] sm:$0xff] }
  0x56   : > { %4861 = vrot.lane.b32.xlu1 %v4860_v30, %s6049_s25  ;;  %v366_v30 = vld [vmem:[%s6117_s24 + $0x192] sm:$0xff] }
  0x57   : > { %4856 = vrot.lane.b32.xlu0 %v4855_v31, %s6049_s25  ;;  %v367_v31 = vld [vmem:[%s6117_s24 + $0x19a] sm:$0xff] }
  0x58   : > { %v4965_v33 = vpack.i.bf16 %v367_v31, %v366_v30  ;;  %v6359_v30 = vld [vmem:[%s6117_s24 + $0xb8] sm:$0xff] }
  0x59   : > { %v5060_v34 = vpack.i.bf16 %v6359_v30, %v6356_v29 }
  0x5a   : > { %4871 = vrot.lane.b32.xlu1 %v4870_v36, %s6050_s26  ;;  %v370_v36 = vld [vmem:[%s6117_s24 + $0x1ba] sm:$0xff] }
  0x5b   : > { %4866 = vrot.lane.b32.xlu0 %v4865_v37, %s6050_s26  ;;  %v371_v37 = vld [vmem:[%s6117_s24 + $0x1c2] sm:$0xff] }
  0x5c   : > { %v4975_v39 = vpack.i.bf16 %v371_v37, %v370_v36  ;;  %v6378_v37 = vld [vmem:[%s6117_s24 + $0xd8] sm:$0xff] }
  0x5e   : > { %4881 = vrot.lane.b32.xlu1 %v4880_v42, %s6050_s26  ;;  %v374_v42 = vld [vmem:[%s6117_s24 + $0x1e2] sm:$0xff] }
  0x5f   : > { %4876 = vrot.lane.b32.xlu0 %v4875_v43, %s6050_s26  ;;  %v375_v43 = vld [vmem:[%s6117_s24 + $0x1ea] sm:$0xff] }
  0x60   : > { %v4985_v45 = vpack.i.bf16 %v375_v43, %v374_v42  ;;  %v5065_v43 = vpack.i.bf16 %v6389_v41, %v6386_v40 }
  0x62   : > { %4891 = vrot.lane.b32.xlu1 %v4890_v48, %s6050_s26  ;;  %v378_v48 = vld [vmem:[%s6117_s24 + $0x20a] sm:$0xff] }
  0x63   : > { %4886 = vrot.lane.b32.xlu0 %v4885_v49, %s6050_s26  ;;  %v379_v49 = vld [vmem:[%s6117_s24 + $0x212] sm:$0xff] }
  0x64   : > { %v4995_v51 = vpack.i.bf16 %v379_v49, %v378_v48  ;;  %v6408_v48 = vld [vmem:[%s6117_s24 + $0xf0] sm:$0xff]  ;;  %v6411_v49 = vld [vmem:[%s6117_s24 + $0xf8] sm:$0xff] }
  0x66   : > { %4901 = vrot.lane.b32.xlu1 %v4900_v54, %s6050_s26 }
  0x67   : > { %4896 = vrot.lane.b32.xlu0 %v4895_v55, %s6050_s26  ;;  %v382_v55 = vld [vmem:[%s6117_s24 + $0x232] sm:$0xff] }
  0x68   : > { %v5005_v59 = vpack.i.bf16 %v383_v56, %v382_v55  ;;  %v6425_v55 = vld [vmem:[%s6117_s24 + $0x130] sm:$0xff] }
  0x6a   : > { %4911 = vrot.lane.b32.xlu1 %v4910_v60, %s6050_s26  ;;  %v388_v60 = vld [vmem:[%s6117_s24 + $0x26a] sm:$0xff] }
  0x6b   : > { %4906 = vrot.lane.b32.xlu0 %v4905_v61, %s6050_s26  ;;  %v389_v61 = vld [vmem:[%s6117_s24 + $0x272] sm:$0xff] }
  0x6e   : > { %4921 = vrot.lane.b32.xlu1 %v4920_v2, %s6050_s26  ;;  %v5020_v2 = vpack.i.bf16 %v389_v61, %v388_v60  ;;  %v5090_v60 = vpack.i.bf16 %v6425_v55, %v6422_v53 }
  0x6f   : > { %4916 = vrot.lane.b32.xlu0 %v4915_v3, %s6050_s26  ;;  %v5015_v3 = vpack.i.bf16 %v387_v0, %v386_v63  ;;  %v232_v0 = vld [vmem:[%s6117_s24 + $0x150] sm:$0xff] }
  0x72   : > { %4931 = vrot.lane.b32.xlu1 %v4930_v8, %s6050_s26  ;;  %v202_v8 = vld [vmem:[%s6117_s24 + $0x28] sm:$0xff] }
  0x73   : > { %4926 = vrot.lane.b32.xlu0 %v4925_v9, %s6050_s26  ;;  %v203_v9 = vld [vmem:[%s6117_s24 + $0x30] sm:$0xff] }
  0x74   : > { %v5025_v11 = vpack.i.bf16 %v203_v9, %v202_v8  ;;  %v5095_v9 = vpack.i.bf16 %v231_v6, %v230_v5 }
  0x76   : > { %4941 = vrot.lane.b32.xlu1 %v4940_v14, %s6050_s26  ;;  %v209_v14 = vld [vmem:[%s6117_s24 + $0x68] sm:$0xff] }
  0x77   : > { %4936 = vrot.lane.b32.xlu0 %v4935_v15, %s6050_s26  ;;  %v5040_v18 = vpack.i.bf16 %v209_v14, %v208_v13  ;;  %v237_v13 = vld [vmem:[%s6117_s24 + $0x180] sm:$0xff] }
  0x7a   : > { %4951 = vrot.lane.b32.xlu1 %v4950_v20, %s6050_s26 }
  0x7b   : > { %4946 = vrot.lane.b32.xlu0 %v4945_v21, %s6050_s26  ;;  %v6340_v21 = vld [vmem:[%s6117_s24 + $0x88] sm:$0xff] }
  0x7e   : > { %4961 = vrot.lane.b32.xlu1 %v4960_v26, %s6050_s26  ;;  %v5050_v26 = vpack.i.bf16 %v6343_v22, %v6340_v21 }
  0x7f   : > { %4956 = vrot.lane.b32.xlu0 %v4955_v27, %s6050_s26  ;;  %v5045_v27 = vpack.i.bf16 %v211_v25, %v210_v24  ;;  %v240_v25 = vld [vmem:[%s6117_s24 + $0x1a0] sm:$0xff] }
  0x82   : > { %4971 = vrot.lane.b32.xlu1 %v4970_v32, %s6050_s26  ;;  %v6364_v32 = vld [vmem:[%s6117_s24 + $0xa0] sm:$0xff] }
  0x83   : > { %4966 = vrot.lane.b32.xlu0 %v4965_v33, %s6050_s26  ;;  %v6367_v33 = vld [vmem:[%s6117_s24 + $0xa8] sm:$0xff] }
  0x84   : > { %v5055_v35 = vpack.i.bf16 %v6367_v33, %v6364_v32 }
  0x86   : > { %4981 = vrot.lane.b32.xlu1 %v4980_v38, %s6050_s26  ;;  %v6381_v38 = vld [vmem:[%s6117_s24 + $0xe0] sm:$0xff] }
  0x87   : > { %4976 = vrot.lane.b32.xlu0 %v4975_v39, %s6050_s26  ;;  %v5070_v42 = vpack.i.bf16 %v6381_v38, %v6378_v37 }
  0x8a   : > { %4991 = vrot.lane.b32.xlu1 %v4990_v44, %s6050_s26 }
  0x8b   : > { %4986 = vrot.lane.b32.xlu0 %v4985_v45, %s6050_s26  ;;  %v6400_v45 = vld [vmem:[%s6117_s24 + $0x100] sm:$0xff] }
  0x8c   : > { %v6299_v54 = vpop.permute.xlu1 %4716 }
  0x8d   : > { %9314 = vst [vmem:[#allocation3_spill] sm:$0xff] %v6299_v54  ;;  %v6303_v57 = vpop.permute.xlu0 %4706 }
  0x8e   : > { %9315 = vst [vmem:[#allocation4_spill] sm:$0xff] %v6303_v57  ;;  %5001 = vrot.lane.b32.xlu1 %v5000_v50, %s6050_s26  ;;  %v5080_v50 = vpack.i.bf16 %v6403_v46, %v6400_v45  ;;  %v4189_v57 = vld [vmem:[%s6117_s24 + $0x298] sm:$0xff] }
  0x8f   : > { %4996 = vrot.lane.b32.xlu0 %v4995_v51, %s6050_s26  ;;  %v5075_v51 = vpack.i.bf16 %v6411_v49, %v6408_v48 }
  0x90   : > { %v6309_v62 = vpop.permute.xlu1 %4721 }
  0x91   : > { %9316 = vst [vmem:[#allocation5_spill] sm:$0xff] %v6309_v62  ;;  %v6313_v1 = vpop.permute.xlu0 %4711  ;;  %v6570_v62 = vld [vmem:[%s6117_s24 + $0x258] sm:$0xff] }
  0x92   : > { %9317 = vst [vmem:[#allocation6_spill] sm:$0xff] %v6313_v1  ;;  %5011 = vrot.lane.b32.xlu1 %v5010_v58, %s6050_s26  ;;  %v6430_v58 = vld [vmem:[%s6117_s24 + $0x118] sm:$0xff]  ;;  %9347 = vst [vmem:[#allocation36_spill] sm:$0xff] %v6570_v62 }
  0x93   : > { %5006 = vrot.lane.b32.xlu0 %v5005_v59, %s6050_s26  ;;  %v6433_v59 = vld [vmem:[%s6117_s24 + $0x120] sm:$0xff] }
  0x94   : > { %v6317_v4 = vpop.permute.xlu1 %4731  ;;  %v5085_v61 = vpack.i.bf16 %v6433_v59, %v6430_v58 }
  0x95   : > { %9318 = vst [vmem:[#allocation7_spill] sm:$0xff] %v6317_v4  ;;  %v6321_v7 = vpop.permute.xlu0 %4726  ;;  %v6565_v4 = vld [vmem:[%s6117_s24 + $0x270] sm:$0xff] }
  0x96   : > { %9319 = vst [vmem:[#allocation8_spill] sm:$0xff] %v6321_v7  ;;  %5021 = vrot.lane.b32.xlu1 %v5020_v2, %s6050_s26  ;;  %v233_v2 = vld [vmem:[%s6117_s24 + $0x158] sm:$0xff]  ;;  %v6562_v7 = vld [vmem:[%s6117_s24 + $0x268] sm:$0xff]  ;;  %9345 = vst [vmem:[#allocation34_spill] sm:$0xff] %v6565_v4 }
  0x97   : > { %5016 = vrot.lane.b32.xlu0 %v5015_v3, %s6050_s26  ;;  %v5100_v8 = vpack.i.bf16 %v233_v2, %v232_v0  ;;  %v6482_v0 = vld [vmem:[%s6117_s24 + $0x1b8] sm:$0xff]  ;;  %v6485_v2 = vld [vmem:[%s6117_s24 + $0x1c0] sm:$0xff]  ;;  %9344 = vst [vmem:[#allocation33_spill] sm:$0xff] %v6562_v7 }
  0x98   : > { %v6327_v12 = vpop.permute.xlu1 %4741  ;;  %v5125_v6 = vpack.i.bf16 %v6485_v2, %v6482_v0 }
  0x99   : > { %v6331_v15 = vpop.permute.xlu0 %4736 }
  0x9a   : > { %9320 = vst [vmem:[#allocation9_spill] sm:$0xff] %v6331_v15  ;;  %5031 = vrot.lane.b32.xlu1 %v5030_v10, %s6051_s27 }
  0x9b   : > { %5026 = vrot.lane.b32.xlu0 %v5025_v11, %s6051_s27  ;;  %v236_v11 = vld [vmem:[%s6117_s24 + $0x178] sm:$0xff] }
  0x9c   : > { %v6337_v20 = vpop.permute.xlu1 %4751 }
  0x9d   : > { %v6345_v23 = vpop.permute.xlu0 %4746 }
  0x9e   : > { %5041 = vrot.lane.b32.xlu1 %v5040_v18, %s6051_s27  ;;  %v5110_v18 = vpack.i.bf16 %v237_v13, %v236_v11  ;;  %v6499_v11 = vld [vmem:[%s6117_s24 + $0x1f8] sm:$0xff] }
  0x9f   : > { %5036 = vrot.lane.b32.xlu0 %v5035_v19, %s6051_s27  ;;  %v5105_v19 = vpack.i.bf16 %v235_v17, %v234_v16  ;;  %v6504_v16 = vld [vmem:[%s6117_s24 + $0x1e0] sm:$0xff]  ;;  %v6507_v17 = vld [vmem:[%s6117_s24 + $0x1e8] sm:$0xff] }
  0xa0   : > { %v6353_v28 = vpop.permute.xlu1 %4761  ;;  %9329 = vst [vmem:[#allocation18_spill] sm:$0xff] %v6504_v16  ;;  %9330 = vst [vmem:[#allocation19_spill] sm:$0xff] %v6507_v17 }
  0xa1   : > { %v6361_v31 = vpop.permute.xlu0 %4756 }
  0xa2   : > { %5051 = vrot.lane.b32.xlu1 %v5050_v26, %s6051_s27  ;;  %v241_v26 = vld [vmem:[%s6117_s24 + $0x1a8] sm:$0xff] }
  0xa3   : > { %5046 = vrot.lane.b32.xlu0 %v5045_v27, %s6051_s27 }
  0xa4   : > { %v6375_v36 = vpop.permute.xlu1 %4771 }
  0xa5   : > { %v6383_v39 = vpop.permute.xlu0 %4766 }
  0xa6   : > { %5061 = vrot.lane.b32.xlu1 %v5060_v34, %s6051_s27  ;;  %v238_v34 = vld [vmem:[%s6117_s24 + $0x190] sm:$0xff] }
  0xa7   : > { %5056 = vrot.lane.b32.xlu0 %v5055_v35, %s6051_s27  ;;  %v239_v35 = vld [vmem:[%s6117_s24 + $0x198] sm:$0xff] }
  0xa8   : > { %v6397_v44 = vpop.permute.xlu1 %4781 }
  0xa9   : > { %v6405_v47 = vpop.permute.xlu0 %4776 }
  0xaa   : > { %5071 = vrot.lane.b32.xlu1 %v5070_v42, %s6051_s27  ;;  %v5120_v42 = vpack.i.bf16 %v241_v26, %v240_v25  ;;  %v6518_v26 = vld [vmem:[%s6117_s24 + $0x218] sm:$0xff] }
  0xab   : > { %5066 = vrot.lane.b32.xlu0 %v5065_v43, %s6051_s27  ;;  %v5115_v43 = vpack.i.bf16 %v239_v35, %v238_v34  ;;  %9332 = vst [vmem:[#allocation21_spill] sm:$0xff] %v6518_v26  ;;  %v6521_v34 = vld [vmem:[%s6117_s24 + $0x220] sm:$0xff] }
  0xac   : > { %v6419_v52 = vpop.permute.xlu1 %4791  ;;  %9333 = vst [vmem:[#allocation22_spill] sm:$0xff] %v6521_v34 }
  0xad   : > { %9321 = vst [vmem:[#allocation10_spill] sm:$0xff] %v6419_v52  ;;  %v6427_v56 = vpop.permute.xlu0 %4786 }
  0xae   : > { %9322 = vst [vmem:[#allocation11_spill] sm:$0xff] %v6427_v56  ;;  %5081 = vrot.lane.b32.xlu1 %v5080_v50, %s6051_s27 }
  0xaf   : > { %5076 = vrot.lane.b32.xlu0 %v5075_v51, %s6051_s27  ;;  %v6474_v51 = vld [vmem:[%s6117_s24 + $0x1c8] sm:$0xff] }
  0xb0   : > { %v6441_v63 = vpop.permute.xlu1 %4801 }
  0xb1   : > { %9323 = vst [vmem:[#allocation12_spill] sm:$0xff] %v6441_v63  ;;  %v6445_v3 = vpop.permute.xlu0 %4796  ;;  %v6551_v63 = vld [vmem:[%s6117_s24 + $0x238] sm:$0xff] }
  0xb2   : > { %9324 = vst [vmem:[#allocation13_spill] sm:$0xff] %v6445_v3  ;;  %5091 = vrot.lane.b32.xlu1 %v5090_v60, %s6051_s27  ;;  %v6477_v60 = vld [vmem:[%s6117_s24 + $0x1d0] sm:$0xff]  ;;  %9342 = vst [vmem:[#allocation31_spill] sm:$0xff] %v6551_v63 }
  0xb3   : > { %5086 = vrot.lane.b32.xlu0 %v5085_v61, %s6051_s27  ;;  %v5130_v5 = vpack.i.bf16 %v6477_v60, %v6474_v51 }
  0xb4   : > { %v6451_v10 = vpop.permute.xlu1 %4811 }
  0xb5   : > { %9325 = vst [vmem:[#allocation14_spill] sm:$0xff] %v6451_v10  ;;  %v6455_v14 = vpop.permute.xlu0 %4806  ;;  %v6543_v10 = vld [vmem:[%s6117_s24 + $0x248] sm:$0xff] }
  0xb6   : > { %9326 = vst [vmem:[#allocation15_spill] sm:$0xff] %v6455_v14  ;;  %5101 = vrot.lane.b32.xlu1 %v5100_v8, %s6051_s27  ;;  %v6540_v14 = vld [vmem:[%s6117_s24 + $0x240] sm:$0xff]  ;;  %9339 = vst [vmem:[#allocation28_spill] sm:$0xff] %v6543_v10 }
  0xb7   : > { %5096 = vrot.lane.b32.xlu0 %v5095_v9, %s6051_s27  ;;  %v6496_v9 = vld [vmem:[%s6117_s24 + $0x1f0] sm:$0xff]  ;;  %9338 = vst [vmem:[#allocation27_spill] sm:$0xff] %v6540_v14 }
  0xb8   : > { %v6461_v24 = vpop.permute.xlu1 %4821 }
  0xb9   : > { %v6465_v27 = vpop.permute.xlu0 %4816 }
  0xba   : > { %5111 = vrot.lane.b32.xlu1 %v5110_v18, %s6051_s27  ;;  %v5140_v18 = vpack.i.bf16 %v6499_v11, %v6496_v9 }
  0xbb   : > { %5106 = vrot.lane.b32.xlu0 %v5105_v19, %s6051_s27  ;;  %v5135_v19 = vpack.i.bf16 %v6507_v17, %v6504_v16  ;;  %v6644_v16 = vld [vmem:[%s6117_s24 + $0xe1] sm:$0xff] }
  0xbc   : > { %v6471_v50 = vpop.permute.xlu1 %4831 }
  0xbd   : > { %v6479_v61 = vpop.permute.xlu0 %4826 }
  0xbe   : > { %5121 = vrot.lane.b32.xlu1 %v5120_v42, %s6051_s27  ;;  %v6526_v42 = vld [vmem:[%s6117_s24 + $0x208] sm:$0xff] }
  0xbf   : > { %5116 = vrot.lane.b32.xlu0 %v5115_v43, %s6051_s27  ;;  %9335 = vst [vmem:[#allocation24_spill] sm:$0xff] %v6526_v42  ;;  %v6529_v43 = vld [vmem:[%s6117_s24 + $0x210] sm:$0xff] }
  0xc0   : > { %v6493_v8 = vpop.permute.xlu1 %4841  ;;  %9336 = vst [vmem:[#allocation25_spill] sm:$0xff] %v6529_v43 }
  0xc1   : > { %9327 = vst [vmem:[#allocation16_spill] sm:$0xff] %v6493_v8  ;;  %v6501_v13 = vpop.permute.xlu0 %4836 }
  0xc2   : > { %9328 = vst [vmem:[#allocation17_spill] sm:$0xff] %v6501_v13  ;;  %5131 = vrot.lane.b32.xlu1 %v5130_v5, %s6051_s27  ;;  %v5150_v5 = vpack.i.bf16 %v6521_v34, %v6518_v26 }
  0xc3   : > { %5126 = vrot.lane.b32.xlu0 %v5125_v6, %s6051_s27  ;;  %v5145_v6 = vpack.i.bf16 %v6529_v43, %v6526_v42  ;;  %v6619_v43 = vld [vmem:[%s6117_s24 + $0x81] sm:$0xff] }
  0xc4   : > { %v6515_v25 = vpop.permute.xlu1 %4851 }
  0xc5   : > { %9331 = vst [vmem:[#allocation20_spill] sm:$0xff] %v6515_v25  ;;  %v6523_v35 = vpop.permute.xlu0 %4846  ;;  %v4748_v25 = vunpack.i.l.bf16 %v6345_v23 }
  0xc6   : > { %9334 = vst [vmem:[#allocation23_spill] sm:$0xff] %v6523_v35  ;;  %5141 = vrot.lane.b32.xlu1 %v5140_v18, %s6051_s27  ;;  %v6548_v18 = vld [vmem:[%s6117_s24 + $0x230] sm:$0xff]  ;;  %v6631_v35 = vld [vmem:[%s6117_s24 + $0xa1] sm:$0xff] }
  0xc7   : > { %5136 = vrot.lane.b32.xlu0 %v5135_v19, %s6051_s27  ;;  %9341 = vst [vmem:[#allocation30_spill] sm:$0xff] %v6548_v18  ;;  %v5160_v19 = vpack.i.bf16 %v6543_v10, %v6540_v14  ;;  %v5155_v56 = vpack.i.bf16 %v6551_v63, %v6548_v18  ;;  %v4191_v63 = vld [vmem:[%s6117_s24 + $0x31] sm:$0xff]  ;;  %v4196_v18 = vld [vmem:[%s6117_s24 + $0x61] sm:$0xff] }
  0xc8   : > { %v6537_v15 = vpop.permute.xlu1 %4861 }
  0xc9   : > { %9337 = vst [vmem:[#allocation26_spill] sm:$0xff] %v6537_v15  ;;  %v6545_v3 = vpop.permute.xlu0 %4856 }
  0xca   : > { %9340 = vst [vmem:[#allocation29_spill] sm:$0xff] %v6545_v3  ;;  %5151 = vrot.lane.b32.xlu1 %v5150_v5, %s6051_s27  ;;  %v6573_v5 = vld [vmem:[%s6117_s24 + $0x260] sm:$0xff] }
  0xcb   : > { %5146 = vrot.lane.b32.xlu0 %v5145_v6, %s6051_s27  ;;  %9348 = vst [vmem:[#allocation37_spill] sm:$0xff] %v6573_v5  ;;  %v5170_v6 = vpack.i.bf16 %v6565_v4, %v6562_v7  ;;  %v4186_v3 = vld [vmem:[%s6117_s24 + $0x280] sm:$0xff] }
  0xcc   : > { %v6559_v52 = vpop.permute.xlu1 %4871 }
  0xcd   : > { %9343 = vst [vmem:[#allocation32_spill] sm:$0xff] %v6559_v52  ;;  %v6567_v1 = vpop.permute.xlu0 %4866  ;;  %v5165_v52 = vpack.i.bf16 %v6573_v5, %v6570_v62  ;;  %v4192_v5 = vld [vmem:[%s6117_s24 + $0x39] sm:$0xff]  ;;  %v4193_v62 = vld [vmem:[%s6117_s24 + $0x41] sm:$0xff] }
  0xce   : > { %9346 = vst [vmem:[#allocation35_spill] sm:$0xff] %v6567_v1  ;;  %5161 = vrot.lane.b32.xlu1 %v5160_v19, %s6051_s27  ;;  %v4188_v1 = vld [vmem:[%s6117_s24 + $0x290] sm:$0xff]  ;;  %v4187_v19 = vld [vmem:[%s6117_s24 + $0x288] sm:$0xff] }
  0xcf   : > { %5156 = vrot.lane.b32.xlu0 %v5155_v56, %s6051_s27  ;;  %v5180_v4 = vpack.i.bf16 %v4189_v57, %v4188_v1  ;;  %v5175_v56 = vpack.i.bf16 %v4187_v19, %v4186_v3  ;;  %v6602_v57 = vld [vmem:[%s6117_s24 + $0x51] sm:$0xff]  ;;  %v4195_v1 = vld [vmem:[%s6117_s24 + $0x59] sm:$0xff]  ;;  %v4743_v3 = vunpack.i.l.bf16 %v6327_v12  ;;  %v6609_v19 = vld [vmem:[%s6117_s24 + $0x89] sm:$0xff] }
  0xd0   : > { %v6583_v54 = vpop.permute.xlu1 %4881  ;;  %v5195_v26 = vpack.i.bf16 %v4195_v1, %v6602_v57 }
  0xd1   : > { %9349 = vst [vmem:[#allocation38_spill] sm:$0xff] %v6583_v54  ;;  %v6587_v15 = vpop.permute.xlu0 %4876  ;;  %v4190_v54 = vld [vmem:[%s6117_s24 + $0x29] sm:$0xff] }
  0xd2   : > { %9350 = vst [vmem:[#allocation39_spill] sm:$0xff] %v6587_v15  ;;  %5171 = vrot.lane.b32.xlu1 %v5170_v6, %s6051_s27  ;;  %v4197_v15 = vld [vmem:[%s6117_s24 + $0x69] sm:$0xff]  ;;  %v5190_v6 = vpack.i.bf16 %v4193_v62, %v4192_v5  ;;  %v5185_v14 = vpack.i.bf16 %v4191_v63, %v4190_v54  ;;  %v6625_v62 = vld [vmem:[%s6117_s24 + $0xb9] sm:$0xff]  ;;  %v4753_v5 = vunpack.i.l.bf16 %v6337_v20 }
  0xd3   : > { %5166 = vrot.lane.b32.xlu0 %v5165_v52, %s6051_s27  ;;  %v4744_v52 = vunpack.i.h.bf16 %v6327_v12  ;;  %v6622_v12 = vld [vmem:[%s6117_s24 + $0xb1] sm:$0xff]  ;;  %v5200_v34 = vpack.i.bf16 %v4197_v15, %v4196_v18  ;;  %v6634_v54 = vld [vmem:[%s6117_s24 + $0xa9] sm:$0xff]  ;;  %v6637_v63 = vld [vmem:[%s6117_s24 + $0xd9] sm:$0xff]  ;;  %v2843_v18 = vsel %vm2828_vm0, %v6340_v21, %v4743_v3 }
  0xd4   : > { %v6593_v7 = vpop.permute.xlu1 %4891  ;;  %v6650_v15 = vld [vmem:[%s6117_s24 + $0xd1] sm:$0xff]  ;;  %v5220_v21 = vpack.i.bf16 %v6625_v62, %v6622_v12 }
  0xd5   : > { %9351 = vst [vmem:[#allocation40_spill] sm:$0xff] %v6593_v7  ;;  %v6598_v10 = vpop.permute.xlu0 %4886  ;;  %v6612_v7 = vld [vmem:[%s6117_s24 + $0x91] sm:$0xff]  ;;  %v2844_v57 = vsel %vm2828_vm0, %v6343_v22, %v4744_v52  ;;  %v5215_v22 = vpack.i.bf16 %v6634_v54, %v6631_v35 }
  0xd6   : > { %9352 = vst [vmem:[#allocation41_spill] sm:$0xff] %v6598_v10  ;;  %5181 = vrot.lane.b32.xlu1 %v5180_v4, %s6051_s27  ;;  %v6615_v10 = vld [vmem:[%s6117_s24 + $0x79] sm:$0xff]  ;;  %v4754_v4 = vunpack.i.h.bf16 %v6337_v20  ;;  %v6647_v20 = vld [vmem:[%s6117_s24 + $0xc9] sm:$0xff] }
  0xd7   : > { %5176 = vrot.lane.b32.xlu0 %v5175_v56, %s6051_s27  ;;  %v4749_v56 = vunpack.i.h.bf16 %v6345_v23  ;;  %v5210_v23 = vpack.i.bf16 %v6612_v7, %v6609_v19  ;;  %v2847_v7 = vsel %vm2828_vm0, %v6356_v29, %v4753_v5  ;;  %v4764_v29 = vunpack.i.h.bf16 %v6353_v28 }
  0xd8   : > { %v4902_v42 = vpop.permute.xlu1 %4901  ;;  %v4758_v5 = vunpack.i.l.bf16 %v6361_v31 }
  0xd9   : > { %v4904_v13 = vunpack.i.h.bf16 %v4902_v42  ;;  %v4903_v8 = vunpack.i.l.bf16 %v4902_v42  ;;  %v6641_v17 = vpop.permute.xlu0 %4896  ;;  %v5205_v42 = vpack.i.bf16 %v6619_v43, %v6615_v10  ;;  %v2848_v10 = vsel %vm2828_vm0, %v6359_v30, %v4754_v4 }
  0xda   : > { %9353 = vst [vmem:[#allocation42_spill] sm:$0xff] %v6641_v17  ;;  %5191 = vrot.lane.b32.xlu1 %v5190_v6, %s6052_s28  ;;  %v2846_v52 = vsel %vm2828_vm0, %v6367_v33, %v4749_v56  ;;  %v4763_v30 = vunpack.i.l.bf16 %v6353_v28  ;;  %v4759_v4 = vunpack.i.h.bf16 %v6361_v31  ;;  %v4773_v28 = vunpack.i.l.bf16 %v6375_v36 }
  0xdb   : > { %v6662_v1 = vsel %vm2893_vm1, %v2843_v18, %v4903_v8  ;;  %v6665_v17 = vsel %vm2893_vm1, %v2844_v57, %v4904_v13  ;;  %5186 = vrot.lane.b32.xlu0 %v5185_v14, %s6052_s28  ;;  %v5230_v8 = vpack.i.bf16 %v6644_v16, %v6637_v63  ;;  %v5225_v13 = vpack.i.bf16 %v6650_v15, %v6647_v20  ;;  %v4216_v16 = vld [vmem:[%s6117_s24 + $0x129] sm:$0xff]  ;;  %v4217_v63 = vld [vmem:[%s6117_s24 + $0x131] sm:$0xff]  ;;  %v4215_v20 = vld [vmem:[%s6117_s24 + $0x121] sm:$0xff] }
  0xdc   : > { %v4912_v43 = vpop.permute.xlu1 %4911  ;;  %v2845_v14 = vsel %vm2828_vm0, %v6364_v32, %v4748_v25  ;;  %v4774_v25 = vunpack.i.h.bf16 %v6375_v36  ;;  %v4769_v31 = vunpack.i.h.bf16 %v6383_v39  ;;  %v4768_v57 = vunpack.i.l.bf16 %v6383_v39 }
  0xdd   : > { %v4914_v3 = vunpack.i.h.bf16 %v4912_v43  ;;  %v4913_v6 = vunpack.i.l.bf16 %v4912_v43  ;;  %v4907_v19 = vpop.permute.xlu0 %4906  ;;  %v2852_v36 = vsel %vm2828_vm0, %v6381_v38, %v4764_v29  ;;  %v2850_v39 = vsel %vm2828_vm0, %v6389_v41, %v4759_v4 }
  0xde   : > { %v4909_v12 = vunpack.i.h.bf16 %v4907_v19  ;;  %v4908_v62 = vunpack.i.l.bf16 %v4907_v19  ;;  %5201 = vrot.lane.b32.xlu1 %v5200_v34, %s6052_s28  ;;  %v2856_v38 = vsel %vm2828_vm0, %v6403_v46, %v4774_v25  ;;  %v2853_v29 = vsel %vm2828_vm0, %v6408_v48, %v4768_v57 }
  0xdf   : > { %v6690_v32 = vsel %vm2893_vm1, %v2847_v7, %v4913_v6  ;;  %v6693_v33 = vsel %vm2893_vm1, %v2848_v10, %v4914_v3  ;;  %5196 = vrot.lane.b32.xlu0 %v5195_v26, %s6052_s28  ;;  %v2851_v26 = vsel %vm2828_vm0, %v6378_v37, %v4763_v30  ;;  %v2855_v37 = vsel %vm2828_vm0, %v6400_v45, %v4773_v28  ;;  %v4213_v28 = vld [vmem:[%s6117_s24 + $0x109] sm:$0xff] }
  0xe0   : > { %v6699_v56 = vsel %vm2893_vm1, %v2845_v14, %v4908_v62  ;;  %v6702_v34 = vsel %vm2893_vm1, %v2846_v52, %v4909_v12  ;;  %v4922_v18 = vpop.permute.xlu1 %4921  ;;  %v2849_v52 = vsel %vm2828_vm0, %v6386_v40, %v4758_v5  ;;  %v4212_v62 = vld [vmem:[%s6117_s24 + $0x101] sm:$0xff]  ;;  %v4784_v46 = vunpack.i.h.bf16 %v6397_v44 }
  0xe1   : > { %v4924_v7 = vunpack.i.h.bf16 %v4922_v18  ;;  %v4923_v10 = vunpack.i.l.bf16 %v4922_v18  ;;  %v4917_v43 = vpop.permute.xlu0 %4916  ;;  %v4783_v4 = vunpack.i.l.bf16 %v6397_v44  ;;  %v4210_v18 = vld [vmem:[%s6117_s24 + $0xf1] sm:$0xff]  ;;  %v4779_v48 = vunpack.i.h.bf16 %v6405_v47 }
  0xe2   : > { %v4919_v3 = vunpack.i.h.bf16 %v4917_v43  ;;  %v4918_v14 = vunpack.i.l.bf16 %v4917_v43  ;;  %5211 = vrot.lane.b32.xlu1 %v5210_v23, %s6052_s28  ;;  %v4778_v57 = vunpack.i.l.bf16 %v6405_v47  ;;  %v2860_v35 = vsel %vm2828_vm0, %v6425_v55, %v4784_v46  ;;  %v4222_v46 = vld [vmem:[%s6117_s24 + $0x169] sm:$0xff] }
  0xe3   : > { %v6716_v6 = vsel %vm2893_vm1, %v2851_v26, %v4923_v10  ;;  %v6719_v19 = vsel %vm2893_vm1, %v2852_v36, %v4924_v7  ;;  %5206 = vrot.lane.b32.xlu0 %v5205_v42, %s6052_s28  ;;  %v2854_v42 = vsel %vm2828_vm0, %v6411_v49, %v4769_v31  ;;  %v4211_v7 = vld [vmem:[%s6117_s24 + $0xf9] sm:$0xff]  ;;  %v5240_v36 = vpack.i.bf16 %v4213_v28, %v4212_v62  ;;  %v4225_v62 = vld [vmem:[%s6117_s24 + $0x181] sm:$0xff]  ;;  %v6815_v28 = vld [vmem:[%s6117_s24 + $0x1a9] sm:$0xff] }
  0xe4   : > { %v6727_v40 = vsel %vm2893_vm1, %v2849_v52, %v4918_v14  ;;  %v6730_v41 = vsel %vm2893_vm1, %v2850_v39, %v4919_v3  ;;  %v4932_v23 = vpop.permute.xlu1 %4931  ;;  %v5235_v3 = vpack.i.bf16 %v4211_v7, %v4210_v18  ;;  %v2859_v14 = vsel %vm2828_vm0, %v6422_v53, %v4783_v4  ;;  %v4223_v4 = vld [vmem:[%s6117_s24 + $0x171] sm:$0xff]  ;;  %v6821_v7 = vld [vmem:[%s6117_s24 + $0x199] sm:$0xff] }
  0xe5   : > { %v4934_v45 = vunpack.i.h.bf16 %v4932_v23  ;;  %v4933_v30 = vunpack.i.l.bf16 %v4932_v23  ;;  %v4927_v12 = vpop.permute.xlu0 %4926  ;;  %v2857_v52 = vsel %vm2828_vm0, %v6430_v58, %v4778_v57  ;;  %v2858_v39 = vsel %vm2828_vm0, %v6433_v59, %v4779_v48  ;;  %v6818_v18 = vld [vmem:[%s6117_s24 + $0x191] sm:$0xff]  ;;  %v6825_v57 = vld [vmem:[%s6117_s24 + $0x1c9] sm:$0xff] }
  0xe6   : > { %v4929_v5 = vunpack.i.h.bf16 %v4927_v12  ;;  %v4928_v25 = vunpack.i.l.bf16 %v4927_v12  ;;  %5221 = vrot.lane.b32.xlu1 %v5220_v21, %s6052_s28  ;;  %v4224_v12 = vld [vmem:[%s6117_s24 + $0x179] sm:$0xff] }
  0xe7   : > { %v6746_v49 = vsel %vm2893_vm1, %v2855_v37, %v4933_v30  ;;  %v6749_v31 = vsel %vm2893_vm1, %v2856_v38, %v4934_v45  ;;  %5216 = vrot.lane.b32.xlu0 %v5215_v22, %s6052_s28  ;;  %v4214_v37 = vld [vmem:[%s6117_s24 + $0x119] sm:$0xff]  ;;  %v4220_v38 = vld [vmem:[%s6117_s24 + $0x151] sm:$0xff]  ;;  %v4219_v45 = vld [vmem:[%s6117_s24 + $0x149] sm:$0xff] }
  0xe8   : > { %v6756_v44 = vsel %vm2893_vm1, %v2853_v29, %v4928_v25  ;;  %v6759_v21 = vsel %vm2893_vm1, %v2854_v42, %v4929_v5  ;;  %v4942_v10 = vpop.permute.xlu1 %4941  ;;  %v5245_v23 = vpack.i.bf16 %v4215_v20, %v4214_v37  ;;  %v4221_v29 = vld [vmem:[%s6117_s24 + $0x159] sm:$0xff]  ;;  %v4218_v42 = vld [vmem:[%s6117_s24 + $0x141] sm:$0xff]  ;;  %v5275_v37 = vpack.i.bf16 %v6821_v7, %v6818_v18 }
  0xe9   : > { %v4944_v47 = vunpack.i.h.bf16 %v4942_v10  ;;  %v4943_v43 = vunpack.i.l.bf16 %v4942_v10  ;;  %v4937_v26 = vpop.permute.xlu0 %4936  ;;  %v6810_v5 = vld [vmem:[%s6117_s24 + $0x1a1] sm:$0xff]  ;;  %v5260_v48 = vpack.i.bf16 %v4221_v29, %v4220_v38  ;;  %v6828_v10 = vld [vmem:[%s6117_s24 + $0x1d1] sm:$0xff]  ;;  %v4823_v29 = vunpack.i.l.bf16 %v6461_v24 }
  0xea   : > { %v4939_v54 = vunpack.i.h.bf16 %v4937_v26  ;;  %v4938_v22 = vunpack.i.l.bf16 %v4937_v26  ;;  %5231 = vrot.lane.b32.xlu1 %v5230_v8, %s6052_s28  ;;  %v6835_v26 = vld [vmem:[%s6117_s24 + $0x1c1] sm:$0xff]  ;;  %v6867_v38 = vld [vmem:[%s6117_s24 + $0x211] sm:$0xff] }
  0xeb   : > { %v6774_v53 = vsel %vm2893_vm1, %v2859_v14, %v4943_v43  ;;  %v6777_v55 = vsel %vm2893_vm1, %v2860_v35, %v4944_v47  ;;  %5226 = vrot.lane.b32.xlu0 %v5225_v13, %s6052_s28  ;;  %v5250_v13 = vpack.i.bf16 %v4217_v63, %v4216_v16  ;;  %v6831_v47 = vld [vmem:[%s6117_s24 + $0x1b9] sm:$0xff]  ;;  %v5255_v43 = vpack.i.bf16 %v4219_v45, %v4218_v42  ;;  %v6846_v35 = vld [vmem:[%s6117_s24 + $0x1e1] sm:$0xff] }
  0xec   : > { %v6786_v58 = vsel %vm2893_vm1, %v2857_v52, %v4938_v22  ;;  %v6789_v59 = vsel %vm2893_vm1, %v2858_v39, %v4939_v54  ;;  %v6791_v8 = vpop.permute.xlu1 %4951  ;;  %v6849_v54 = vld [vmem:[%s6117_s24 + $0x1e9] sm:$0xff]  ;;  %v6852_v22 = vld [vmem:[%s6117_s24 + $0x219] sm:$0xff]  ;;  %v5270_v39 = vpack.i.bf16 %v4225_v62, %v4224_v12  ;;  %v5265_v16 = vpack.i.bf16 %v4223_v4, %v4222_v46  ;;  %v6861_v20 = vld [vmem:[%s6117_s24 + $0x221] sm:$0xff] }
  0xed   : > { %9354 = vst [vmem:[#allocation43_spill] sm:$0xff] %v6791_v8  ;;  %v6795_v15 = vpop.permute.xlu0 %4946  ;;  %v5280_v63 = vpack.i.bf16 %v6815_v28, %v6810_v5  ;;  %v5290_v42 = vpack.i.bf16 %v6828_v10, %v6825_v57  ;;  %v4819_v12 = vunpack.i.h.bf16 %v6465_v27  ;;  %v4818_v62 = vunpack.i.l.bf16 %v6465_v27 }
  0xee   : > { %9355 = vst [vmem:[#allocation44_spill] sm:$0xff] %v6795_v15  ;;  %5241 = vrot.lane.b32.xlu1 %v5240_v36, %s6052_s28  ;;  %v6838_v36 = vld [vmem:[%s6117_s24 + $0x1f1] sm:$0xff]  ;;  %v4834_v4 = vunpack.i.h.bf16 %v6471_v50  ;;  %v4833_v5 = vunpack.i.l.bf16 %v6471_v50  ;;  %v4829_v27 = vunpack.i.h.bf16 %v6479_v61 }
  0xef   : > { %5236 = vrot.lane.b32.xlu0 %v5235_v3, %s6052_s28  ;;  %v6841_v3 = vld [vmem:[%s6117_s24 + $0x1f9] sm:$0xff]  ;;  %v2873_v7 = vsel %vm2828_vm0, %v6482_v0, %v4818_v62  ;;  %v2874_v18 = vsel %vm2828_vm0, %v6485_v2, %v4819_v12  ;;  %v4309_v15 = vld [vmem:[%s6117_s24 + $0x24a] sm:$0xff] }
  0xf0   : > { %v6803_v30 = vpop.permute.xlu1 %4961  ;;  %v9361_v12 = vld [vmem:[#allocation19_spill] sm:$0xff] }
  0xf1   : > { %9356 = vst [vmem:[#allocation45_spill] sm:$0xff] %v6803_v30  ;;  %v6812_v25 = vpop.permute.xlu0 %4956  ;;  %v2878_v62 = vsel %vm2828_vm0, %v9361_v12, %v4829_v27  ;;  %v9365_v12 = vld [vmem:[#allocation23_spill] sm:$0xff] }
  0xf2   : > { %9357 = vst [vmem:[#allocation46_spill] sm:$0xff] %v6812_v25  ;;  %5251 = vrot.lane.b32.xlu1 %v5250_v13, %s6052_s28  ;;  %v6864_v13 = vld [vmem:[%s6117_s24 + $0x209] sm:$0xff] }
  0xf3   : > { %5246 = vrot.lane.b32.xlu0 %v5245_v23, %s6052_s28  ;;  %v4824_v23 = vunpack.i.h.bf16 %v6461_v24  ;;  %v2875_v24 = vsel %vm2828_vm0, %v6474_v51, %v4823_v29  ;;  %v2879_v51 = vsel %vm2828_vm0, %v6496_v9, %v4833_v5  ;;  %v9362_v9 = vld [vmem:[#allocation16_spill] sm:$0xff] }
  0xf4   : > { %v6843_v14 = vpop.permute.xlu1 %4971  ;;  %v4844_v5 = vunpack.i.h.bf16 %v9362_v9 }
  0xf5   : > { %9358 = vst [vmem:[#allocation47_spill] sm:$0xff] %v6843_v14  ;;  %v6854_v52 = vpop.permute.xlu0 %4966  ;;  %v2876_v50 = vsel %vm2828_vm0, %v6477_v60, %v4824_v23  ;;  %v2880_v60 = vsel %vm2828_vm0, %v6499_v11, %v4834_v4  ;;  %v9360_v23 = vld [vmem:[#allocation18_spill] sm:$0xff]  ;;  %v4843_v11 = vunpack.i.l.bf16 %v9362_v9  ;;  %v9366_v9 = vld [vmem:[#allocation21_spill] sm:$0xff] }
  0xf6   : > { %9359 = vst [vmem:[#allocation48_spill] sm:$0xff] %v6854_v52  ;;  %5261 = vrot.lane.b32.xlu1 %v5260_v48, %s6052_s28  ;;  %v4828_v48 = vunpack.i.l.bf16 %v6479_v61 }
  0xf7   : > { %5256 = vrot.lane.b32.xlu0 %v5255_v43, %s6052_s28 }
  0xf8   : > { %v4982_v28 = vpop.permute.xlu1 %4981  ;;  %v2877_v29 = vsel %vm2828_vm0, %v9360_v23, %v4828_v48 }
  0xf9   : > { %v4984_v57 = vunpack.i.h.bf16 %v4982_v28  ;;  %v4983_v10 = vunpack.i.l.bf16 %v4982_v28  ;;  %v4977_v43 = vpop.permute.xlu0 %4976 }
  0xfa   : > { %v4979_v46 = vunpack.i.h.bf16 %v4977_v43  ;;  %v4978_v45 = vunpack.i.l.bf16 %v4977_v43  ;;  %5271 = vrot.lane.b32.xlu1 %v5270_v39, %s6052_s28 }
  0xfb   : > { %v6901_v61 = vsel %vm2893_vm1, %v2875_v24, %v4983_v10  ;;  %v6904_v28 = vsel %vm2893_vm1, %v2876_v50, %v4984_v57  ;;  %5266 = vrot.lane.b32.xlu0 %v5265_v16, %s6052_s28  ;;  %v9364_v10 = vld [vmem:[#allocation20_spill] sm:$0xff] }
  0xfc   : > { %v6912_v39 = vsel %vm2893_vm1, %v2873_v7, %v4978_v45  ;;  %v6915_v0 = vsel %vm2893_vm1, %v2874_v18, %v4979_v46  ;;  %v4992_v2 = vpop.permute.xlu1 %4991  ;;  %v9363_v46 = vld [vmem:[#allocation17_spill] sm:$0xff]  ;;  %v4854_v43 = vunpack.i.h.bf16 %v9364_v10  ;;  %v4853_v50 = vunpack.i.l.bf16 %v9364_v10 }
  0xfd   : > { %v4994_v16 = vunpack.i.h.bf16 %v4992_v2  ;;  %v4993_v24 = vunpack.i.l.bf16 %v4992_v2  ;;  %v4987_v57 = vpop.permute.xlu0 %4986  ;;  %v4839_v18 = vunpack.i.h.bf16 %v9363_v46  ;;  %v4838_v7 = vunpack.i.l.bf16 %v9363_v46  ;;  %v9367_v46 = vld [vmem:[#allocation22_spill] sm:$0xff] }
  0xfe   : > { %v4989_v4 = vunpack.i.h.bf16 %v4987_v57  ;;  %v4988_v45 = vunpack.i.l.bf16 %v4987_v57  ;;  %5281 = vrot.lane.b32.xlu1 %v5280_v63, %s6052_s28  ;;  %v4849_v57 = vunpack.i.h.bf16 %v9365_v12  ;;  %v2884_v10 = vsel %vm2828_vm0, %v9367_v46, %v4844_v5 }
  0xff   : > { %v6927_v48 = vsel %vm2893_vm1, %v2879_v51, %v4993_v24  ;;  %v6930_v27 = vsel %vm2893_vm1, %v2880_v60, %v4994_v16  ;;  %5276 = vrot.lane.b32.xlu0 %v5275_v37, %s6052_s28  ;;  %v4848_v51 = vunpack.i.l.bf16 %v9365_v12  ;;  %v2883_v37 = vsel %vm2828_vm0, %v9366_v9, %v4843_v11  ;;  %v9371_v11 = vld [vmem:[#allocation27_spill] sm:$0xff]  ;;  %v9373_v9 = vld [vmem:[#allocation30_spill] sm:$0xff] }
 0x100   : > { %v6936_v2 = vsel %vm2893_vm1, %v2877_v29, %v4988_v45  ;;  %v6939_v63 = vsel %vm2893_vm1, %v2878_v62, %v4989_v4  ;;  %v5002_v23 = vpop.permute.xlu1 %5001  ;;  %v9368_v62 = vld [vmem:[#allocation24_spill] sm:$0xff]  ;;  %v9369_v45 = vld [vmem:[#allocation25_spill] sm:$0xff]  ;;  %v9370_v5 = vpack.i.bf16 %v6835_v26, %v6831_v47  ;;  %v9374_v26 = vld [vmem:[#allocation31_spill] sm:$0xff] }
 0x101   : > { %v5004_v24 = vunpack.i.h.bf16 %v5002_v23  ;;  %v5003_v60 = vunpack.i.l.bf16 %v5002_v23  ;;  %v4997_v16 = vpop.permute.xlu0 %4996  ;;  %v2881_v4 = vsel %vm2828_vm0, %v9368_v62, %v4838_v7  ;;  %v2882_v12 = vsel %vm2828_vm0, %v9369_v45, %v4839_v18  ;;  %v4244_v62 = vld [vmem:[%s6117_s24 + $0x241] sm:$0xff] }
 0x102   : > { %v4999_v52 = vunpack.i.h.bf16 %v4997_v16  ;;  %v4998_v29 = vunpack.i.l.bf16 %v4997_v16  ;;  %5291 = vrot.lane.b32.xlu1 %v5290_v42, %s6052_s28  ;;  %v2887_v42 = vsel %vm2828_vm0, %v9371_v11, %v4853_v50  ;;  %v9372_v16 = vld [vmem:[#allocation28_spill] sm:$0xff]  ;;  %v2885_v47 = vsel %vm2828_vm0, %v9373_v9, %v4848_v51  ;;  %v4242_v51 = vld [vmem:[%s6117_s24 + $0x231] sm:$0xff]  ;;  %v4243_v11 = vld [vmem:[%s6117_s24 + $0x239] sm:$0xff] }
 0x103   : > { %v6953_v23 = vsel %vm2893_vm1, %v2883_v37, %v5003_v60  ;;  %v6956_v14 = vsel %vm2893_vm1, %v2884_v10, %v5004_v24  ;;  %5286 = vrot.lane.b32.xlu0 %v9370_v5, %s6052_s28  ;;  %v2888_v7 = vsel %vm2828_vm0, %v9372_v16, %v4854_v43  ;;  %v2886_v37 = vsel %vm2828_vm0, %v9374_v26, %v4849_v57  ;;  %v9375_v43 = vld [vmem:[#allocation26_spill] sm:$0xff]  ;;  %v9377_v16 = vld [vmem:[#allocation29_spill] sm:$0xff] }
 0x104   : > { %v6967_v18 = vsel %vm2893_vm1, %v2881_v4, %v4998_v29  ;;  %v6970_v24 = vsel %vm2893_vm1, %v2882_v12, %v4999_v52  ;;  %v5012_v60 = vpop.permute.xlu1 %5011  ;;  %v4864_v45 = vunpack.i.h.bf16 %v9375_v43  ;;  %v4863_v29 = vunpack.i.l.bf16 %v9375_v43  ;;  %v4245_v12 = vld [vmem:[%s6117_s24 + $0x249] sm:$0xff] }
 0x105   : > { %v5014_v50 = vunpack.i.h.bf16 %v5012_v60  ;;  %v5013_v46 = vunpack.i.l.bf16 %v5012_v60  ;;  %v5007_v10 = vpop.permute.xlu0 %5006  ;;  %v9376_v52 = vpack.i.bf16 %v6841_v3, %v6838_v36  ;;  %v4859_v57 = vunpack.i.h.bf16 %v9377_v16 }
 0x106   : > { %v5009_v4 = vunpack.i.h.bf16 %v5007_v10  ;;  %v5008_v5 = vunpack.i.l.bf16 %v5007_v10  ;;  %v4858_v60 = vunpack.i.l.bf16 %v9377_v16  ;;  %v9378_v10 = vpack.i.bf16 %v6849_v54, %v6846_v35  ;;  %v9380_v35 = vld [vmem:[#allocation34_spill] sm:$0xff] }
 0x107   : > { %5301 = vrot.lane.b32.xlu1 %v9376_v52, %s6052_s28  ;;  %v6989_v9 = vsel %vm2893_vm1, %v2887_v42, %v5013_v46  ;;  %v6992_v26 = vsel %vm2893_vm1, %v2888_v7, %v5014_v50  ;;  %v5320_v16 = vpack.i.bf16 %v4245_v12, %v4244_v62  ;;  %v5315_v7 = vpack.i.bf16 %v4243_v11, %v4242_v51  ;;  %v9379_v50 = vld [vmem:[#allocation33_spill] sm:$0xff] }
 0x108   : > { %5296 = vrot.lane.b32.xlu0 %v9378_v10, %s6052_s28  ;;  %v6999_v36 = vsel %vm2893_vm1, %v2885_v47, %v5008_v5  ;;  %v7002_v3 = vsel %vm2893_vm1, %v2886_v37, %v5009_v4  ;;  %v5022_v43 = vpop.permute.xlu1 %5021  ;;  %v2891_v25 = vsel %vm2828_vm0, %v9379_v50, %v4863_v29  ;;  %v2892_v54 = vsel %vm2828_vm0, %v9380_v35, %v4864_v45  ;;  %v9382_v4 = vld [vmem:[#allocation36_spill] sm:$0xff]  ;;  %v9383_v62 = vld [vmem:[#allocation37_spill] sm:$0xff] }
 0x109   : > { %v5024_v52 = vunpack.i.h.bf16 %v5022_v43  ;;  %v5023_v42 = vunpack.i.l.bf16 %v5022_v43  ;;  %v5017_v46 = vpop.permute.xlu0 %5016  ;;  %v9381_v37 = vpack.i.bf16 %v6861_v20, %v6852_v22  ;;  %v2889_v10 = vsel %vm2828_vm0, %v9382_v4, %v4858_v60  ;;  %v4248_v22 = vld [vmem:[%s6117_s24 + $0x269] sm:$0xff]  ;;  %v4249_v20 = vld [vmem:[%s6117_s24 + $0x271] sm:$0xff]  ;;  %v4246_v60 = vld [vmem:[%s6117_s24 + $0x259] sm:$0xff] }
 0x10a   : > { %v5019_v47 = vunpack.i.h.bf16 %v5017_v46  ;;  %v5018_v5 = vunpack.i.l.bf16 %v5017_v46  ;;  %v2890_v12 = vsel %vm2828_vm0, %v9383_v62, %v4859_v57  ;;  %v9384_v51 = vpack.i.bf16 %v6867_v38, %v6864_v13  ;;  %v4247_v43 = vld [vmem:[%s6117_s24 + $0x261] sm:$0xff]  ;;  %v4253_v46 = vld [vmem:[%s6117_s24 + $0x299] sm:$0xff] }
 0x10b   : > { %5311 = vrot.lane.b32.xlu1 %v9381_v37, %s6052_s28  ;;  %v7017_v29 = vsel %vm2893_vm1, %v2891_v25, %v5023_v42  ;;  %v7020_v45 = vsel %vm2893_vm1, %v2892_v54, %v5024_v52  ;;  %v5330_v13 = vpack.i.bf16 %v4249_v20, %v4248_v22  ;;  %v5325_v38 = vpack.i.bf16 %v4247_v43, %v4246_v60  ;;  %v4252_v42 = vld [vmem:[%s6117_s24 + $0x291] sm:$0xff]  ;;  %v4250_v35 = vld [vmem:[%s6117_s24 + $0x281] sm:$0xff]  ;;  %v4251_v54 = vld [vmem:[%s6117_s24 + $0x289] sm:$0xff] }
 0x10c   : > { %5306 = vrot.lane.b32.xlu0 %v9384_v51, %s6052_s28  ;;  %v7029_v11 = vsel %vm2893_vm1, %v2889_v10, %v5018_v5  ;;  %v7032_v57 = vsel %vm2893_vm1, %v2890_v12, %v5019_v47  ;;  %v7034_v25 = vpop.permute.xlu1 %5031  ;;  %v5340_v5 = vpack.i.bf16 %v4253_v46, %v4252_v42  ;;  %v4257_v37 = vld [vmem:[%s6117_s24 + $0x42] sm:$0xff]  ;;  %v4254_v10 = vld [vmem:[%s6117_s24 + $0x2a] sm:$0xff]  ;;  %v4255_v62 = vld [vmem:[%s6117_s24 + $0x32] sm:$0xff] }
 0x10d   : > { %9385 = vst [vmem:[#allocation18_spill] sm:$0xff] %v7034_v25  ;;  %v7038_v52 = vpop.permute.xlu0 %5026  ;;  %v5345_v22 = vpack.i.bf16 %v4255_v62, %v4254_v10  ;;  %v4260_v20 = vld [vmem:[%s6117_s24 + $0x62] sm:$0xff]  ;;  %v4261_v60 = vld [vmem:[%s6117_s24 + $0x6a] sm:$0xff]  ;;  %v4265_v10 = vld [vmem:[%s6117_s24 + $0x92] sm:$0xff] }
 0x10e   : > { %9386 = vst [vmem:[#allocation19_spill] sm:$0xff] %v7038_v52 }
 0x10f   : > { %5321 = vrot.lane.b32.xlu1 %v5320_v16, %s6052_s28  ;;  %v5335_v16 = vpack.i.bf16 %v4251_v54, %v4250_v35  ;;  %v7069_v54 = vpack.i.bf16 %v4261_v60, %v4260_v20  ;;  %v4263_v20 = vld [vmem:[%s6117_s24 + $0x82] sm:$0xff] }
 0x110   : > { %5316 = vrot.lane.b32.xlu0 %v5315_v7, %s6052_s28  ;;  %v7044_v50 = vpop.permute.xlu1 %5041  ;;  %v4256_v7 = vld [vmem:[%s6117_s24 + $0x3a] sm:$0xff] }
 0x111   : > { %9387 = vst [vmem:[#allocation16_spill] sm:$0xff] %v7044_v50  ;;  %v7048_v47 = vpop.permute.xlu0 %5036  ;;  %v5350_v51 = vpack.i.bf16 %v4257_v37, %v4256_v7  ;;  %v4264_v37 = vld [vmem:[%s6117_s24 + $0x8a] sm:$0xff]  ;;  %v4276_v50 = vld [vmem:[%s6117_s24 + $0x102] sm:$0xff] }
 0x112   : > { %9388 = vst [vmem:[#allocation17_spill] sm:$0xff] %v7048_v47 }
 0x113   : > { %5331 = vrot.lane.b32.xlu1 %v5330_v13, %s6052_s28  ;;  %v4258_v13 = vld [vmem:[%s6117_s24 + $0x52] sm:$0xff] }
 0x114   : > { %5326 = vrot.lane.b32.xlu0 %v5325_v38, %s6052_s28  ;;  %v7054_v4 = vpop.permute.xlu1 %5051  ;;  %v4259_v38 = vld [vmem:[%s6117_s24 + $0x5a] sm:$0xff] }
 0x115   : > { %9389 = vst [vmem:[#allocation20_spill] sm:$0xff] %v7054_v4  ;;  %v7058_v12 = vpop.permute.xlu0 %5046  ;;  %v7080_v7 = vpack.i.bf16 %v4259_v38, %v4258_v13  ;;  %v4273_v4 = vld [vmem:[%s6117_s24 + $0xe2] sm:$0xff] }
 0x116   : > { %9390 = vst [vmem:[#allocation23_spill] sm:$0xff] %v7058_v12 }
 0x117   : > { %5341 = vrot.lane.b32.xlu1 %v5340_v5, %s6052_s28 }
 0x118   : > { %5336 = vrot.lane.b32.xlu0 %v5335_v16, %s6052_s28  ;;  %v5062_v43 = vpop.permute.xlu1 %5061 }
 0x119   : > { %v5064_v42 = vunpack.i.h.bf16 %v5062_v43  ;;  %v5063_v46 = vunpack.i.l.bf16 %v5062_v43  ;;  %v7066_v35 = vpop.permute.xlu0 %5056 }
 0x11a   : > { %9391 = vst [vmem:[#allocation21_spill] sm:$0xff] %v7066_v35 }
 0x11b   : > { %5351 = vrot.lane.b32.xlu1 %v5350_v51, %s6053_s29  ;;  %v7073_v5 = vsel %vm2958_vm2, %v6662_v1, %v5063_v46  ;;  %v7077_v16 = vsel %vm2958_vm2, %v6665_v17, %v5064_v42  ;;  %v4262_v51 = vld [vmem:[%s6117_s24 + $0x7a] sm:$0xff]  ;;  %v7088_v17 = vpack.i.bf16 %v4265_v10, %v4264_v37  ;;  %v4268_v42 = vld [vmem:[%s6117_s24 + $0xb2] sm:$0xff]  ;;  %v4267_v10 = vld [vmem:[%s6117_s24 + $0xaa] sm:$0xff] }
 0x11c   : > { %5346 = vrot.lane.b32.xlu0 %v5345_v22, %s6053_s29  ;;  %v5072_v62 = vpop.permute.xlu1 %5071  ;;  %v7100_v38 = vpack.i.bf16 %v4263_v20, %v4262_v51 }
 0x11d   : > { %v5074_v60 = vunpack.i.h.bf16 %v5072_v62  ;;  %v5073_v43 = vunpack.i.l.bf16 %v5072_v62  ;;  %v5067_v1 = vpop.permute.xlu0 %5066  ;;  %v4269_v62 = vld [vmem:[%s6117_s24 + $0xba] sm:$0xff] }
 0x11e   : > { %v5069_v46 = vunpack.i.h.bf16 %v5067_v1  ;;  %v5068_v35 = vunpack.i.l.bf16 %v5067_v1 }
 0x11f   : > { %5361 = vrot.lane.b32.xlu1 %v7069_v54, %s6053_s29  ;;  %v7092_v22 = vsel %vm2958_vm2, %v6690_v32, %v5073_v43  ;;  %v7096_v13 = vsel %vm2958_vm2, %v6693_v33, %v5074_v60  ;;  %v4266_v33 = vld [vmem:[%s6117_s24 + $0xa2] sm:$0xff] }
 0x120   : > { %5356 = vrot.lane.b32.xlu0 %v7080_v7, %s6053_s29  ;;  %v7106_v1 = vsel %vm2958_vm2, %v6699_v56, %v5068_v35  ;;  %v7110_v32 = vsel %vm2958_vm2, %v6702_v34, %v5069_v46  ;;  %v5082_v37 = vpop.permute.xlu1 %5081  ;;  %v5380_v56 = vpack.i.bf16 %v4269_v62, %v4268_v42  ;;  %v5375_v46 = vpack.i.bf16 %v4267_v10, %v4266_v33  ;;  %v4270_v62 = vld [vmem:[%s6117_s24 + $0xca] sm:$0xff] }
 0x121   : > { %v5084_v60 = vunpack.i.h.bf16 %v5082_v37  ;;  %v5083_v43 = vunpack.i.l.bf16 %v5082_v37  ;;  %v5077_v51 = vpop.permute.xlu0 %5076  ;;  %v4272_v37 = vld [vmem:[%s6117_s24 + $0xda] sm:$0xff] }
 0x122   : > { %v5079_v20 = vunpack.i.h.bf16 %v5077_v51  ;;  %v5078_v12 = vunpack.i.l.bf16 %v5077_v51 }
 0x123   : > { %5371 = vrot.lane.b32.xlu1 %v7088_v17, %s6053_s29  ;;  %v7118_v35 = vsel %vm2958_vm2, %v6716_v6, %v5083_v43  ;;  %v7122_v34 = vsel %vm2958_vm2, %v6719_v19, %v5084_v60  ;;  %v4271_v19 = vld [vmem:[%s6117_s24 + $0xd2] sm:$0xff] }
 0x124   : > { %5366 = vrot.lane.b32.xlu0 %v7100_v38, %s6053_s29  ;;  %v7130_v51 = vsel %vm2958_vm2, %v6727_v40, %v5078_v12  ;;  %v7134_v42 = vsel %vm2958_vm2, %v6730_v41, %v5079_v20  ;;  %v5092_v6 = vpop.permute.xlu1 %5091  ;;  %v5390_v40 = vpack.i.bf16 %v4273_v4, %v4272_v37  ;;  %v5385_v20 = vpack.i.bf16 %v4271_v19, %v4270_v62  ;;  %v4275_v37 = vld [vmem:[%s6117_s24 + $0xfa] sm:$0xff] }
 0x125   : > { %v5094_v60 = vunpack.i.h.bf16 %v5092_v6  ;;  %v5093_v43 = vunpack.i.l.bf16 %v5092_v6  ;;  %v5087_v33 = vpop.permute.xlu0 %5086  ;;  %v4277_v6 = vld [vmem:[%s6117_s24 + $0x10a] sm:$0xff] }
 0x126   : > { %v5089_v10 = vunpack.i.h.bf16 %v5087_v33  ;;  %v5088_v47 = vunpack.i.l.bf16 %v5087_v33  ;;  %v4280_v33 = vld [vmem:[%s6117_s24 + $0x12a] sm:$0xff] }
 0x127   : > { %5381 = vrot.lane.b32.xlu1 %v5380_v56, %s6053_s29  ;;  %v7141_v12 = vsel %vm2958_vm2, %v6746_v49, %v5093_v43  ;;  %v7145_v41 = vsel %vm2958_vm2, %v6749_v31, %v5094_v60  ;;  %v4274_v56 = vld [vmem:[%s6117_s24 + $0xf2] sm:$0xff] }
 0x128   : > { %5376 = vrot.lane.b32.xlu0 %v5375_v46, %s6053_s29  ;;  %v7152_v52 = vsel %vm2958_vm2, %v6756_v44, %v5088_v47  ;;  %v7156_v4 = vsel %vm2958_vm2, %v6759_v21, %v5089_v10  ;;  %v5102_v49 = vpop.permute.xlu1 %5101  ;;  %v5400_v44 = vpack.i.bf16 %v4277_v6, %v4276_v50  ;;  %v5395_v43 = vpack.i.bf16 %v4275_v37, %v4274_v56  ;;  %v4281_v10 = vld [vmem:[%s6117_s24 + $0x132] sm:$0xff]  ;;  %v4279_v6 = vld [vmem:[%s6117_s24 + $0x122] sm:$0xff]  ;;  %v4285_v37 = vld [vmem:[%s6117_s24 + $0x15a] sm:$0xff] }
 0x129   : > { %v5104_v31 = vunpack.i.h.bf16 %v5102_v49  ;;  %v5103_v60 = vunpack.i.l.bf16 %v5102_v49  ;;  %v5097_v46 = vpop.permute.xlu0 %5096  ;;  %v4284_v56 = vld [vmem:[%s6117_s24 + $0x152] sm:$0xff] }
 0x12a   : > { %v5099_v62 = vunpack.i.h.bf16 %v5097_v46  ;;  %v5098_v19 = vunpack.i.l.bf16 %v5097_v46 }
 0x12b   : > { %5391 = vrot.lane.b32.xlu1 %v5390_v40, %s6053_s29  ;;  %v7163_v47 = vsel %vm2958_vm2, %v6774_v53, %v5103_v60  ;;  %v7167_v21 = vsel %vm2958_vm2, %v6777_v55, %v5104_v31  ;;  %v4278_v55 = vld [vmem:[%s6117_s24 + $0x11a] sm:$0xff]  ;;  %v4282_v31 = vld [vmem:[%s6117_s24 + $0x142] sm:$0xff]  ;;  %v4283_v60 = vld [vmem:[%s6117_s24 + $0x14a] sm:$0xff] }
 0x12c   : > { %5386 = vrot.lane.b32.xlu0 %v5385_v20, %s6053_s29  ;;  %v7174_v50 = vsel %vm2958_vm2, %v6786_v58, %v5098_v19  ;;  %v7178_v53 = vsel %vm2958_vm2, %v6789_v59, %v5099_v62  ;;  %v7180_v40 = vpop.permute.xlu1 %5111  ;;  %v5410_v20 = vpack.i.bf16 %v4281_v10, %v4280_v33  ;;  %v5405_v58 = vpack.i.bf16 %v4279_v6, %v4278_v55  ;;  %v4286_v10 = vld [vmem:[%s6117_s24 + $0x16a] sm:$0xff]  ;;  %v4287_v55 = vld [vmem:[%s6117_s24 + $0x172] sm:$0xff] }
 0x12d   : > { %9392 = vst [vmem:[#allocation22_spill] sm:$0xff] %v7180_v40  ;;  %v7184_v49 = vpop.permute.xlu0 %5106  ;;  %v5420_v62 = vpack.i.bf16 %v4285_v37, %v4284_v56  ;;  %v5415_v19 = vpack.i.bf16 %v4283_v60, %v4282_v31  ;;  %v4292_v56 = vld [vmem:[%s6117_s24 + $0x1a2] sm:$0xff]  ;;  %v4293_v37 = vld [vmem:[%s6117_s24 + $0x1aa] sm:$0xff]  ;;  %v4290_v31 = vld [vmem:[%s6117_s24 + $0x192] sm:$0xff] }
 0x12e   : > { %9393 = vst [vmem:[#allocation24_spill] sm:$0xff] %v7184_v49  ;;  %v4291_v60 = vld [vmem:[%s6117_s24 + $0x19a] sm:$0xff] }
 0x12f   : > { %5401 = vrot.lane.b32.xlu1 %v5400_v44, %s6053_s29  ;;  %v4288_v44 = vld [vmem:[%s6117_s24 + $0x17a] sm:$0xff] }
 0x130   : > { %5396 = vrot.lane.b32.xlu0 %v5395_v43, %s6053_s29  ;;  %v7190_v59 = vpop.permute.xlu1 %5121  ;;  %v4289_v43 = vld [vmem:[%s6117_s24 + $0x182] sm:$0xff] }
 0x131   : > { %9394 = vst [vmem:[#allocation25_spill] sm:$0xff] %v7190_v59  ;;  %v7194_v46 = vpop.permute.xlu0 %5116 }
 0x132   : > { %9395 = vst [vmem:[#allocation27_spill] sm:$0xff] %v7194_v46  ;;  %v5430_v46 = vpack.i.bf16 %v4289_v43, %v4288_v44  ;;  %v7224_v43 = vpack.i.bf16 %v4291_v60, %v4290_v31  ;;  %v4300_v31 = vld [vmem:[%s6117_s24 + $0x1f2] sm:$0xff]  ;;  %v4301_v60 = vld [vmem:[%s6117_s24 + $0x1fa] sm:$0xff] }
 0x133   : > { %5411 = vrot.lane.b32.xlu1 %v5410_v20, %s6053_s29  ;;  %v5425_v20 = vpack.i.bf16 %v4287_v55, %v4286_v10  ;;  %v4296_v10 = vld [vmem:[%s6117_s24 + $0x1ca] sm:$0xff]  ;;  %v4297_v55 = vld [vmem:[%s6117_s24 + $0x1d2] sm:$0xff] }
 0x134   : > { %5406 = vrot.lane.b32.xlu0 %v5405_v58, %s6053_s29  ;;  %v7200_v33 = vpop.permute.xlu1 %5131 }
 0x135   : > { %9396 = vst [vmem:[#allocation28_spill] sm:$0xff] %v7200_v33  ;;  %v7204_v6 = vpop.permute.xlu0 %5126 }
 0x136   : > { %9397 = vst [vmem:[#allocation30_spill] sm:$0xff] %v7204_v6 }
 0x137   : > { %5421 = vrot.lane.b32.xlu1 %v5420_v62, %s6053_s29  ;;  %v7213_v62 = vpack.i.bf16 %v4293_v37, %v4292_v56 }
 0x138   : > { %5416 = vrot.lane.b32.xlu0 %v5415_v19, %s6053_s29  ;;  %v5142_v58 = vpop.permute.xlu1 %5141 }
 0x139   : > { %v5144_v59 = vunpack.i.h.bf16 %v5142_v58  ;;  %v5143_v33 = vunpack.i.l.bf16 %v5142_v58  ;;  %v5137_v49 = vpop.permute.xlu0 %5136 }
 0x13a   : > { %v5139_v40 = vunpack.i.h.bf16 %v5137_v49  ;;  %v5138_v6 = vunpack.i.l.bf16 %v5137_v49 }
 0x13b   : > { %5431 = vrot.lane.b32.xlu1 %v5430_v46, %s6053_s29  ;;  %v7217_v19 = vsel %vm2958_vm2, %v6901_v61, %v5143_v33  ;;  %v7221_v44 = vsel %vm2958_vm2, %v6904_v28, %v5144_v59  ;;  %v4294_v33 = vld [vmem:[%s6117_s24 + $0x1ba] sm:$0xff]  ;;  %v4295_v28 = vld [vmem:[%s6117_s24 + $0x1c2] sm:$0xff] }
 0x13c   : > { %5426 = vrot.lane.b32.xlu0 %v5425_v20, %s6053_s29  ;;  %v7230_v49 = vsel %vm2958_vm2, %v6912_v39, %v5138_v6  ;;  %v7234_v46 = vsel %vm2958_vm2, %v6915_v0, %v5139_v40  ;;  %v5152_v61 = vpop.permute.xlu1 %5151  ;;  %v7240_v39 = vpack.i.bf16 %v4297_v55, %v4296_v10  ;;  %v7252_v6 = vpack.i.bf16 %v4295_v28, %v4294_v33  ;;  %v4299_v55 = vld [vmem:[%s6117_s24 + $0x1ea] sm:$0xff] }
 0x13d   : > { %v5154_v59 = vunpack.i.h.bf16 %v5152_v61  ;;  %v5153_v20 = vunpack.i.l.bf16 %v5152_v61  ;;  %v5147_v56 = vpop.permute.xlu0 %5146 }
 0x13e   : > { %v5149_v37 = vunpack.i.h.bf16 %v5147_v56  ;;  %v5148_v58 = vunpack.i.l.bf16 %v5147_v56 }
 0x13f   : > { %5441 = vrot.lane.b32.xlu1 %v7213_v62, %s6053_s29  ;;  %v7244_v0 = vsel %vm2958_vm2, %v6927_v48, %v5153_v20  ;;  %v7248_v40 = vsel %vm2958_vm2, %v6930_v27, %v5154_v59  ;;  %v4298_v27 = vld [vmem:[%s6117_s24 + $0x1e2] sm:$0xff] }
 0x140   : > { %5436 = vrot.lane.b32.xlu0 %v7224_v43, %s6053_s29  ;;  %v7258_v61 = vsel %vm2958_vm2, %v6936_v2, %v5148_v58  ;;  %v7262_v48 = vsel %vm2958_vm2, %v6939_v63, %v5149_v37  ;;  %v5162_v10 = vpop.permute.xlu1 %5161  ;;  %v7268_v2 = vpack.i.bf16 %v4301_v60, %v4300_v31  ;;  %v7280_v58 = vpack.i.bf16 %v4299_v55, %v4298_v27  ;;  %v4303_v60 = vld [vmem:[%s6117_s24 + $0x212] sm:$0xff] }
 0x141   : > { %v5164_v59 = vunpack.i.h.bf16 %v5162_v10  ;;  %v5163_v20 = vunpack.i.l.bf16 %v5162_v10  ;;  %v5157_v33 = vpop.permute.xlu0 %5156  ;;  %v4304_v10 = vld [vmem:[%s6117_s24 + $0x21a] sm:$0xff] }
 0x142   : > { %v5159_v28 = vunpack.i.h.bf16 %v5157_v33  ;;  %v5158_v56 = vunpack.i.l.bf16 %v5157_v33  ;;  %9398 = vst [vmem:[#allocation31_spill] sm:$0xff] %v7268_v2  ;;  %9399 = vst [vmem:[#allocation26_spill] sm:$0xff] %v7280_v58  ;;  %v4305_v33 = vld [vmem:[%s6117_s24 + $0x222] sm:$0xff] }
 0x143   : > { %5451 = vrot.lane.b32.xlu1 %v7240_v39, %s6053_s29  ;;  %v7272_v63 = vsel %vm2958_vm2, %v6953_v23, %v5163_v20  ;;  %v7276_v37 = vsel %vm2958_vm2, %v6956_v14, %v5164_v59  ;;  %v4302_v14 = vld [vmem:[%s6117_s24 + $0x20a] sm:$0xff] }
 0x144   : > { %5446 = vrot.lane.b32.xlu0 %v7252_v6, %s6053_s29  ;;  %v7286_v25 = vsel %vm2958_vm2, %v6967_v18, %v5158_v56  ;;  %v7290_v23 = vsel %vm2958_vm2, %v6970_v24, %v5159_v28  ;;  %v5172_v31 = vpop.permute.xlu1 %5171  ;;  %v5470_v18 = vpack.i.bf16 %v4305_v33, %v4304_v10  ;;  %v7306_v28 = vpack.i.bf16 %v4303_v60, %v4302_v14  ;;  %v4307_v33 = vld [vmem:[%s6117_s24 + $0x23a] sm:$0xff] }
 0x145   : > { %v5174_v59 = vunpack.i.h.bf16 %v5172_v31  ;;  %v5173_v20 = vunpack.i.l.bf16 %v5172_v31  ;;  %v5167_v27 = vpop.permute.xlu0 %5166  ;;  %v4308_v31 = vld [vmem:[%s6117_s24 + $0x242] sm:$0xff] }
 0x146   : > { %v5169_v55 = vunpack.i.h.bf16 %v5167_v27  ;;  %v5168_v30 = vunpack.i.l.bf16 %v5167_v27  ;;  %9400 = vst [vmem:[#allocation29_spill] sm:$0xff] %v7306_v28 }
 0x147   : > { %5461 = vrot.lane.b32.xlu1 %v7268_v2, %s6053_s29  ;;  %v7298_v56 = vsel %vm2958_vm2, %v6989_v9, %v5173_v20  ;;  %v7302_v24 = vsel %vm2958_vm2, %v6992_v26, %v5174_v59  ;;  %v4306_v26 = vld [vmem:[%s6117_s24 + $0x232] sm:$0xff] }
 0x148   : > { %5456 = vrot.lane.b32.xlu0 %v7280_v58, %s6053_s29  ;;  %v7312_v27 = vsel %vm2958_vm2, %v6999_v36, %v5168_v30  ;;  %v7316_v9 = vsel %vm2958_vm2, %v7002_v3, %v5169_v55  ;;  %v5182_v10 = vpop.permute.xlu1 %5181  ;;  %v5480_v30 = vpack.i.bf16 %v4309_v15, %v4308_v31  ;;  %v5475_v55 = vpack.i.bf16 %v4307_v33, %v4306_v26  ;;  %v4311_v31 = vld [vmem:[%s6117_s24 + $0x262] sm:$0xff]  ;;  %v4317_v33 = vld [vmem:[%s6117_s24 + $0x29a] sm:$0xff] }
 0x149   : > { %v5184_v59 = vunpack.i.h.bf16 %v5182_v10  ;;  %v5183_v20 = vunpack.i.l.bf16 %v5182_v10  ;;  %v5177_v14 = vpop.permute.xlu0 %5176  ;;  %v4312_v10 = vld [vmem:[%s6117_s24 + $0x26a] sm:$0xff] }
 0x14a   : > { %v5179_v60 = vunpack.i.h.bf16 %v5177_v14  ;;  %v5178_v8 = vunpack.i.l.bf16 %v5177_v14  ;;  %v4313_v14 = vld [vmem:[%s6117_s24 + $0x272] sm:$0xff] }
 0x14b   : > { %5471 = vrot.lane.b32.xlu1 %v5470_v18, %s6053_s29  ;;  %v7323_v36 = vsel %vm2958_vm2, %v7017_v29, %v5183_v20  ;;  %v7327_v3 = vsel %vm2958_vm2, %v7020_v45, %v5184_v59  ;;  %v4310_v45 = vld [vmem:[%s6117_s24 + $0x25a] sm:$0xff]  ;;  %v5490_v26 = vpack.i.bf16 %v4313_v14, %v4312_v10  ;;  %v4314_v20 = vld [vmem:[%s6117_s24 + $0x282] sm:$0xff] }
 0x14c   : > { %5466 = vrot.lane.b32.xlu0 %v7306_v28, %s6053_s29  ;;  %v7335_v15 = vsel %vm2958_vm2, %v7029_v11, %v5178_v8  ;;  %v7339_v29 = vsel %vm2958_vm2, %v7032_v57, %v5179_v60  ;;  %v7341_v18 = vpop.permute.xlu1 %5191  ;;  %v5485_v8 = vpack.i.bf16 %v4311_v31, %v4310_v45  ;;  %v4316_v11 = vld [vmem:[%s6117_s24 + $0x292] sm:$0xff]  ;;  %v4315_v60 = vld [vmem:[%s6117_s24 + $0x28a] sm:$0xff] }
 0x14d   : > { %9401 = vst [vmem:[#allocation33_spill] sm:$0xff] %v7341_v18  ;;  %v7345_v59 = vpop.permute.xlu0 %5186  ;;  %v4323_v10 = vld [vmem:[%s6117_s24 + $0x68] sm:$0xff]  ;;  %v4320_v45 = vld [vmem:[%s6117_s24 + $0x50] sm:$0xff]  ;;  %v4321_v31 = vld [vmem:[%s6117_s24 + $0x58] sm:$0xff] }
 0x14e   : > { %9402 = vst [vmem:[#allocation34_spill] sm:$0xff] %v7345_v59  ;;  %v5500_v59 = vpack.i.bf16 %v4317_v33, %v4316_v11  ;;  %v4326_v11 = vld [vmem:[%s6117_s24 + $0x88] sm:$0xff]  ;;  %v4327_v33 = vld [vmem:[%s6117_s24 + $0x90] sm:$0xff] }
 0x14f   : > { %5481 = vrot.lane.b32.xlu1 %v5480_v30, %s6053_s29  ;;  %v5495_v30 = vpack.i.bf16 %v4315_v60, %v4314_v20  ;;  %v4324_v20 = vld [vmem:[%s6117_s24 + $0x78] sm:$0xff]  ;;  %v4325_v60 = vld [vmem:[%s6117_s24 + $0x80] sm:$0xff] }
 0x150   : > { %5476 = vrot.lane.b32.xlu0 %v5475_v55, %s6053_s29  ;;  %v7351_v57 = vpop.permute.xlu1 %5201  ;;  %v4322_v55 = vld [vmem:[%s6117_s24 + $0x60] sm:$0xff] }
 0x151   : > { %9403 = vst [vmem:[#allocation36_spill] sm:$0xff] %v7351_v57  ;;  %v7355_v18 = vpop.permute.xlu0 %5196 }
 0x152   : > { %9404 = vst [vmem:[#allocation37_spill] sm:$0xff] %v7355_v18  ;;  %v5510_v18 = vpack.i.bf16 %v4323_v10, %v4322_v55  ;;  %v5515_v10 = vpack.i.bf16 %v4325_v60, %v4324_v20  ;;  %v4334_v60 = vld [vmem:[%s6117_s24 + $0xd8] sm:$0xff] }
 0x153   : > { %5491 = vrot.lane.b32.xlu1 %v5490_v26, %s6053_s29  ;;  %v5505_v26 = vpack.i.bf16 %v4321_v31, %v4320_v45  ;;  %v4330_v45 = vld [vmem:[%s6117_s24 + $0xb0] sm:$0xff]  ;;  %v4331_v31 = vld [vmem:[%s6117_s24 + $0xb8] sm:$0xff] }
 0x154   : > { %5486 = vrot.lane.b32.xlu0 %v5485_v8, %s6053_s29  ;;  %v7361_v14 = vpop.permute.xlu1 %5211 }
 0x155   : > { %9405 = vst [vmem:[#allocation49_spill] sm:$0xff] %v7361_v14  ;;  %v7365_v57 = vpop.permute.xlu0 %5206 }
 0x156   : > { %9406 = vst [vmem:[#allocation50_spill] sm:$0xff] %v7365_v57  ;;  %v4329_v57 = vld [vmem:[%s6117_s24 + $0xa8] sm:$0xff] }
 0x157   : > { %5501 = vrot.lane.b32.xlu1 %v5500_v59, %s6053_s29  ;;  %v5520_v59 = vpack.i.bf16 %v4327_v33, %v4326_v11 }
 0x158   : > { %5496 = vrot.lane.b32.xlu0 %v5495_v30, %s6053_s29  ;;  %v5222_v8 = vpop.permute.xlu1 %5221 }
 0x159   : > { %v5224_v14 = vunpack.i.h.bf16 %v5222_v8  ;;  %v5223_v28 = vunpack.i.l.bf16 %v5222_v8  ;;  %v7373_v2 = vpop.permute.xlu0 %5216 }
 0x15a   : > { %9407 = vst [vmem:[#allocation51_spill] sm:$0xff] %v7373_v2  ;;  %v4328_v2 = vld [vmem:[%s6117_s24 + $0xa0] sm:$0xff] }
 0x15b   : > { %5511 = vrot.lane.b32.xlu1 %v5510_v18, %s6054_s30  ;;  %v7378_v30 = vsel %vm3023_vm3, %v7073_v5, %v5223_v28  ;;  %v7382_v55 = vsel %vm3023_vm3, %v7077_v16, %v5224_v14  ;;  %v5530_v16 = vpack.i.bf16 %v4331_v31, %v4330_v45  ;;  %v5525_v20 = vpack.i.bf16 %v4329_v57, %v4328_v2  ;;  %v4332_v45 = vld [vmem:[%s6117_s24 + $0xc8] sm:$0xff]  ;;  %v4333_v31 = vld [vmem:[%s6117_s24 + $0xd0] sm:$0xff] }
 0x15c   : > { %5506 = vrot.lane.b32.xlu0 %v5505_v26, %s6054_s30  ;;  %v5232_v8 = vpop.permute.xlu1 %5231 }
 0x15d   : > { %v5234_v18 = vunpack.i.h.bf16 %v5232_v8  ;;  %v5233_v11 = vunpack.i.l.bf16 %v5232_v8  ;;  %v5227_v5 = vpop.permute.xlu0 %5226  ;;  %v4335_v8 = vld [vmem:[%s6117_s24 + $0xe0] sm:$0xff] }
 0x15e   : > { %v5229_v28 = vunpack.i.h.bf16 %v5227_v5  ;;  %v5228_v33 = vunpack.i.l.bf16 %v5227_v5  ;;  %v5535_v5 = vpack.i.bf16 %v4333_v31, %v4332_v45 }
 0x15f   : > { %5521 = vrot.lane.b32.xlu1 %v5520_v59, %s6054_s30  ;;  %v7392_v14 = vsel %vm3023_vm3, %v7092_v22, %v5233_v11  ;;  %v7396_v26 = vsel %vm3023_vm3, %v7096_v13, %v5234_v18 }
 0x160   : > { %5516 = vrot.lane.b32.xlu0 %v5515_v10, %s6054_s30  ;;  %v7403_v58 = vsel %vm3023_vm3, %v7106_v1, %v5228_v33  ;;  %v7407_v59 = vsel %vm3023_vm3, %v7110_v32, %v5229_v28  ;;  %v5242_v22 = vpop.permute.xlu1 %5241  ;;  %v5540_v1 = vpack.i.bf16 %v4335_v8, %v4334_v60  ;;  %v4353_v28 = vld [vmem:[%s6117_s24 + $0x198] sm:$0xff]  ;;  %v4354_v33 = vld [vmem:[%s6117_s24 + $0x1a0] sm:$0xff]  ;;  %v4336_v60 = vld [vmem:[%s6117_s24 + $0xf0] sm:$0xff] }
 0x161   : > { %v5244_v13 = vunpack.i.h.bf16 %v5242_v22  ;;  %v5243_v18 = vunpack.i.l.bf16 %v5242_v22  ;;  %v5237_v2 = vpop.permute.xlu0 %5236  ;;  %v4352_v8 = vld [vmem:[%s6117_s24 + $0x190] sm:$0xff] }
 0x162   : > { %v5239_v57 = vunpack.i.h.bf16 %v5237_v2  ;;  %v5238_v10 = vunpack.i.l.bf16 %v5237_v2  ;;  %v5545_v2 = vpack.i.bf16 %v4352_v8, %v4336_v60 }
 0x163   : > { %5531 = vrot.lane.b32.xlu1 %v5530_v16, %s6054_s30  ;;  %v7414_v11 = vsel %vm3023_vm3, %v7118_v35, %v5243_v18  ;;  %v7418_v32 = vsel %vm3023_vm3, %v7122_v34, %v5244_v13 }
 0x164   : > { %5526 = vrot.lane.b32.xlu0 %v5525_v20, %s6054_s30  ;;  %v7425_v22 = vsel %vm3023_vm3, %v7130_v51, %v5238_v10  ;;  %v7429_v16 = vsel %vm3023_vm3, %v7134_v42, %v5239_v57  ;;  %v5252_v35 = vpop.permute.xlu1 %5251  ;;  %v5550_v51 = vpack.i.bf16 %v4354_v33, %v4353_v28  ;;  %v4384_v57 = vld [vmem:[%s6117_s24 + $0x51] sm:$0xff]  ;;  %v4385_v10 = vld [vmem:[%s6117_s24 + $0x59] sm:$0xff] }
 0x165   : > { %v5254_v34 = vunpack.i.h.bf16 %v5252_v35  ;;  %v5253_v13 = vunpack.i.l.bf16 %v5252_v35  ;;  %v5247_v20 = vpop.permute.xlu0 %5246  ;;  %v4356_v33 = vld [vmem:[%s6117_s24 + $0x1b8] sm:$0xff] }
 0x166   : > { %v5249_v45 = vunpack.i.h.bf16 %v5247_v20  ;;  %v5248_v31 = vunpack.i.l.bf16 %v5247_v20 }
 0x167   : > { %5541 = vrot.lane.b32.xlu1 %v5540_v1, %s6054_s30  ;;  %v7436_v18 = vsel %vm3023_vm3, %v7141_v12, %v5253_v13  ;;  %v7440_v42 = vsel %vm3023_vm3, %v7145_v41, %v5254_v34  ;;  %v4355_v12 = vld [vmem:[%s6117_s24 + $0x1a8] sm:$0xff] }
 0x168   : > { %5536 = vrot.lane.b32.xlu0 %v5535_v5, %s6054_s30  ;;  %v7447_v35 = vsel %vm3023_vm3, %v7152_v52, %v5248_v31  ;;  %v7451_v1 = vsel %vm3023_vm3, %v7156_v4, %v5249_v45  ;;  %v5262_v28 = vpop.permute.xlu1 %5261  ;;  %v5985_v5 = vld [vmem:[%s9224_s1] sm:$0xff]   ;;  %v5560_v52 = vpack.i.bf16 %v4385_v10, %v4384_v57  ;;  %v5555_v45 = vpack.i.bf16 %v4356_v33, %v4355_v12 }
 0x169   : > { %v5264_v41 = vunpack.i.h.bf16 %v5262_v28  ;;  %v5263_v34 = vunpack.i.l.bf16 %v5262_v28  ;;  %v5257_v13 = vpop.permute.xlu0 %5256  ;;  %v4386_v31 = vld [vmem:[%s6117_s24 + $0x61] sm:$0xff]  ;;  %v4387_v28 = vld [vmem:[%s6117_s24 + $0x69] sm:$0xff]  ;;  %4583 = vmatprep.subr.bf16.mxu0 %v5985_v5  ;;  %v4417_v10 = vld [vmem:[%s6117_s24 + $0x199] sm:$0xff]  ;;  %4651 = vmatprep.subr.bf16.mxu1 %v5985_v5  ;;  %v6055_v33 = vmov 65535  }
 0x16a   : > { %v5259_v60 = vunpack.i.h.bf16 %v5257_v13  ;;  %v5258_v8 = vunpack.i.l.bf16 %v5257_v13  ;;  %4584 = vmatpush3.bf16.msra.mxu0 %v5985_v5  ;;  %4653 = vmatpush3.bf16.msra.mxu1 %v5985_v5 }
 0x16b   : > { %5551 = vrot.lane.b32.xlu1 %v5550_v51, %s6054_s30  ;;  %v7461_v4 = vsel %vm3023_vm3, %v7163_v47, %v5263_v34  ;;  %v7465_v20 = vsel %vm3023_vm3, %v7167_v21, %v5264_v41  ;;  %v5986_v51 = vld [vmem:[%s9224_s1 + $0x8] sm:$0x3f]   ;;  %v3501_v41 = vsel %vm3499_vm4, 4294967295, %v6055_v33 }
 0x16c   : > { %5546 = vrot.lane.b32.xlu0 %v5545_v2, %s6054_s30  ;;  %v7475_v57 = vsel %vm3023_vm3, %v7174_v50, %v5258_v8  ;;  %v7479_v47 = vsel %vm3023_vm3, %v7178_v53, %v5259_v60  ;;  %v7481_v21 = vpop.permute.xlu1 %5271  ;;  %v4416_v2 = vld [vmem:[%s6117_s24 + $0x191] sm:$0xff]  ;;  %v5570_v50 = vpack.i.bf16 %v4387_v28, %v4386_v31  ;;  %v3502_v53 = vsel %vm3500_vm5, %v3501_v41, 0  ;;  %v4418_v8 = vld [vmem:[%s6117_s24 + $0x1a1] sm:$0xff] }
 0x16d   : > { %9408 = vst [vmem:[#allocation52_spill] sm:$0xff] %v7481_v21  ;;  %v7485_v12 = vpop.permute.xlu0 %5266  ;;  %v5565_v34 = vpack.i.bf16 %v4417_v10, %v4416_v2  ;;  %v3504_v13 = vand.u32 %v5986_v51, %v3502_v53  ;;  %v4419_v21 = vld [vmem:[%s6117_s24 + $0x1a9] sm:$0xff]  ;;  %v4357_v31 = vld [vmem:[%s6117_s24 + $0x1c0] sm:$0xff] }
 0x16e   : > { %9409 = vst [vmem:[#allocation53_spill] sm:$0xff] %v7485_v12  ;;  %v5575_v5 = vpack.i.bf16 %v4419_v21, %v4418_v8  ;;  %v4358_v28 = vld [vmem:[%s6117_s24 + $0x1c8] sm:$0xff] }
 0x16f   : > { %5561 = vrot.lane.b32.xlu1 %v5560_v52, %s6056_s8  ;;  %4585 = vmatprep.subr.bf16.mxu0 %v3504_v13 }
 0x170   : > { %5556 = vrot.lane.b32.xlu0 %v5555_v45, %s6054_s30  ;;  %v7490_v60 = vpop.permute.xlu1 %5281  ;;  %4652 = vmatprep.subr.bf16.mxu1 %v3504_v13 }
 0x171   : > { %9410 = vst [vmem:[#allocation54_spill] sm:$0xff] %v7490_v60  ;;  %v7494_v12 = vpop.permute.xlu0 %5276  ;;  %4586 = vmatpush3.bf16.msra.mxu0 %v3504_v13  ;;  %4654 = vmatpush3.bf16.msra.mxu1 %v3504_v13  ;;  %v4389_v13 = vld [vmem:[%s6117_s24 + $0x81] sm:$0xff]  ;;  %v4426_v60 = vld [vmem:[%s6117_s24 + $0x1f1] sm:$0xff] }
 0x172   : > { %9411 = vst [vmem:[#allocation55_spill] sm:$0xff] %v7494_v12 }
 0x173   : > { %5571 = vrot.lane.b32.xlu1 %v5570_v50, %s6056_s8  ;;  %v5600_v50 = vpack.i.bf16 %v4358_v28, %v4357_v31  ;;  %v4360_v31 = vld [vmem:[%s6117_s24 + $0x1e0] sm:$0xff] }
 0x174   : > { %5566 = vrot.lane.b32.xlu0 %v5565_v34, %s6056_s8  ;;  %v7498_v52 = vpop.permute.xlu1 %5291  ;;  %v4388_v34 = vld [vmem:[%s6117_s24 + $0x79] sm:$0xff] }
 0x175   : > { %9412 = vst [vmem:[#allocation56_spill] sm:$0xff] %v7498_v52  ;;  %v7500_v45 = vpop.permute.xlu0 %5286  ;;  %v5988_v52 = vld [vmem:[%s6117_s24 + $0x30] sm:$0xff] }
 0x176   : > { %9413 = vst [vmem:[#allocation57_spill] sm:$0xff] %v7500_v45 }
 0x177   : > { %5581 = vrot.lane.b32.xlu1 %v7080_v7, %s6057_s9 }
 0x178   : > { %5576 = vrot.lane.b32.xlu0 %v5575_v5, %s6056_s8  ;;  %v4359_v5 = vld [vmem:[%s6117_s24 + $0x1d0] sm:$0xff] }
 0x179   : > { %v5302_v51 = vpop.permute.xlu1 %5301 }
 0x17a   : > { %v5304_v2 = vunpack.i.h.bf16 %v5302_v51  ;;  %v5303_v21 = vunpack.i.l.bf16 %v5302_v51  ;;  %v5297_v10 = vpop.permute.xlu0 %5296 }
 0x17b   : > { %v5299_v33 = vunpack.i.h.bf16 %v5297_v10  ;;  %v5298_v41 = vunpack.i.l.bf16 %v5297_v10  ;;  %5591 = vrot.lane.b32.xlu1 %v7069_v54, %s6057_s9  ;;  %v5605_v10 = vpack.i.bf16 %v4360_v31, %v4359_v5 }
 0x17c   : > { %v7511_v7 = vsel %vm3023_vm3, %v7217_v19, %v5303_v21  ;;  %v7515_v53 = vsel %vm3023_vm3, %v7221_v44, %v5304_v2  ;;  %5586 = vrot.lane.b32.xlu0 %v7224_v43, %s6057_s9 }
 0x17d   : > { %v7523_v8 = vsel %vm3023_vm3, %v7230_v49, %v5298_v41  ;;  %v7527_v54 = vsel %vm3023_vm3, %v7234_v46, %v5299_v33  ;;  %v5312_v19 = vpop.permute.xlu1 %5311  ;;  %v5610_v49 = vpack.i.bf16 %v4389_v13, %v4388_v34  ;;  %v4390_v33 = vld [vmem:[%s6117_s24 + $0x89] sm:$0xff]  ;;  %v4391_v41 = vld [vmem:[%s6117_s24 + $0x91] sm:$0xff]  ;;  %v4420_v34 = vld [vmem:[%s6117_s24 + $0x1b9] sm:$0xff] }
 0x17e   : > { %v5314_v44 = vunpack.i.h.bf16 %v5312_v19  ;;  %v5313_v28 = vunpack.i.l.bf16 %v5312_v19  ;;  %v5307_v43 = vpop.permute.xlu0 %5306  ;;  %v4421_v13 = vld [vmem:[%s6117_s24 + $0x1c1] sm:$0xff]  ;;  %v5620_v31 = vpack.i.bf16 %v4391_v41, %v4390_v33  ;;  %v4422_v33 = vld [vmem:[%s6117_s24 + $0x1c9] sm:$0xff]  ;;  %v4423_v41 = vld [vmem:[%s6117_s24 + $0x1d1] sm:$0xff] }
 0x17f   : > { %v5309_v51 = vunpack.i.h.bf16 %v5307_v43  ;;  %v5308_v2 = vunpack.i.l.bf16 %v5307_v43  ;;  %5601 = vrot.lane.b32.xlu1 %v5600_v50, %s6054_s30  ;;  %v5615_v43 = vpack.i.bf16 %v4421_v13, %v4420_v34 }
 0x180   : > { %v7534_v21 = vsel %vm3023_vm3, %v7244_v0, %v5313_v28  ;;  %v7538_v46 = vsel %vm3023_vm3, %v7248_v40, %v5314_v44  ;;  %5596 = vrot.lane.b32.xlu0 %v7213_v62, %s6057_s9 }
 0x181   : > { %v7546_v19 = vsel %vm3023_vm3, %v7258_v61, %v5308_v2  ;;  %v7550_v50 = vsel %vm3023_vm3, %v7262_v48, %v5309_v51  ;;  %v5322_v0 = vpop.permute.xlu1 %5321 }
 0x182   : > { %v5324_v40 = vunpack.i.h.bf16 %v5322_v0  ;;  %v5323_v44 = vunpack.i.l.bf16 %v5322_v0  ;;  %v5317_v28 = vpop.permute.xlu0 %5316 }
 0x183   : > { %v5319_v62 = vunpack.i.h.bf16 %v5317_v28  ;;  %v5318_v5 = vunpack.i.l.bf16 %v5317_v28  ;;  %5611 = vrot.lane.b32.xlu1 %v5610_v49, %s6056_s8 }
 0x184   : > { %v7557_v61 = vsel %vm3023_vm3, %v7272_v63, %v5323_v44  ;;  %v7561_v48 = vsel %vm3023_vm3, %v7276_v37, %v5324_v40  ;;  %5606 = vrot.lane.b32.xlu0 %v5605_v10, %s6054_s30 }
 0x185   : > { %v7566_v51 = vsel %vm3023_vm3, %v7286_v25, %v5318_v5  ;;  %v7570_v2 = vsel %vm3023_vm3, %v7290_v23, %v5319_v62  ;;  %v5332_v49 = vpop.permute.xlu1 %5331  ;;  %v5625_v23 = vpack.i.bf16 %v4423_v41, %v4422_v33 }
 0x186   : > { %v5334_v63 = vunpack.i.h.bf16 %v5332_v49  ;;  %v5333_v0 = vunpack.i.l.bf16 %v5332_v49  ;;  %v5327_v44 = vpop.permute.xlu0 %5326  ;;  %v4362_v49 = vld [vmem:[%s6117_s24 + $0x1f0] sm:$0xff] }
 0x187   : > { %v5329_v28 = vunpack.i.h.bf16 %v5327_v44  ;;  %v5328_v37 = vunpack.i.l.bf16 %v5327_v44  ;;  %5621 = vrot.lane.b32.xlu1 %v5620_v31, %s6056_s8  ;;  %v4364_v44 = vld [vmem:[%s6117_s24 + $0x208] sm:$0xff] }
 0x188   : > { %v7577_v10 = vsel %vm3023_vm3, %v7298_v56, %v5333_v0  ;;  %v7581_v25 = vsel %vm3023_vm3, %v7302_v24, %v5334_v63  ;;  %5616 = vrot.lane.b32.xlu0 %v5615_v43, %s6056_s8  ;;  %v4361_v43 = vld [vmem:[%s6117_s24 + $0x1e8] sm:$0xff] }
 0x189   : > { %v7586_v34 = vsel %vm3023_vm3, %v7312_v27, %v5328_v37  ;;  %v7590_v13 = vsel %vm3023_vm3, %v7316_v9, %v5329_v28  ;;  %v5342_v40 = vpop.permute.xlu1 %5341  ;;  %v4392_v63 = vld [vmem:[%s6117_s24 + $0xa1] sm:$0xff] }
 0x18a   : > { %9414 = vst [vmem:[#allocation58_spill] sm:$0xff] %v7590_v13  ;;  %v5344_v56 = vunpack.i.h.bf16 %v5342_v40  ;;  %v5343_v62 = vunpack.i.l.bf16 %v5342_v40  ;;  %v5337_v5 = vpop.permute.xlu0 %5336  ;;  %v9423_v37 = vld [vmem:[#allocation3_spill] sm:$0xff]  ;;  %v9424_v40 = vld [vmem:[#allocation4_spill] sm:$0xff] }
 0x18b   : > { %v5339_v31 = vunpack.i.h.bf16 %v5337_v5  ;;  %v5338_v24 = vunpack.i.l.bf16 %v5337_v5  ;;  %5631 = vrot.lane.b32.xlu1 %v7100_v38, %s6057_s9  ;;  %v198_v5 = vld [vmem:[%s6117_s24] sm:$0xff] }
 0x18c   : > { %v7596_v27 = vsel %vm3023_vm3, %v7323_v36, %v5343_v62  ;;  %v7600_v9 = vsel %vm3023_vm3, %v7327_v3, %v5344_v56  ;;  %5626 = vrot.lane.b32.xlu0 %v5625_v23, %s6056_s8  ;;  %v5650_v3 = vpack.i.bf16 %v4362_v49, %v4361_v43  ;;  %v4718_v23 = vunpack.i.l.bf16 %v9423_v37  ;;  %v4395_v43 = vld [vmem:[%s6117_s24 + $0xb9] sm:$0xff]  ;;  %v199_v49 = vld [vmem:[%s6117_s24 + $0x8] sm:$0xff] }
 0x18d   : > { %9415 = vst [vmem:[#allocation59_spill] sm:$0xff] %v7596_v27  ;;  %9416 = vst [vmem:[#allocation60_spill] sm:$0xff] %v7600_v9  ;;  %v7607_v33 = vsel %vm3023_vm3, %v7335_v15, %v5338_v24  ;;  %v7611_v38 = vsel %vm3023_vm3, %v7339_v29, %v5339_v31  ;;  %v7613_v41 = vpop.permute.xlu1 %5351  ;;  %v4393_v15 = vld [vmem:[%s6117_s24 + $0xa9] sm:$0xff]  ;;  %v4363_v29 = vld [vmem:[%s6117_s24 + $0x1f8] sm:$0xff]  ;;  %v4709_v56 = vunpack.i.h.bf16 %v9424_v40  ;;  %v4708_v62 = vunpack.i.l.bf16 %v9424_v40 }
 0x18e   : > { %9417 = vst [vmem:[#allocation61_spill] sm:$0xff] %v7607_v33  ;;  %9418 = vst [vmem:[#allocation62_spill] sm:$0xff] %v7611_v38  ;;  %v7615_v36 = vpop.permute.xlu0 %5346  ;;  %v5655_v31 = vpack.i.bf16 %v4364_v44, %v4363_v29  ;;  %v4394_v24 = vld [vmem:[%s6117_s24 + $0xb1] sm:$0xff]  ;;  %v5987_v40 = vld [vmem:[%s6117_s24 + $0x28] sm:$0xff] }
 0x18f   : > { %9419 = vst [vmem:[#allocation63_spill] sm:$0xff] %v7613_v41  ;;  %9420 = vst [vmem:[#allocation64_spill] sm:$0xff] %v7615_v36  ;;  %5641 = vrot.lane.b32.xlu1 %v7088_v17, %s6057_s9  ;;  %v5660_v17 = vpack.i.bf16 %v4393_v15, %v4392_v63  ;;  %v4425_v63 = vld [vmem:[%s6117_s24 + $0x1e9] sm:$0xff]  ;;  %v7649_v45 = vsel %vm2828_vm0, %v5987_v40, %v4718_v23  ;;  %v9428_v29 = vld [vmem:[#allocation6_spill] sm:$0xff]  ;;  %v7662_v23 = vsel %vm2828_vm0, %v199_v49, %v4709_v56 }
 0x190   : > { %5636 = vrot.lane.b32.xlu0 %v7252_v6, %s6057_s9  ;;  %v4719_v6 = vunpack.i.h.bf16 %v9423_v37  ;;  %v9426_v15 = vld [vmem:[#allocation5_spill] sm:$0xff]  ;;  %v4713_v44 = vunpack.i.l.bf16 %v9428_v29  ;;  %v9429_v41 = vld [vmem:[#allocation7_spill] sm:$0xff]  ;;  %v5989_v56 = vld [vmem:[%s6117_s24 + $0x38] sm:$0xff] }
 0x191   : > { %v7623_v0 = vpop.permute.xlu1 %5361  ;;  %v4723_v37 = vunpack.i.l.bf16 %v9426_v15  ;;  %v4734_v12 = vunpack.i.h.bf16 %v9429_v41  ;;  %v4427_v38 = vld [vmem:[%s6117_s24 + $0x1f9] sm:$0xff] }
 0x192   : > { %9421 = vst [vmem:[#allocation65_spill] sm:$0xff] %v7623_v0  ;;  %v7627_v28 = vpop.permute.xlu0 %5356  ;;  %v7656_v36 = vsel %vm2828_vm0, %v5988_v52, %v4719_v6  ;;  %v4733_v52 = vunpack.i.l.bf16 %v9429_v41  ;;  %v9430_v6 = vld [vmem:[#allocation8_spill] sm:$0xff]  ;;  %v5990_v41 = vld [vmem:[%s6117_s24 + $0x40] sm:$0xff] }
 0x193   : > { %9422 = vst [vmem:[#allocation66_spill] sm:$0xff] %v7627_v28  ;;  %5651 = vrot.lane.b32.xlu1 %v5650_v3, %s6054_s30  ;;  %v4424_v3 = vld [vmem:[%s6117_s24 + $0x1e1] sm:$0xff]  ;;  %v7676_v49 = vsel %vm2828_vm0, %v5989_v56, %v4723_v37 }
 0x194   : > { %5646 = vrot.lane.b32.xlu0 %v7240_v39, %s6057_s9  ;;  %v4724_v39 = vunpack.i.h.bf16 %v9426_v15  ;;  %v200_v15 = vld [vmem:[%s6117_s24 + $0x10] sm:$0xff]  ;;  %v5665_v40 = vpack.i.bf16 %v4425_v63, %v4424_v3  ;;  %v4729_v3 = vunpack.i.h.bf16 %v9430_v6 }
 0x195   : > { %v7640_v28 = vpop.permute.xlu1 %5371  ;;  %v7687_v27 = vsel %vm2828_vm0, %v200_v15, %v4713_v44  ;;  %v4458_v44 = vld [vmem:[%s6117_s24 + $0xb2] sm:$0xff]  ;;  %v4459_v15 = vld [vmem:[%s6117_s24 + $0xba] sm:$0xff] }
 0x196   : > { %9425 = vst [vmem:[#allocation3_spill] sm:$0xff] %v7640_v28  ;;  %v7645_v0 = vpop.permute.xlu0 %5366  ;;  %v5670_v28 = vpack.i.bf16 %v4395_v43, %v4394_v24  ;;  %v4457_v24 = vld [vmem:[%s6117_s24 + $0xaa] sm:$0xff]  ;;  %v4714_v43 = vunpack.i.h.bf16 %v9428_v29  ;;  %v7684_v9 = vsel %vm2828_vm0, %v5990_v41, %v4724_v39  ;;  %v5675_v39 = vpack.i.bf16 %v4427_v38, %v4426_v60  ;;  %v5994_v60 = vld [vmem:[%s6117_s24 + $0x58] sm:$0xff] }
 0x197   : > { %9427 = vst [vmem:[#allocation4_spill] sm:$0xff] %v7645_v0  ;;  %5661 = vrot.lane.b32.xlu1 %v5660_v17, %s6056_s8  ;;  %v7659_v0 = vsel %vm2828_vm0, %v198_v5, %v4708_v62  ;;  %v4456_v17 = vld [vmem:[%s6117_s24 + $0xa2] sm:$0xff]  ;;  %v4728_v62 = vunpack.i.l.bf16 %v9430_v6  ;;  %v9432_v6 = vld [vmem:[#allocation10_spill] sm:$0xff]  ;;  %v7719_v38 = vsel %vm2828_vm0, %v5994_v60, %v4729_v3  ;;  %v4365_v60 = vld [vmem:[%s6117_s24 + $0x210] sm:$0xff] }
 0x198   : > { %5656 = vrot.lane.b32.xlu0 %v5655_v31, %s6054_s30  ;;  %v201_v31 = vld [vmem:[%s6117_s24 + $0x18] sm:$0xff]  ;;  %v5680_v37 = vpack.i.bf16 %v4457_v24, %v4456_v17  ;;  %v4793_v56 = vunpack.i.l.bf16 %v9432_v6  ;;  %v5992_v24 = vld [vmem:[%s6117_s24 + $0x68] sm:$0xff] }
 0x199   : > { %v5382_v5 = vpop.permute.xlu1 %5381  ;;  %v7703_v41 = vsel %vm2828_vm0, %v201_v31, %v4714_v43  ;;  %v4794_v43 = vunpack.i.h.bf16 %v9432_v6 }
 0x19a   : > { %v5384_v63 = vunpack.i.h.bf16 %v5382_v5  ;;  %v5383_v29 = vunpack.i.l.bf16 %v5382_v5  ;;  %v7680_v33 = vpop.permute.xlu0 %5376 }
 0x19b   : > { %9431 = vst [vmem:[#allocation5_spill] sm:$0xff] %v7680_v33  ;;  %5671 = vrot.lane.b32.xlu1 %v5670_v28, %s6056_s8  ;;  %v5991_v28 = vld [vmem:[%s6117_s24 + $0x60] sm:$0xff] }
 0x19c   : > { %v7693_v5 = vsel %vm3088_vm6, %v7378_v30, %v5383_v29  ;;  %v7697_v33 = vsel %vm3088_vm6, %v7382_v55, %v5384_v63  ;;  %5666 = vrot.lane.b32.xlu0 %v5665_v40, %s6056_s8  ;;  %v7707_v17 = vsel %vm2828_vm0, %v5991_v28, %v4733_v52  ;;  %v7711_v30 = vsel %vm2828_vm0, %v5992_v24, %v4734_v12  ;;  %v5993_v29 = vld [vmem:[%s6117_s24 + $0x50] sm:$0xff]  ;;  %v9435_v28 = vld [vmem:[#allocation11_spill] sm:$0xff] }
 0x19d   : > { %9433 = vst [vmem:[#allocation6_spill] sm:$0xff] %v7693_v5  ;;  %9434 = vst [vmem:[#allocation7_spill] sm:$0xff] %v7697_v33  ;;  %v7715_v55 = vsel %vm2828_vm0, %v5993_v29, %v4728_v62  ;;  %v5392_v40 = vpop.permute.xlu1 %5391  ;;  %v4789_v33 = vunpack.i.h.bf16 %v9435_v28  ;;  %v5690_v62 = vpack.i.bf16 %v4459_v15, %v4458_v44  ;;  %v5995_v29 = vld [vmem:[%s6117_s24 + $0x150] sm:$0xff]  ;;  %v4788_v3 = vunpack.i.l.bf16 %v9435_v28  ;;  %v9438_v44 = vld [vmem:[#allocation12_spill] sm:$0xff] }
 0x19e   : > { %v5394_v52 = vunpack.i.h.bf16 %v5392_v40  ;;  %v5393_v31 = vunpack.i.l.bf16 %v5392_v40  ;;  %v5387_v63 = vpop.permute.xlu0 %5386  ;;  %v7726_v5 = vsel %vm2828_vm0, %v5995_v29, %v4793_v56  ;;  %v4804_v15 = vunpack.i.h.bf16 %v9438_v44 }
 0x19f   : > { %v5389_v12 = vunpack.i.h.bf16 %v5387_v63  ;;  %v5388_v24 = vunpack.i.l.bf16 %v5387_v63  ;;  %5681 = vrot.lane.b32.xlu1 %v5680_v37, %s6057_s9  ;;  %v4366_v37 = vld [vmem:[%s6117_s24 + $0x218] sm:$0xff]  ;;  %v4803_v56 = vunpack.i.l.bf16 %v9438_v44 }
 0x1a0   : > { %v7731_v6 = vsel %vm3088_vm6, %v7392_v14, %v5393_v31  ;;  %v7735_v40 = vsel %vm3088_vm6, %v7396_v26, %v5394_v52  ;;  %5676 = vrot.lane.b32.xlu0 %v5675_v39, %s6056_s8  ;;  %v9441_v52 = vld [vmem:[#allocation13_spill] sm:$0xff]  ;;  %v5996_v44 = vld [vmem:[%s6117_s24 + $0x158] sm:$0xff] }
 0x1a1   : > { %9436 = vst [vmem:[#allocation8_spill] sm:$0xff] %v7731_v6  ;;  %9437 = vst [vmem:[#allocation10_spill] sm:$0xff] %v7735_v40  ;;  %v7744_v63 = vsel %vm3088_vm6, %v7403_v58, %v5388_v24  ;;  %v7748_v14 = vsel %vm3088_vm6, %v7407_v59, %v5389_v12  ;;  %v5402_v26 = vpop.permute.xlu1 %5401  ;;  %v4799_v31 = vunpack.i.h.bf16 %v9441_v52  ;;  %v4798_v39 = vunpack.i.l.bf16 %v9441_v52  ;;  %v5997_v12 = vld [vmem:[%s6117_s24 + $0x140] sm:$0xff] }
 0x1a2   : > { %9439 = vst [vmem:[#allocation11_spill] sm:$0xff] %v7744_v63  ;;  %9440 = vst [vmem:[#allocation12_spill] sm:$0xff] %v7748_v14  ;;  %v5404_v28 = vunpack.i.h.bf16 %v5402_v26  ;;  %v5403_v29 = vunpack.i.l.bf16 %v5402_v26  ;;  %v5397_v40 = vpop.permute.xlu0 %5396  ;;  %v7754_v58 = vsel %vm2828_vm0, %v5996_v44, %v4794_v43  ;;  %v5700_v59 = vpack.i.bf16 %v4366_v37, %v4365_v60  ;;  %v5998_v26 = vld [vmem:[%s6117_s24 + $0x148] sm:$0xff]  ;;  %v4397_v60 = vld [vmem:[%s6117_s24 + $0xd1] sm:$0xff] }
 0x1a3   : > { %v5399_v24 = vunpack.i.h.bf16 %v5397_v40  ;;  %v5398_v6 = vunpack.i.l.bf16 %v5397_v40  ;;  %5691 = vrot.lane.b32.xlu1 %v5690_v62, %s6057_s9  ;;  %v7759_v52 = vsel %vm2828_vm0, %v5997_v12, %v4788_v3  ;;  %v7763_v14 = vsel %vm2828_vm0, %v5998_v26, %v4789_v33  ;;  %v9444_v40 = vld [vmem:[#allocation26_spill] sm:$0xff]  ;;  %v4396_v3 = vld [vmem:[%s6117_s24 + $0xc9] sm:$0xff]  ;;  %v6000_v33 = vld [vmem:[%s6117_s24 + $0x180] sm:$0xff] }
 0x1a4   : > { %v7767_v43 = vsel %vm3088_vm6, %v7414_v11, %v5403_v29  ;;  %v7771_v62 = vsel %vm3088_vm6, %v7418_v32, %v5404_v28  ;;  %5686 = vrot.lane.b32.xlu0 %v9444_v40, %s6057_s9  ;;  %v5999_v37 = vld [vmem:[%s6117_s24 + $0x178] sm:$0xff]  ;;  %v7783_v12 = vsel %vm2828_vm0, %v6000_v33, %v4804_v15  ;;  %v4367_v26 = vld [vmem:[%s6117_s24 + $0x220] sm:$0xff]  ;;  %v6001_v40 = vld [vmem:[%s6117_s24 + $0x168] sm:$0xff] }
 0x1a5   : > { %9442 = vst [vmem:[#allocation13_spill] sm:$0xff] %v7767_v43  ;;  %9443 = vst [vmem:[#allocation67_spill] sm:$0xff] %v7771_v62  ;;  %v7779_v44 = vsel %vm2828_vm0, %v5999_v37, %v4803_v56  ;;  %v7787_v11 = vsel %vm3088_vm6, %v7425_v22, %v5398_v6  ;;  %v7791_v32 = vsel %vm3088_vm6, %v7429_v16, %v5399_v24  ;;  %v5412_v28 = vpop.permute.xlu1 %5411  ;;  %v4337_v29 = vld [vmem:[%s6117_s24 + $0xf8] sm:$0xff]  ;;  %v6002_v56 = vld [vmem:[%s6117_s24 + $0x170] sm:$0xff] }
 0x1a6   : > { %9445 = vst [vmem:[#allocation26_spill] sm:$0xff] %v7787_v11  ;;  %9446 = vst [vmem:[#allocation68_spill] sm:$0xff] %v7791_v32  ;;  %v7797_v62 = vsel %vm2828_vm0, %v6001_v40, %v4798_v39  ;;  %v7801_v15 = vsel %vm2828_vm0, %v6002_v56, %v4799_v31  ;;  %v5414_v37 = vunpack.i.h.bf16 %v5412_v28  ;;  %v5413_v22 = vunpack.i.l.bf16 %v5412_v28  ;;  %v5407_v6 = vpop.permute.xlu0 %5406  ;;  %v9447_v33 = vld [vmem:[#allocation14_spill] sm:$0xff]  ;;  %v9450_v28 = vld [vmem:[#allocation31_spill] sm:$0xff] }
 0x1a7   : > { %v4814_v43 = vunpack.i.h.bf16 %v9447_v33  ;;  %v5409_v16 = vunpack.i.h.bf16 %v5407_v6  ;;  %v5408_v24 = vunpack.i.l.bf16 %v5407_v6  ;;  %5701 = vrot.lane.b32.xlu1 %v5700_v59, %s6054_s30  ;;  %v5710_v32 = vpack.i.bf16 %v4397_v60, %v4396_v3  ;;  %v4398_v11 = vld [vmem:[%s6117_s24 + $0xd9] sm:$0xff]  ;;  %v4399_v6 = vld [vmem:[%s6117_s24 + $0xe1] sm:$0xff]  ;;  %v4428_v60 = vld [vmem:[%s6117_s24 + $0x209] sm:$0xff] }
 0x1a8   : > { %v4813_v39 = vunpack.i.l.bf16 %v9447_v33  ;;  %v7808_v40 = vsel %vm3088_vm6, %v7436_v18, %v5413_v22  ;;  %v7812_v31 = vsel %vm3088_vm6, %v7440_v42, %v5414_v37  ;;  %5696 = vrot.lane.b32.xlu0 %v9450_v28, %s6057_s9  ;;  %v5705_v56 = vpack.i.bf16 %v4337_v29, %v4367_v26  ;;  %v9451_v63 = vld [vmem:[#allocation15_spill] sm:$0xff]  ;;  %v4429_v37 = vld [vmem:[%s6117_s24 + $0x211] sm:$0xff]  ;;  %v9454_v22 = vld [vmem:[#allocation32_spill] sm:$0xff] }
 0x1a9   : > { %9448 = vst [vmem:[#allocation14_spill] sm:$0xff] %v7808_v40  ;;  %9449 = vst [vmem:[#allocation69_spill] sm:$0xff] %v7812_v31  ;;  %v4809_v13 = vunpack.i.h.bf16 %v9451_v63  ;;  %v4808_v59 = vunpack.i.l.bf16 %v9451_v63  ;;  %v7822_v3 = vsel %vm3088_vm6, %v7447_v35, %v5408_v24  ;;  %v7826_v18 = vsel %vm3088_vm6, %v7451_v1, %v5409_v16  ;;  %v5422_v42 = vpop.permute.xlu1 %5421  ;;  %v9455_v31 = vld [vmem:[#allocation35_spill] sm:$0xff] }
 0x1aa   : > { %9452 = vst [vmem:[#allocation31_spill] sm:$0xff] %v7822_v3  ;;  %9453 = vst [vmem:[#allocation15_spill] sm:$0xff] %v7826_v18  ;;  %v4874_v29 = vunpack.i.h.bf16 %v9454_v22  ;;  %v4873_v26 = vunpack.i.l.bf16 %v9454_v22  ;;  %v5424_v33 = vunpack.i.h.bf16 %v5422_v42  ;;  %v5423_v28 = vunpack.i.l.bf16 %v5422_v42  ;;  %v5417_v63 = vpop.permute.xlu0 %5416  ;;  %v4461_v3 = vld [vmem:[%s6117_s24 + $0xd2] sm:$0xff] }
 0x1ab   : > { %v4869_v40 = vunpack.i.h.bf16 %v9455_v31  ;;  %v5419_v35 = vunpack.i.h.bf16 %v5417_v63  ;;  %v5418_v24 = vunpack.i.l.bf16 %v5417_v63  ;;  %5711 = vrot.lane.b32.xlu1 %v5710_v32, %s6056_s8  ;;  %v5720_v1 = vpack.i.bf16 %v4399_v6, %v4398_v11  ;;  %v4460_v63 = vld [vmem:[%s6117_s24 + $0xca] sm:$0xff]  ;;  %v9458_v32 = vld [vmem:[#allocation38_spill] sm:$0xff] }
 0x1ac   : > { %v4868_v16 = vunpack.i.l.bf16 %v9455_v31  ;;  %v7837_v18 = vsel %vm3088_vm6, %v7461_v4, %v5423_v28  ;;  %v7841_v42 = vsel %vm3088_vm6, %v7465_v20, %v5424_v33  ;;  %5706 = vrot.lane.b32.xlu0 %v5705_v56, %s6054_s30  ;;  %v5715_v22 = vpack.i.bf16 %v4429_v37, %v4428_v60  ;;  %v4430_v33 = vld [vmem:[%s6117_s24 + $0x219] sm:$0xff]  ;;  %v4431_v56 = vld [vmem:[%s6117_s24 + $0x221] sm:$0xff] }
 0x1ad   : > { %9456 = vst [vmem:[#allocation32_spill] sm:$0xff] %v7837_v18  ;;  %9457 = vst [vmem:[#allocation35_spill] sm:$0xff] %v7841_v42  ;;  %v4884_v11 = vunpack.i.h.bf16 %v9458_v32  ;;  %v4883_v31 = vunpack.i.l.bf16 %v9458_v32  ;;  %v7850_v6 = vsel %vm3088_vm6, %v7475_v57, %v5418_v24  ;;  %v7854_v4 = vsel %vm3088_vm6, %v7479_v47, %v5419_v35  ;;  %v7856_v20 = vpop.permute.xlu1 %5431  ;;  %v6003_v60 = vld [vmem:[%s6117_s24 + $0x1a0] sm:$0xff]  ;;  %v6004_v28 = vld [vmem:[%s6117_s24 + $0x1a8] sm:$0xff] }
 0x1ae   : > { %9459 = vst [vmem:[#allocation38_spill] sm:$0xff] %v7850_v6  ;;  %9460 = vst [vmem:[#allocation70_spill] sm:$0xff] %v7854_v4  ;;  %v7862_v37 = vsel %vm2828_vm0, %v6003_v60, %v4813_v39  ;;  %v7866_v42 = vsel %vm2828_vm0, %v6004_v28, %v4814_v43  ;;  %v6005_v32 = vld [vmem:[%s6117_s24 + $0x190] sm:$0xff]  ;;  %v9461_v47 = vld [vmem:[#allocation39_spill] sm:$0xff]  ;;  %v7873_v24 = vpop.permute.xlu0 %5426  ;;  %v7881_v39 = vsel %vm2893_vm1, %v7687_v27, %v4873_v26 }
 0x1af   : > { %v7870_v57 = vsel %vm2828_vm0, %v6005_v32, %v4808_v59  ;;  %v4878_v35 = vunpack.i.l.bf16 %v9461_v47  ;;  %v6006_v18 = vld [vmem:[%s6117_s24 + $0x198] sm:$0xff]  ;;  %v7885_v43 = vsel %vm2893_vm1, %v7703_v41, %v4874_v29  ;;  %5721 = vrot.lane.b32.xlu1 %v5720_v1, %s6056_s8  ;;  %v5730_v59 = vpack.i.bf16 %v4461_v3, %v4460_v63  ;;  %v9462_v32 = vld [vmem:[#allocation40_spill] sm:$0xff]  ;;  %v4368_v6 = vld [vmem:[%s6117_s24 + $0x230] sm:$0xff] }
 0x1b0   : > { %v7877_v4 = vsel %vm2828_vm0, %v6006_v18, %v4809_v13  ;;  %v7890_v60 = vsel %vm2893_vm1, %v7659_v0, %v4868_v16  ;;  %v4879_v28 = vunpack.i.h.bf16 %v9461_v47  ;;  %v4893_v13 = vunpack.i.l.bf16 %v9462_v32  ;;  %5716 = vrot.lane.b32.xlu0 %v5715_v22, %s6056_s8  ;;  %v4462_v27 = vld [vmem:[%s6117_s24 + $0xda] sm:$0xff]  ;;  %v4463_v26 = vld [vmem:[%s6117_s24 + $0xe2] sm:$0xff]  ;;  %v9464_v22 = vld [vmem:[#allocation41_spill] sm:$0xff] }
 0x1b1   : > { %v5725_v18 = vpack.i.bf16 %v4431_v56, %v4430_v33  ;;  %v7899_v41 = vsel %vm2893_vm1, %v7662_v23, %v4869_v40  ;;  %v7903_v3 = vsel %vm2893_vm1, %v7676_v49, %v4883_v31  ;;  %v7907_v0 = vsel %vm2893_vm1, %v7684_v9, %v4884_v11  ;;  %v7910_v1 = vpop.permute.xlu1 %5441  ;;  %v9465_v49 = vld [vmem:[#allocation43_spill] sm:$0xff]  ;;  %v9467_v11 = vld [vmem:[#allocation44_spill] sm:$0xff] }
 0x1b2   : > { %v4894_v29 = vunpack.i.h.bf16 %v9462_v32  ;;  %9463 = vst [vmem:[#allocation39_spill] sm:$0xff] %v7910_v1  ;;  %v7914_v16 = vsel %vm2893_vm1, %v7649_v45, %v4878_v35  ;;  %v4889_v23 = vunpack.i.h.bf16 %v9464_v22  ;;  %v4888_v40 = vunpack.i.l.bf16 %v9464_v22  ;;  %v7919_v31 = vpop.permute.xlu0 %5436  ;;  %v9468_v32 = vld [vmem:[#allocation45_spill] sm:$0xff] }
 0x1b3   : > { %v4953_v63 = vunpack.i.l.bf16 %v9465_v49  ;;  %9466 = vst [vmem:[#allocation40_spill] sm:$0xff] %v7919_v31  ;;  %v4954_v9 = vunpack.i.h.bf16 %v9465_v49  ;;  %v4949_v33 = vunpack.i.h.bf16 %v9467_v11  ;;  %v4948_v56 = vunpack.i.l.bf16 %v9467_v11  ;;  %5731 = vrot.lane.b32.xlu1 %v5730_v59, %s6057_s9  ;;  %v4369_v11 = vld [vmem:[%s6117_s24 + $0x238] sm:$0xff]  ;;  %v4495_v31 = vld [vmem:[%s6117_s24 + $0x222] sm:$0xff] }
 0x1b4   : > { %v5740_v45 = vpack.i.bf16 %v4463_v26, %v4462_v27  ;;  %v7927_v47 = vsel %vm2893_vm1, %v7656_v36, %v4879_v28  ;;  %v7931_v35 = vsel %vm2893_vm1, %v7707_v17, %v4893_v13  ;;  %v4964_v22 = vunpack.i.h.bf16 %v9468_v32  ;;  %5726 = vrot.lane.b32.xlu0 %v5725_v18, %s6056_s8  ;;  %v9469_v27 = vld [vmem:[#allocation46_spill] sm:$0xff]  ;;  %v9470_v28 = vld [vmem:[#allocation47_spill] sm:$0xff] }
 0x1b5   : > { %v4963_v49 = vunpack.i.l.bf16 %v9468_v32  ;;  %v7940_v59 = vsel %vm2893_vm1, %v7711_v30, %v4894_v29  ;;  %v4959_v26 = vunpack.i.h.bf16 %v9469_v27  ;;  %v4958_v36 = vunpack.i.l.bf16 %v9469_v27  ;;  %v7945_v17 = vpop.permute.xlu1 %5451  ;;  %v4494_v13 = vld [vmem:[%s6117_s24 + $0x21a] sm:$0xff] }
 0x1b6   : > { %v4973_v1 = vunpack.i.l.bf16 %v9470_v28  ;;  %9471 = vst [vmem:[#allocation41_spill] sm:$0xff] %v7945_v17  ;;  %v7951_v18 = vsel %vm2893_vm1, %v7715_v55, %v4888_v40  ;;  %v7955_v30 = vsel %vm2893_vm1, %v7719_v38, %v4889_v23  ;;  %v7959_v29 = vsel %vm2893_vm1, %v7726_v5, %v4953_v63  ;;  %v7962_v27 = vpop.permute.xlu0 %5446  ;;  %v9472_v40 = vld [vmem:[#allocation48_spill] sm:$0xff]  ;;  %v9473_v63 = vld [vmem:[#allocation29_spill] sm:$0xff] }
 0x1b7   : > { %v4974_v32 = vunpack.i.h.bf16 %v9470_v28  ;;  %v7966_v17 = vsel %vm2893_vm1, %v7754_v58, %v4954_v9  ;;  %v7970_v55 = vsel %vm2893_vm1, %v7759_v52, %v4948_v56  ;;  %v7974_v38 = vsel %vm2893_vm1, %v7763_v14, %v4949_v33  ;;  %5741 = vrot.lane.b32.xlu1 %v5740_v45, %s6057_s9  ;;  %v4370_v14 = vld [vmem:[%s6117_s24 + $0x240] sm:$0xff]  ;;  %v4371_v33 = vld [vmem:[%s6117_s24 + $0x248] sm:$0xff] }
 0x1b8   : > { %v5750_v5 = vpack.i.bf16 %v4369_v11, %v4368_v6  ;;  %v7979_v23 = vsel %vm2893_vm1, %v7779_v44, %v4963_v49  ;;  %v7983_v58 = vsel %vm2893_vm1, %v7783_v12, %v4964_v22  ;;  %v4968_v52 = vunpack.i.l.bf16 %v9472_v40  ;;  %5736 = vrot.lane.b32.xlu0 %v9473_v63, %s6057_s9  ;;  %v4338_v22 = vld [vmem:[%s6117_s24 + $0x100] sm:$0xff]  ;;  %v4339_v49 = vld [vmem:[%s6117_s24 + $0x108] sm:$0xff] }
 0x1b9   : > { %v5745_v9 = vpack.i.bf16 %v4495_v31, %v4494_v13  ;;  %v7992_v56 = vsel %vm2893_vm1, %v7797_v62, %v4958_v36  ;;  %v7996_v44 = vsel %vm2893_vm1, %v7801_v15, %v4959_v26  ;;  %v8000_v12 = vsel %vm2893_vm1, %v7862_v37, %v4973_v1  ;;  %v5462_v45 = vpop.permute.xlu1 %5461  ;;  %v9474_v62 = vld [vmem:[#allocation18_spill] sm:$0xff] }
 0x1ba   : > { %v4969_v6 = vunpack.i.h.bf16 %v9472_v40  ;;  %v8007_v31 = vsel %vm2893_vm1, %v7866_v42, %v4974_v32  ;;  %v5033_v11 = vunpack.i.l.bf16 %v9474_v62  ;;  %v5464_v36 = vunpack.i.h.bf16 %v5462_v45  ;;  %v5457_v26 = vpop.permute.xlu0 %5456 }
 0x1bb   : > { %v5463_v15 = vunpack.i.l.bf16 %v5462_v45  ;;  %v5034_v28 = vunpack.i.h.bf16 %v9474_v62  ;;  %v5459_v37 = vunpack.i.h.bf16 %v5457_v26  ;;  %v5458_v1 = vunpack.i.l.bf16 %v5457_v26  ;;  %5751 = vrot.lane.b32.xlu1 %v5750_v5, %s6054_s30  ;;  %v4432_v45 = vld [vmem:[%s6117_s24 + $0x231] sm:$0xff]  ;;  %v4433_v62 = vld [vmem:[%s6117_s24 + $0x239] sm:$0xff] }
 0x1bc   : > { %v5760_v13 = vpack.i.bf16 %v4371_v33, %v4370_v14  ;;  %v8014_v40 = vsel %vm2893_vm1, %v7870_v57, %v4968_v52  ;;  %v8022_v32 = vsel %vm3088_vm6, %v7515_v53, %v5464_v36  ;;  %5746 = vrot.lane.b32.xlu0 %v5745_v9, %s6057_s9  ;;  %v5755_v63 = vpack.i.bf16 %v4339_v49, %v4338_v22  ;;  %v9477_v14 = vld [vmem:[#allocation19_spill] sm:$0xff]  ;;  %v4400_v33 = vld [vmem:[%s6117_s24 + $0xf1] sm:$0xff] }
 0x1bd   : > { %v8018_v42 = vsel %vm3088_vm6, %v7511_v7, %v5463_v15  ;;  %9476 = vst [vmem:[#allocation44_spill] sm:$0xff] %v8022_v32  ;;  %v8029_v5 = vsel %vm2893_vm1, %v7877_v4, %v4969_v6  ;;  %v5028_v57 = vunpack.i.l.bf16 %v9477_v14  ;;  %v8034_v52 = vsel %vm3088_vm6, %v7523_v8, %v5458_v1  ;;  %v5472_v53 = vpop.permute.xlu1 %5471  ;;  %v4401_v9 = vld [vmem:[%s6117_s24 + $0xf9] sm:$0xff]  ;;  %v9524_v32 = vld [vmem:[#allocation52_spill] sm:$0xff] }
 0x1be   : > { %9475 = vst [vmem:[#allocation43_spill] sm:$0xff] %v8018_v42  ;;  %9478 = vst [vmem:[#allocation45_spill] sm:$0xff] %v8034_v52  ;;  %v8038_v7 = vsel %vm3088_vm6, %v7527_v54, %v5459_v37  ;;  %v8044_v22 = vsel %vm2958_vm2, %v7881_v39, %v5033_v11  ;;  %v5029_v4 = vunpack.i.h.bf16 %v9477_v14  ;;  %v5474_v6 = vunpack.i.h.bf16 %v5472_v53  ;;  %v5467_v36 = vpop.permute.xlu0 %5466  ;;  %v9480_v37 = vld [vmem:[#allocation16_spill] sm:$0xff]  ;;  %v9525_v42 = vld [vmem:[#allocation6_spill] sm:$0xff] }
 0x1bf   : > { %9479 = vst [vmem:[#allocation46_spill] sm:$0xff] %v8038_v7  ;;  %v5473_v49 = vunpack.i.l.bf16 %v5472_v53  ;;  %v8049_v8 = vsel %vm2958_vm2, %v7885_v43, %v5034_v28  ;;  %v5469_v54 = vunpack.i.h.bf16 %v5467_v36  ;;  %v5468_v15 = vunpack.i.l.bf16 %v5467_v36  ;;  %5761 = vrot.lane.b32.xlu1 %v5760_v13, %s6054_s30  ;;  %v4434_v28 = vld [vmem:[%s6117_s24 + $0x241] sm:$0xff]  ;;  %v4435_v14 = vld [vmem:[%s6117_s24 + $0x249] sm:$0xff] }
 0x1c0   : > { %v5770_v26 = vpack.i.bf16 %v4433_v62, %v4432_v45  ;;  %v5043_v39 = vunpack.i.l.bf16 %v9480_v37  ;;  %v8059_v1 = vsel %vm3088_vm6, %v7538_v46, %v5474_v6  ;;  %5756 = vrot.lane.b32.xlu0 %v5755_v63, %s6054_s30  ;;  %v5765_v43 = vpack.i.bf16 %v4401_v9, %v4400_v33  ;;  %v4402_v62 = vld [vmem:[%s6117_s24 + $0x101] sm:$0xff]  ;;  %v4403_v63 = vld [vmem:[%s6117_s24 + $0x109] sm:$0xff] }
 0x1c1   : > { %v8055_v11 = vsel %vm3088_vm6, %v7534_v21, %v5473_v49  ;;  %9482 = vst [vmem:[#allocation48_spill] sm:$0xff] %v8059_v1  ;;  %v8066_v53 = vsel %vm2958_vm2, %v7890_v60, %v5028_v57  ;;  %v5044_v13 = vunpack.i.h.bf16 %v9480_v37  ;;  %v8071_v45 = vsel %vm3088_vm6, %v7546_v19, %v5468_v15  ;;  %v5482_v46 = vpop.permute.xlu1 %5481  ;;  %v9485_v33 = vld [vmem:[#allocation17_spill] sm:$0xff] }
 0x1c2   : > { %9481 = vst [vmem:[#allocation47_spill] sm:$0xff] %v8055_v11  ;;  %9483 = vst [vmem:[#allocation29_spill] sm:$0xff] %v8071_v45  ;;  %v8075_v21 = vsel %vm3088_vm6, %v7550_v50, %v5469_v54  ;;  %v5039_v9 = vunpack.i.h.bf16 %v9485_v33  ;;  %v5038_v60 = vunpack.i.l.bf16 %v9485_v33  ;;  %v5484_v57 = vunpack.i.h.bf16 %v5482_v46  ;;  %v5477_v49 = vpop.permute.xlu0 %5476  ;;  %v4497_v33 = vld [vmem:[%s6117_s24 + $0x23a] sm:$0xff]  ;;  %v4406_v1 = vld [vmem:[%s6117_s24 + $0x129] sm:$0xff] }
 0x1c3   : > { %9484 = vst [vmem:[#allocation18_spill] sm:$0xff] %v8075_v21  ;;  %v5483_v6 = vunpack.i.l.bf16 %v5482_v46  ;;  %v8083_v19 = vsel %vm2958_vm2, %v7899_v41, %v5029_v4  ;;  %v5479_v36 = vunpack.i.h.bf16 %v5477_v49  ;;  %v5478_v50 = vunpack.i.l.bf16 %v5477_v49  ;;  %5771 = vrot.lane.b32.xlu1 %v5770_v26, %s6056_s8  ;;  %v4496_v4 = vld [vmem:[%s6117_s24 + $0x232] sm:$0xff]  ;;  %v8377_v45 = vld [vmem:[%s6117_s24 + $0x148] sm:$0xff] }
 0x1c4   : > { %v5780_v54 = vpack.i.bf16 %v4435_v14, %v4434_v28  ;;  %v8088_v15 = vsel %vm2958_vm2, %v7903_v3, %v5043_v39  ;;  %v8096_v46 = vsel %vm3088_vm6, %v7561_v48, %v5484_v57  ;;  %5766 = vrot.lane.b32.xlu0 %v5765_v43, %s6056_s8  ;;  %v5775_v41 = vpack.i.bf16 %v4403_v63, %v4402_v62  ;;  %v9488_v28 = vld [vmem:[#allocation20_spill] sm:$0xff]  ;;  %v4464_v14 = vld [vmem:[%s6117_s24 + $0xf2] sm:$0xff]  ;;  %v4465_v43 = vld [vmem:[%s6117_s24 + $0xfa] sm:$0xff] }
 0x1c5   : > { %v8092_v37 = vsel %vm3088_vm6, %v7557_v61, %v5483_v6  ;;  %9487 = vst [vmem:[#allocation16_spill] sm:$0xff] %v8096_v46  ;;  %v8103_v26 = vsel %vm2958_vm2, %v7907_v0, %v5044_v13  ;;  %v5053_v3 = vunpack.i.l.bf16 %v9488_v28  ;;  %v8108_v39 = vsel %vm3088_vm6, %v7566_v51, %v5478_v50  ;;  %v5492_v48 = vpop.permute.xlu1 %5491  ;;  %v4498_v50 = vld [vmem:[%s6117_s24 + $0x242] sm:$0xff]  ;;  %v4372_v46 = vld [vmem:[%s6117_s24 + $0x258] sm:$0xff] }
 0x1c6   : > { %9486 = vst [vmem:[#allocation19_spill] sm:$0xff] %v8092_v37  ;;  %9489 = vst [vmem:[#allocation17_spill] sm:$0xff] %v8108_v39  ;;  %v8112_v61 = vsel %vm3088_vm6, %v7570_v2, %v5479_v36  ;;  %v8118_v62 = vsel %vm2958_vm2, %v7914_v16, %v5038_v60  ;;  %v8122_v0 = vsel %vm2958_vm2, %v7927_v47, %v5039_v9  ;;  %v5494_v13 = vunpack.i.h.bf16 %v5492_v48  ;;  %v5487_v63 = vpop.permute.xlu0 %5486  ;;  %v9491_v36 = vld [vmem:[#allocation23_spill] sm:$0xff]  ;;  %v4407_v11 = vld [vmem:[%s6117_s24 + $0x131] sm:$0xff] }
 0x1c7   : > { %9490 = vst [vmem:[#allocation20_spill] sm:$0xff] %v8112_v61  ;;  %v5493_v51 = vunpack.i.l.bf16 %v5492_v48  ;;  %v5054_v57 = vunpack.i.h.bf16 %v9488_v28  ;;  %v5489_v2 = vunpack.i.h.bf16 %v5487_v63  ;;  %v5488_v6 = vunpack.i.l.bf16 %v5487_v63  ;;  %5781 = vrot.lane.b32.xlu1 %v5780_v54, %s6056_s8  ;;  %v4499_v28 = vld [vmem:[%s6117_s24 + $0x24a] sm:$0xff]  ;;  %v4373_v37 = vld [vmem:[%s6117_s24 + $0x260] sm:$0xff] }
 0x1c8   : > { %v5790_v49 = vpack.i.bf16 %v4497_v33, %v4496_v4  ;;  %v5049_v16 = vunpack.i.h.bf16 %v9491_v36  ;;  %v8133_v47 = vsel %vm3088_vm6, %v7581_v25, %v5494_v13  ;;  %5776 = vrot.lane.b32.xlu0 %v5775_v41, %s6056_s8  ;;  %v5785_v9 = vpack.i.bf16 %v4465_v43, %v4464_v14  ;;  %v4466_v13 = vld [vmem:[%s6117_s24 + $0x102] sm:$0xff]  ;;  %v4467_v41 = vld [vmem:[%s6117_s24 + $0x10a] sm:$0xff]  ;;  %v9497_v14 = vld [vmem:[#allocation22_spill] sm:$0xff] }
 0x1c9   : > { %v8129_v60 = vsel %vm3088_vm6, %v7577_v10, %v5493_v51  ;;  %9493 = vst [vmem:[#allocation71_spill] sm:$0xff] %v8133_v47  ;;  %v8140_v48 = vsel %vm2958_vm2, %v7931_v35, %v5053_v3  ;;  %v5048_v54 = vunpack.i.l.bf16 %v9491_v36  ;;  %v8145_v4 = vsel %vm3088_vm6, %v7586_v34, %v5488_v6  ;;  %v9495_v10 = vld [vmem:[#allocation58_spill] sm:$0xff]  ;;  %v5502_v25 = vpop.permute.xlu1 %5501  ;;  %v9498_v36 = vld [vmem:[#allocation24_spill] sm:$0xff] }
 0x1ca   : > { %9492 = vst [vmem:[#allocation23_spill] sm:$0xff] %v8129_v60  ;;  %9494 = vst [vmem:[#allocation72_spill] sm:$0xff] %v8145_v4  ;;  %v8149_v33 = vsel %vm3088_vm6, %v9495_v10, %v5489_v2  ;;  %v5114_v43 = vunpack.i.h.bf16 %v9497_v14  ;;  %v5113_v35 = vunpack.i.l.bf16 %v9497_v14  ;;  %v5504_v3 = vunpack.i.h.bf16 %v5502_v25  ;;  %v5497_v63 = vpop.permute.xlu0 %5496  ;;  %v9499_v60 = vld [vmem:[#allocation59_spill] sm:$0xff]  ;;  %v9501_v4 = vld [vmem:[#allocation60_spill] sm:$0xff] }
 0x1cb   : > { %9496 = vst [vmem:[#allocation58_spill] sm:$0xff] %v8149_v33  ;;  %v5503_v51 = vunpack.i.l.bf16 %v5502_v25  ;;  %v5109_v47 = vunpack.i.h.bf16 %v9498_v36  ;;  %v5499_v34 = vunpack.i.h.bf16 %v5497_v63  ;;  %v5498_v6 = vunpack.i.l.bf16 %v5497_v63  ;;  %5791 = vrot.lane.b32.xlu1 %v5790_v49, %s6057_s9  ;;  %v9503_v63 = vld [vmem:[#allocation25_spill] sm:$0xff] }
 0x1cc   : > { %v5800_v2 = vpack.i.bf16 %v4499_v28, %v4498_v50  ;;  %v5108_v10 = vunpack.i.l.bf16 %v9498_v36  ;;  %v8164_v14 = vsel %vm3088_vm6, %v9501_v4, %v5504_v3  ;;  %5786 = vrot.lane.b32.xlu0 %v5785_v9, %s6057_s9  ;;  %v5795_v25 = vpack.i.bf16 %v4467_v41, %v4466_v13  ;;  %v9504_v50 = vld [vmem:[#allocation61_spill] sm:$0xff]  ;;  %v9506_v36 = vld [vmem:[#allocation62_spill] sm:$0xff]  ;;  %v4341_v3 = vld [vmem:[%s6117_s24 + $0x120] sm:$0xff] }
 0x1cd   : > { %v8160_v33 = vsel %vm3088_vm6, %v9499_v60, %v5503_v51  ;;  %9502 = vst [vmem:[#allocation24_spill] sm:$0xff] %v8164_v14  ;;  %v5124_v61 = vunpack.i.h.bf16 %v9503_v63  ;;  %v5123_v49 = vunpack.i.l.bf16 %v9503_v63  ;;  %v8173_v28 = vsel %vm3088_vm6, %v9504_v50, %v5498_v6  ;;  %v8179_v51 = vpop.permute.xlu1 %5511  ;;  %v4340_v4 = vld [vmem:[%s6117_s24 + $0x118] sm:$0xff]  ;;  %v9508_v13 = vld [vmem:[#allocation27_spill] sm:$0xff]  ;;  %v9509_v6 = vld [vmem:[#allocation28_spill] sm:$0xff] }
 0x1ce   : > { %9500 = vst [vmem:[#allocation22_spill] sm:$0xff] %v8160_v33  ;;  %9505 = vst [vmem:[#allocation59_spill] sm:$0xff] %v8173_v28  ;;  %v8177_v60 = vsel %vm3088_vm6, %v9506_v36, %v5499_v34  ;;  %v8185_v9 = vsel %vm2958_vm2, %v7940_v59, %v5054_v57  ;;  %v5119_v41 = vunpack.i.h.bf16 %v9508_v13  ;;  %v5118_v63 = vunpack.i.l.bf16 %v9508_v13  ;;  %v8190_v14 = vpop.permute.xlu0 %5506  ;;  %v9510_v33 = vld [vmem:[#allocation30_spill] sm:$0xff]  ;;  %v4375_v28 = vld [vmem:[%s6117_s24 + $0x270] sm:$0xff] }
 0x1cf   : > { %9507 = vst [vmem:[#allocation60_spill] sm:$0xff] %v8177_v60  ;;  %v5133_v50 = vunpack.i.l.bf16 %v9509_v6  ;;  %v8194_v34 = vsel %vm2958_vm2, %v7951_v18, %v5048_v54  ;;  %v5134_v36 = vunpack.i.h.bf16 %v9509_v6  ;;  %v5128_v60 = vunpack.i.l.bf16 %v9510_v33  ;;  %5801 = vrot.lane.b32.xlu1 %v5800_v2, %s6057_s9  ;;  %v4374_v6 = vld [vmem:[%s6117_s24 + $0x268] sm:$0xff] }
 0x1d0   : > { %v5810_v59 = vpack.i.bf16 %v4373_v37, %v4372_v46  ;;  %v8201_v57 = vsel %vm2958_vm2, %v7955_v30, %v5049_v16  ;;  %v8205_v13 = vsel %vm2958_vm2, %v7959_v29, %v5113_v35  ;;  %v8209_v18 = vsel %vm2958_vm2, %v7966_v17, %v5114_v43  ;;  %5796 = vrot.lane.b32.xlu0 %v5795_v25, %s6057_s9  ;;  %v4342_v16 = vld [vmem:[%s6117_s24 + $0x128] sm:$0xff]  ;;  %v4343_v43 = vld [vmem:[%s6117_s24 + $0x130] sm:$0xff] }
 0x1d1   : > { %v5805_v54 = vpack.i.bf16 %v4341_v3, %v4340_v4  ;;  %v8216_v37 = vsel %vm2958_vm2, %v7970_v55, %v5108_v10  ;;  %v8220_v30 = vsel %vm2958_vm2, %v7974_v38, %v5109_v47  ;;  %v8224_v29 = vsel %vm2958_vm2, %v7979_v23, %v5123_v49  ;;  %v8230_v46 = vpop.permute.xlu1 %5521  ;;  %v9512_v35 = vld [vmem:[#allocation33_spill] sm:$0xff]  ;;  %v4436_v49 = vld [vmem:[%s6117_s24 + $0x259] sm:$0xff] }
 0x1d2   : > { %v8228_v17 = vsel %vm2958_vm2, %v7983_v58, %v5124_v61  ;;  %v8236_v55 = vsel %vm2958_vm2, %v7992_v56, %v5118_v63  ;;  %v8240_v38 = vsel %vm2958_vm2, %v7996_v44, %v5119_v41  ;;  %v8244_v23 = vsel %vm2958_vm2, %v8000_v12, %v5133_v50  ;;  %v8247_v61 = vpop.permute.xlu0 %5516  ;;  %v9515_v41 = vld [vmem:[#allocation37_spill] sm:$0xff] }
 0x1d3   : > { %v5129_v58 = vunpack.i.h.bf16 %v9510_v33  ;;  %v8251_v47 = vsel %vm2958_vm2, %v8007_v31, %v5134_v36  ;;  %v8255_v56 = vsel %vm2958_vm2, %v8014_v40, %v5128_v60  ;;  %v5193_v44 = vunpack.i.l.bf16 %v9512_v35  ;;  %5811 = vrot.lane.b32.xlu1 %v5810_v59, %s6054_s30  ;;  %v9513_v33 = vld [vmem:[#allocation34_spill] sm:$0xff]  ;;  %v4437_v40 = vld [vmem:[%s6117_s24 + $0x261] sm:$0xff] }
 0x1d4   : > { %9511 = vst [vmem:[#allocation25_spill] sm:$0xff] %v8251_v47  ;;  %v5820_v12 = vpack.i.bf16 %v4375_v28, %v4374_v6  ;;  %v5194_v2 = vunpack.i.h.bf16 %v9512_v35  ;;  %v5189_v10 = vunpack.i.h.bf16 %v9513_v33  ;;  %v5188_v25 = vunpack.i.l.bf16 %v9513_v33  ;;  %5806 = vrot.lane.b32.xlu0 %v5805_v54, %s6054_s30  ;;  %v9514_v60 = vld [vmem:[#allocation36_spill] sm:$0xff]  ;;  %v4404_v36 = vld [vmem:[%s6117_s24 + $0x119] sm:$0xff]  ;;  %v9516_v6 = vld [vmem:[#allocation49_spill] sm:$0xff] }
 0x1d5   : > { %v5815_v31 = vpack.i.bf16 %v4343_v43, %v4342_v16  ;;  %v5204_v4 = vunpack.i.h.bf16 %v9514_v60  ;;  %v5203_v3 = vunpack.i.l.bf16 %v9514_v60  ;;  %v5199_v63 = vunpack.i.h.bf16 %v9515_v41  ;;  %v8269_v50 = vpop.permute.xlu1 %5531  ;;  %v4405_v59 = vld [vmem:[%s6117_s24 + $0x121] sm:$0xff]  ;;  %v8282_v33 = vld [vmem:[%s6117_s24 + $0x269] sm:$0xff] }
 0x1d6   : > { %v5198_v28 = vunpack.i.l.bf16 %v9515_v41  ;;  %v8275_v54 = vsel %vm2958_vm2, %v8029_v5, %v5129_v58  ;;  %v5214_v16 = vunpack.i.h.bf16 %v9516_v6  ;;  %v5213_v43 = vunpack.i.l.bf16 %v9516_v6  ;;  %v8279_v35 = vpop.permute.xlu0 %5526  ;;  %v9518_v41 = vld [vmem:[#allocation50_spill] sm:$0xff] }
 0x1d7   : > { %9517 = vst [vmem:[#allocation61_spill] sm:$0xff] %v8279_v35  ;;  %v8286_v60 = vsel %vm3023_vm3, %v8044_v22, %v5193_v44  ;;  %v5209_v39 = vunpack.i.h.bf16 %v9518_v41  ;;  %v5208_v5 = vunpack.i.l.bf16 %v9518_v41  ;;  %5821 = vrot.lane.b32.xlu1 %v5820_v12, %s6054_s30  ;;  %v5830_v58 = vpack.i.bf16 %v4437_v40, %v4436_v49  ;;  %v4439_v6 = vld [vmem:[%s6117_s24 + $0x271] sm:$0xff]  ;;  %v8308_v49 = vld [vmem:[%s6117_s24 + $0x25a] sm:$0xff]  ;;  %v8311_v40 = vld [vmem:[%s6117_s24 + $0x262] sm:$0xff] }
 0x1d8   : > { %v8296_v21 = vsel %vm3023_vm3, %v8049_v8, %v5194_v2  ;;  %v8300_v22 = vsel %vm3023_vm3, %v8066_v53, %v5188_v25  ;;  %v8304_v44 = vsel %vm3023_vm3, %v8083_v19, %v5189_v10  ;;  %5816 = vrot.lane.b32.xlu0 %v5815_v31, %s6054_s30  ;;  %v5825_v12 = vpack.i.bf16 %v4405_v59, %v4404_v36  ;;  %v8314_v41 = vld [vmem:[%s6117_s24 + $0x11a] sm:$0xff]  ;;  %v8333_v25 = vld [vmem:[%s6117_s24 + $0x122] sm:$0xff]  ;;  %v8336_v31 = vld [vmem:[%s6117_s24 + $0x26a] sm:$0xff] }
 0x1d9   : > { %v8318_v8 = vsel %vm3023_vm3, %v8088_v15, %v5203_v3  ;;  %v8322_v53 = vsel %vm3023_vm3, %v8103_v26, %v5204_v4  ;;  %v8326_v19 = vsel %vm3023_vm3, %v8118_v62, %v5198_v28  ;;  %v8330_v2 = vsel %vm3023_vm3, %v8122_v0, %v5199_v63  ;;  %v5542_v10 = vpop.permute.xlu1 %5541  ;;  %v8339_v15 = vld [vmem:[%s6117_s24 + $0x272] sm:$0xff]  ;;  %v8352_v63 = vld [vmem:[%s6117_s24 + $0x12a] sm:$0xff]  ;;  %v8358_v36 = vld [vmem:[%s6117_s24 + $0x280] sm:$0xff] }
 0x1da   : > { %v8343_v26 = vsel %vm3023_vm3, %v8140_v48, %v5213_v43  ;;  %v8347_v62 = vsel %vm3023_vm3, %v8185_v9, %v5214_v16  ;;  %v5544_v0 = vunpack.i.h.bf16 %v5542_v10  ;;  %v5543_v4 = vunpack.i.l.bf16 %v5542_v10  ;;  %v8349_v3 = vpop.permute.xlu0 %5536  ;;  %v8355_v28 = vld [vmem:[%s6117_s24 + $0x132] sm:$0xff]  ;;  %v8371_v43 = vld [vmem:[%s6117_s24 + $0x288] sm:$0xff]  ;;  %v8374_v10 = vld [vmem:[%s6117_s24 + $0x140] sm:$0xff] }
 0x1db   : > { %9519 = vst [vmem:[#allocation62_spill] sm:$0xff] %v8343_v26  ;;  %9520 = vst [vmem:[#allocation27_spill] sm:$0xff] %v8347_v62  ;;  %v8362_v48 = vsel %vm3023_vm3, %v8194_v34, %v5208_v5  ;;  %v8366_v9 = vsel %vm3023_vm3, %v8201_v57, %v5209_v39  ;;  %5831 = vrot.lane.b32.xlu1 %v5830_v58, %s6056_s8  ;;  %v5840_v59 = vpack.i.bf16 %v4439_v6, %v8282_v33  ;;  %v9527_v57 = vld [vmem:[#allocation7_spill] sm:$0xff]  ;;  %v9529_v58 = vld [vmem:[#allocation53_spill] sm:$0xff] }
 0x1dc   : > { %9521 = vst [vmem:[#allocation28_spill] sm:$0xff] %v8349_v3  ;;  %9522 = vst [vmem:[#allocation30_spill] sm:$0xff] %v8362_v48  ;;  %v5835_v16 = vpack.i.bf16 %v4407_v11, %v4406_v1  ;;  %v5274_v34 = vunpack.i.h.bf16 %v9524_v32  ;;  %v5273_v5 = vunpack.i.l.bf16 %v9524_v32  ;;  %v8383_v39 = vsel %vm3153_vm7, %v9525_v42, %v5543_v4  ;;  %5826 = vrot.lane.b32.xlu0 %v5825_v12, %s6056_s8  ;;  %v8391_v11 = vld [vmem:[%s6117_s24 + $0x290] sm:$0xff]  ;;  %v8394_v1 = vld [vmem:[%s6117_s24 + $0x298] sm:$0xff] }
 0x1dd   : > { %9523 = vst [vmem:[#allocation33_spill] sm:$0xff] %v8366_v9  ;;  %9526 = vst [vmem:[#allocation34_spill] sm:$0xff] %v8383_v39  ;;  %v8387_v33 = vsel %vm3153_vm7, %v9527_v57, %v5544_v0  ;;  %v5269_v6 = vunpack.i.h.bf16 %v9529_v58  ;;  %v5268_v7 = vunpack.i.l.bf16 %v9529_v58  ;;  %v8398_v32 = vpop.permute.xlu1 %5551  ;;  %v5850_v42 = vpack.i.bf16 %v8311_v40, %v8308_v49  ;;  %v8405_v4 = vld [vmem:[%s6117_s24 + $0x150] sm:$0xff]  ;;  %v8408_v12 = vld [vmem:[%s6117_s24 + $0x158] sm:$0xff] }
 0x1de   : > { %9528 = vst [vmem:[#allocation36_spill] sm:$0xff] %v8387_v33  ;;  %v5845_v0 = vpack.i.bf16 %v8333_v25, %v8314_v41  ;;  %v8410_v57 = vpop.permute.xlu0 %5546  ;;  %v5860_v33 = vpack.i.bf16 %v8339_v15, %v8336_v31  ;;  %v5855_v58 = vpack.i.bf16 %v8355_v28, %v8352_v63  ;;  %v9530_v41 = vld [vmem:[#allocation54_spill] sm:$0xff]  ;;  %v8427_v15 = vld [vmem:[%s6117_s24 + $0x281] sm:$0xff]  ;;  %v8431_v63 = vsel %vm3023_vm3, %v8205_v13, %v5273_v5  ;;  %v8448_v3 = vld [vmem:[%s6117_s24 + $0x149] sm:$0xff] }
 0x1df   : > { %v5284_v25 = vunpack.i.h.bf16 %v9530_v41  ;;  %v5283_v39 = vunpack.i.l.bf16 %v9530_v41  ;;  %v5548_v52 = vunpack.i.l.bf16 %v8410_v57  ;;  %5841 = vrot.lane.b32.xlu1 %v5840_v59, %s6056_s8  ;;  %v8435_v28 = vsel %vm3023_vm3, %v8209_v18, %v5274_v34  ;;  %v9531_v40 = vld [vmem:[#allocation55_spill] sm:$0xff]  ;;  %v8442_v41 = vld [vmem:[%s6117_s24 + $0x289] sm:$0xff] }
 0x1e0   : > { %v5278_v49 = vunpack.i.l.bf16 %v9531_v40  ;;  %5836 = vrot.lane.b32.xlu0 %v5835_v16, %s6056_s8  ;;  %v8445_v31 = vld [vmem:[%s6117_s24 + $0x141] sm:$0xff]  ;;  %v3056_v13 = vsel %vm3023_vm3, %v8216_v37, %v5268_v7  ;;  %v3057_v18 = vsel %vm3023_vm3, %v8220_v30, %v5269_v6  ;;  %v5279_v34 = vunpack.i.h.bf16 %v9531_v40 }
 0x1e1   : > { %v9532_v5 = vld [vmem:[#allocation11_spill] sm:$0xff]  ;;  %v5562_v47 = vpop.permute.xlu1 %5561  ;;  %v9534_v62 = vld [vmem:[#allocation64_spill] sm:$0xff]  ;;  %v8467_v37 = vsel %vm3023_vm3, %v8224_v29, %v5283_v39  ;;  %v5429_v40 = vunpack.i.h.bf16 %v7873_v24  ;;  %v5428_v29 = vunpack.i.l.bf16 %v7873_v24  ;;  %v5513_v39 = vunpack.i.l.bf16 %v8179_v51 }
 0x1e2   : > { %v8457_v16 = vsel %vm3153_vm7, %v9532_v5, %v5548_v52  ;;  %v9533_v59 = vld [vmem:[#allocation63_spill] sm:$0xff]  ;;  %v5349_v26 = vunpack.i.h.bf16 %v9534_v62  ;;  %v5348_v35 = vunpack.i.l.bf16 %v9534_v62  ;;  %v8463_v7 = vpop.permute.xlu0 %5556  ;;  %v8471_v52 = vsel %vm3023_vm3, %v8228_v17, %v5284_v25 }
 0x1e3   : > { %v5354_v9 = vunpack.i.h.bf16 %v9533_v59  ;;  %v5353_v48 = vunpack.i.l.bf16 %v9533_v59  ;;  %5851 = vrot.lane.b32.xlu1 %v5850_v42, %s6057_s9  ;;  %v8480_v62 = vsel %vm3023_vm3, %v8236_v55, %v5278_v49  ;;  %v8488_v17 = vsel %vm3023_vm3, %v8240_v38, %v5279_v34  ;;  %v9535_v42 = vld [vmem:[#allocation56_spill] sm:$0xff] }
 0x1e4   : > { %5846 = vrot.lane.b32.xlu0 %v5845_v0, %s6057_s9  ;;  %v5509_v59 = vunpack.i.h.bf16 %v8190_v14  ;;  %v5508_v55 = vunpack.i.l.bf16 %v8190_v14  ;;  %v3089_v0 = vsel %vm3088_vm6, %v8300_v22, %v5348_v35  ;;  %v3090_v38 = vsel %vm3088_vm6, %v8304_v44, %v5349_v26 }
 0x1e5   : > { %v5572_v49 = vpop.permute.xlu1 %5571  ;;  %v3091_v5 = vsel %vm3088_vm6, %v8286_v60, %v5353_v48  ;;  %v3092_v24 = vsel %vm3088_vm6, %v8296_v21, %v5354_v9  ;;  %v5433_v6 = vunpack.i.l.bf16 %v7856_v20  ;;  %v5564_v30 = vunpack.i.h.bf16 %v5562_v47 }
 0x1e6   : > { %v5567_v34 = vpop.permute.xlu0 %5566  ;;  %v5563_v14 = vunpack.i.l.bf16 %v5562_v47  ;;  %v3121_v60 = vsel %vm3088_vm6, %v3056_v13, %v5428_v29  ;;  %v3122_v48 = vsel %vm3088_vm6, %v3057_v18, %v5429_v40  ;;  %v5514_v21 = vunpack.i.h.bf16 %v8179_v51 }
 0x1e7   : > { %5861 = vrot.lane.b32.xlu1 %v5860_v33, %s6057_s9  ;;  %v3156_v35 = vsel %vm3153_vm7, %v3091_v5, %v5513_v39  ;;  %v3154_v22 = vsel %vm3153_vm7, %v3089_v0, %v5508_v55  ;;  %v3155_v44 = vsel %vm3153_vm7, %v3090_v38, %v5509_v59  ;;  %v5553_v26 = vunpack.i.l.bf16 %v8398_v32 }
 0x1e8   : > { %5856 = vrot.lane.b32.xlu0 %v5855_v58, %s6057_s9  ;;  %v5549_v47 = vunpack.i.h.bf16 %v8410_v57  ;;  %v5574_v33 = vunpack.i.h.bf16 %v5572_v49  ;;  %v5573_v25 = vunpack.i.l.bf16 %v5572_v49  ;;  %v5569_v51 = vunpack.i.h.bf16 %v5567_v34 }
 0x1e9   : > { %v5582_v9 = vpop.permute.xlu1 %5581  ;;  %v5568_v40 = vunpack.i.l.bf16 %v5567_v34  ;;  %v9536_v58 = vpack.i.bf16 %v8371_v43, %v8358_v36  ;;  %v3219_v39 = vsel %vm3218_vm8, %v3154_v22, %v5563_v14  ;;  %v3220_v59 = vsel %vm3218_vm8, %v3155_v44, %v5564_v30  ;;  %v4443_v22 = vld [vmem:[%s6117_s24 + $0x299] sm:$0xff] }
 0x1ea   : > { %v5584_v13 = vunpack.i.h.bf16 %v5582_v9  ;;  %v5583_v29 = vunpack.i.l.bf16 %v5582_v9  ;;  %v8513_v18 = vpop.permute.xlu0 %5576  ;;  %v3157_v57 = vsel %vm3153_vm7, %v3092_v24, %v5514_v21  ;;  %v5554_v55 = vunpack.i.h.bf16 %v8398_v32  ;;  %v8535_v21 = vld [vmem:[%s6117_s24 + $0x291] sm:$0xff] }
 0x1eb   : > { %5871 = vrot.lane.b32.xlu1 %v9536_v58, %s6054_s30  ;;  %v9537_v49 = vpack.i.bf16 %v8377_v45, %v8374_v10  ;;  %v3187_v43 = vsel %vm3153_vm7, %v3122_v48, %v5553_v26  ;;  %v3186_v0 = vsel %vm3153_vm7, %v3121_v60, %v5549_v47  ;;  %v5558_v30 = vunpack.i.l.bf16 %v8463_v7  ;;  %v4411_v58 = vld [vmem:[%s6117_s24 + $0x159] sm:$0xff] }
 0x1ec   : > { %v3284_v5 = vsel %vm3283_vm9, %v3219_v39, %v5583_v29  ;;  %v3285_v36 = vsel %vm3283_vm9, %v3220_v59, %v5584_v13  ;;  %v3221_v34 = vsel %vm3218_vm8, %v3156_v35, %v5573_v25  ;;  %v3222_v32 = vsel %vm3218_vm8, %v3157_v57, %v5574_v33  ;;  %v8561_v39 = vld [vmem:[%s6117_s24 + $0x282] sm:$0xff]  ;;  %v8564_v59 = vld [vmem:[%s6117_s24 + $0x28a] sm:$0xff] }
 0x1ed   : > { %5866 = vrot.lane.b32.xlu0 %v9537_v49, %s6054_s30  ;;  %v5592_v38 = vpop.permute.xlu1 %5591  ;;  %v3348_v24 = vpack.c.bf16 %v3285_v36, %v3284_v5  ;;  %v9538_v60 = vpack.i.bf16 %v8394_v1, %v8391_v11  ;;  %v3251_v25 = vsel %vm3218_vm8, %v3186_v0, %v5568_v40  ;;  %v3252_v48 = vsel %vm3218_vm8, %v3187_v43, %v5569_v51  ;;  %v4410_v1 = vld [vmem:[%s6117_s24 + $0x151] sm:$0xff]  ;;  %v8576_v0 = vld [vmem:[%s6117_s24 + $0x142] sm:$0xff] }
 0x1ee   : > { %v5594_v14 = vunpack.i.h.bf16 %v5592_v38  ;;  %v5593_v45 = vunpack.i.l.bf16 %v5592_v38  ;;  %v5587_v10 = vpop.permute.xlu0 %5586  ;;  %v5579_v35 = vunpack.i.h.bf16 %v8513_v18  ;;  %v5578_v26 = vunpack.i.l.bf16 %v8513_v18  ;;  %v8579_v38 = vld [vmem:[%s6117_s24 + $0x14a] sm:$0xff] }
 0x1ef   : > { %v5589_v44 = vunpack.i.h.bf16 %v5587_v10  ;;  %v5588_v9 = vunpack.i.l.bf16 %v5587_v10  ;;  %5881 = vrot.lane.b32.xlu1 %v9538_v60, %s6054_s30  ;;  %4587 = vmatprep.mubr.msk.bf16.mxu0 %vm3402_vm10, %v3348_v24  ;;  %v9539_v11 = vpack.i.bf16 %v8408_v12, %v8405_v4  ;;  %v5900_v40 = vpack.i.bf16 %v4443_v22, %v8535_v21  ;;  %v9540_v4 = vld [vmem:[#allocation57_spill] sm:$0xff]  ;;  %v8609_v21 = vld [vmem:[%s6117_s24 + $0x2a8] sm:$0xff] }
 0x1f0   : > { %v3286_v47 = vsel %vm3283_vm9, %v3221_v34, %v5593_v45  ;;  %v3287_v33 = vsel %vm3283_vm9, %v3222_v32, %v5594_v14  ;;  %v5289_v12 = vunpack.i.h.bf16 %v9540_v4  ;;  %v3123_v57 = vsel %vm3088_vm6, %v8431_v63, %v5433_v6  ;;  %v8582_v24 = vld [vmem:[%s6117_s24 + $0x292] sm:$0xff]  ;;  %v8592_v6 = vld [vmem:[%s6117_s24 + $0x29a] sm:$0xff] }
 0x1f1   : > { %5876 = vrot.lane.b32.xlu0 %v9539_v11, %s6054_s30  ;;  %v3349_v13 = vpack.c.bf16 %v3287_v33, %v3286_v47  ;;  %v8554_v29 = vpop.permute.xlu1 %5601  ;;  %v3316_v51 = vsel %vm3283_vm9, %v3251_v25, %v5588_v9  ;;  %v3317_v18 = vsel %vm3283_vm9, %v3252_v48, %v5589_v44  ;;  %v9541_v49 = vunpack.i.h.bf16 %v7856_v20  ;;  %v8595_v14 = vld [vmem:[%s6117_s24 + $0x152] sm:$0xff]  ;;  %v8598_v45 = vld [vmem:[%s6117_s24 + $0x15a] sm:$0xff]  ;;  %v8615_v44 = vld [vmem:[%s6117_s24 + $0x168] sm:$0xff] }
 0x1f2   : > { %v5597_v36 = vpop.permute.xlu0 %5596  ;;  %v3364_v43 = vpack.c.bf16 %v3317_v18, %v3316_v51  ;;  %v3188_v34 = vsel %vm3153_vm7, %v3123_v57, %v5554_v55  ;;  %v5288_v55 = vunpack.i.l.bf16 %v9540_v4  ;;  %v8612_v22 = vld [vmem:[%s6117_s24 + $0x2b0] sm:$0xff]  ;;  %v8629_v47 = vld [vmem:[%s6117_s24 + $0x2c0] sm:$0xff]  ;;  %v9545_v11 = vld [vmem:[#allocation66_spill] sm:$0xff] }
 0x1f3   : > { %v3124_v5 = vsel %vm3088_vm6, %v8435_v28, %v9541_v49  ;;  %v5599_v63 = vunpack.i.h.bf16 %v5597_v36  ;;  %v5598_v20 = vunpack.i.l.bf16 %v5597_v36  ;;  %v9542_v28 = vpack.i.bf16 %v8442_v41, %v8427_v15  ;;  %4588 = vmatmul.mubr.msk.bf16.vlgmr.msra.gmra.mrb[0].mxu0 %vm3402_vm10, %v3349_v13  ;;  %v9544_v9 = vld [vmem:[#allocation65_spill] sm:$0xff]  ;;  %v8640_v57 = vld [vmem:[%s6117_s24 + $0x180] sm:$0xff]  ;;  %v9546_v36 = vld [vmem:[#allocation40_spill] sm:$0xff] }
 0x1f4   : > { %v3189_v32 = vsel %vm3153_vm7, %v3124_v5, %v5558_v30  ;;  %v3253_v30 = vsel %vm3218_vm8, %v3188_v34, %v5578_v26  ;;  %v9543_v15 = vpack.i.bf16 %v8448_v3, %v8445_v31  ;;  %4619 = vmatprep.mubr.msk.bf16.mxu1 %vm3402_vm10, %v3364_v43  ;;  %v5895_v41 = vpack.i.bf16 %v4411_v58, %v4410_v1  ;;  %v8623_v31 = vld [vmem:[%s6117_s24 + $0x170] sm:$0xff]  ;;  %v8626_v26 = vld [vmem:[%s6117_s24 + $0x2b8] sm:$0xff] }
 0x1f5   : > { %5891 = vrot.lane.b32.xlu1 %v9542_v28, %s6056_s8  ;;  %v3254_v10 = vsel %vm3218_vm8, %v3189_v32, %v5579_v35  ;;  %v5364_v60 = vunpack.i.h.bf16 %v9544_v9  ;;  %v3318_v25 = vsel %vm3283_vm9, %v3253_v30, %v5598_v20  ;;  %v5612_v35 = vpop.permute.xlu1 %5611  ;;  %v5910_v3 = vpack.i.bf16 %v8564_v59, %v8561_v39  ;;  %v8637_v58 = vld [vmem:[%s6117_s24 + $0x178] sm:$0xff] }
 0x1f6   : > { %5886 = vrot.lane.b32.xlu0 %v9543_v15, %s6056_s8  ;;  %v3319_v48 = vsel %vm3283_vm9, %v3254_v10, %v5599_v63  ;;  %v5363_v33 = vunpack.i.l.bf16 %v9544_v9  ;;  %v5359_v1 = vunpack.i.h.bf16 %v9545_v11  ;;  %v5358_v13 = vunpack.i.l.bf16 %v9545_v11  ;;  %v8634_v18 = vpop.permute.xlu0 %5606  ;;  %v9547_v10 = vld [vmem:[#allocation39_spill] sm:$0xff] }
 0x1f7   : > { %v3365_v51 = vpack.c.bf16 %v3319_v48, %v3318_v25  ;;  %v5905_v39 = vpack.i.bf16 %v8579_v38, %v8576_v0  ;;  %v5920_v59 = vpack.i.bf16 %v8592_v6, %v8582_v24  ;;  %v5915_v49 = vpack.i.bf16 %v8598_v45, %v8595_v14 }
 0x1f8   : > { %v5930_v5 = vpack.i.bf16 %v8612_v22, %v8609_v21  ;;  %v5439_v43 = vunpack.i.h.bf16 %v9546_v36  ;;  %v5438_v34 = vunpack.i.l.bf16 %v9546_v36  ;;  %v5940_v0 = vpack.i.bf16 %v8629_v47, %v8626_v26  ;;  %v8747_v47 = vld [vmem:[%s6117_s24 + $0x2aa] sm:$0xff] }
 0x1f9   : > { %5901 = vrot.lane.b32.xlu1 %v5900_v40, %s6056_s8  ;;  %4620 = vmatmul.mubr.msk.bf16.vlgmr.msra.gmra.mrb[0].mxu1 %vm3402_vm10, %v3365_v51  ;;  %v5925_v40 = vpack.i.bf16 %v8623_v31, %v8615_v44  ;;  %v5523_v38 = vunpack.i.l.bf16 %v8230_v46  ;;  %v5519_v24 = vunpack.i.h.bf16 %v8247_v61  ;;  %v5518_v32 = vunpack.i.l.bf16 %v8247_v61  ;;  %v5622_v63 = vpop.permute.xlu1 %5621 }
 0x1fa   : > { %5896 = vrot.lane.b32.xlu0 %v5895_v41, %s6056_s8  ;;  %v5935_v20 = vpack.i.bf16 %v8640_v57, %v8637_v58  ;;  %v3095_v28 = vsel %vm3088_vm6, %v8318_v8, %v5363_v33  ;;  %v3096_v6 = vsel %vm3088_vm6, %v8322_v53, %v5364_v60  ;;  %v3093_v14 = vsel %vm3088_vm6, %v8326_v19, %v5358_v13  ;;  %v5617_v30 = vpop.permute.xlu0 %5616 }
 0x1fb   : > { %v3094_v45 = vsel %vm3088_vm6, %v8330_v2, %v5359_v1  ;;  %v5444_v15 = vunpack.i.h.bf16 %v9547_v10  ;;  %v5443_v61 = vunpack.i.l.bf16 %v9547_v10  ;;  %v5614_v41 = vunpack.i.h.bf16 %v5612_v35  ;;  %v4444_v10 = vld [vmem:[%s6117_s24 + $0x2a9] sm:$0xff] }
 0x1fc   : > { %v5613_v21 = vunpack.i.l.bf16 %v5612_v35  ;;  %v3125_v8 = vsel %vm3088_vm6, %v8480_v62, %v5438_v34  ;;  %v3126_v53 = vsel %vm3088_vm6, %v8488_v17, %v5439_v43  ;;  %v5524_v19 = vunpack.i.h.bf16 %v8230_v46 }
 0x1fd   : > { %5911 = vrot.lane.b32.xlu1 %v5910_v3, %s6057_s9  ;;  %v5559_v22 = vunpack.i.h.bf16 %v8463_v7  ;;  %v3160_v2 = vsel %vm3153_vm7, %v3095_v28, %v5523_v38  ;;  %v3158_v9 = vsel %vm3153_vm7, %v3093_v14, %v5518_v32  ;;  %v3159_v60 = vsel %vm3153_vm7, %v3094_v45, %v5519_v24  ;;  %v5632_v48 = vpop.permute.xlu1 %5631 }
 0x1fe   : > { %5906 = vrot.lane.b32.xlu0 %v5905_v39, %s6057_s9  ;;  %v5603_v25 = vunpack.i.l.bf16 %v8554_v29  ;;  %v5624_v35 = vunpack.i.h.bf16 %v5622_v63  ;;  %v5623_v62 = vunpack.i.l.bf16 %v5622_v63  ;;  %v5634_v3 = vunpack.i.h.bf16 %v5632_v48  ;;  %v5627_v17 = vpop.permute.xlu0 %5626 }
 0x1ff   : > { %v5633_v33 = vunpack.i.l.bf16 %v5632_v48  ;;  %v3223_v46 = vsel %vm3218_vm8, %v3158_v9, %v5613_v21  ;;  %v3224_v7 = vsel %vm3218_vm8, %v3159_v60, %v5614_v41  ;;  %v5619_v11 = vunpack.i.h.bf16 %v5617_v30  ;;  %v4445_v41 = vld [vmem:[%s6117_s24 + $0x2b1] sm:$0xff]  ;;  %v4412_v48 = vld [vmem:[%s6117_s24 + $0x169] sm:$0xff] }
 0x200   : > { %v5618_v1 = vunpack.i.l.bf16 %v5617_v30  ;;  %v3161_v13 = vsel %vm3153_vm7, %v3096_v6, %v5524_v19  ;;  %v3190_v51 = vsel %vm3153_vm7, %v3125_v8, %v5559_v22  ;;  %v3289_v36 = vsel %vm3283_vm9, %v3224_v7, %v5634_v3  ;;  %v4446_v3 = vld [vmem:[%s6117_s24 + $0x2b9] sm:$0xff] }
 0x201   : > { %5921 = vrot.lane.b32.xlu1 %v5920_v59, %s6057_s9  ;;  %v3288_v39 = vsel %vm3283_vm9, %v3223_v46, %v5633_v33  ;;  %v5604_v43 = vunpack.i.h.bf16 %v8554_v29  ;;  %v3191_v34 = vsel %vm3153_vm7, %v3126_v53, %v5603_v25  ;;  %v5608_v38 = vunpack.i.l.bf16 %v8634_v18  ;;  %v5642_v59 = vpop.permute.xlu1 %5641 }
 0x202   : > { %5916 = vrot.lane.b32.xlu0 %v5915_v49, %s6057_s9  ;;  %v3350_v24 = vpack.c.bf16 %v3289_v36, %v3288_v39  ;;  %v3225_v32 = vsel %vm3218_vm8, %v3160_v2, %v5623_v62  ;;  %v3226_v63 = vsel %vm3218_vm8, %v3161_v13, %v5624_v35  ;;  %v5644_v28 = vunpack.i.h.bf16 %v5642_v59  ;;  %v5637_v14 = vpop.permute.xlu0 %5636  ;;  %v4413_v35 = vld [vmem:[%s6117_s24 + $0x171] sm:$0xff]  ;;  %v9549_v39 = vld [vmem:[#allocation3_spill] sm:$0xff] }
 0x203   : > { %v5643_v6 = vunpack.i.l.bf16 %v5642_v59  ;;  %v3255_v45 = vsel %vm3218_vm8, %v3190_v51, %v5618_v1  ;;  %v3256_v49 = vsel %vm3218_vm8, %v3191_v34, %v5619_v11  ;;  %v5639_v29 = vunpack.i.h.bf16 %v5637_v14  ;;  %v8751_v13 = vld [vmem:[%s6117_s24 + $0x16a] sm:$0xff]  ;;  %v8762_v34 = vld [vmem:[%s6117_s24 + $0x2ba] sm:$0xff] }
 0x204   : > { %v5638_v30 = vunpack.i.l.bf16 %v5637_v14  ;;  %4591 = vmatprep.mubr.msk.bf16.mxu0 %vm3402_vm10, %v3350_v24  ;;  %v5629_v21 = vunpack.i.h.bf16 %v5627_v17  ;;  %v5628_v8 = vunpack.i.l.bf16 %v5627_v17  ;;  %v3291_v19 = vsel %vm3283_vm9, %v3226_v63, %v5644_v28  ;;  %v9550_v59 = vld [vmem:[#allocation4_spill] sm:$0xff] }
 0x205   : > { %5931 = vrot.lane.b32.xlu1 %v5930_v5, %s6054_s30  ;;  %v3290_v53 = vsel %vm3283_vm9, %v3225_v32, %v5643_v6  ;;  %v9548_v22 = vunpack.i.l.bf16 %v9535_v42  ;;  %v3321_v60 = vsel %vm3283_vm9, %v3256_v49, %v5639_v29  ;;  %v8719_v25 = vpop.permute.xlu1 %5651  ;;  %v3127_v44 = vsel %vm3088_vm6, %v8467_v37, %v5443_v61  ;;  %v4447_v37 = vld [vmem:[%s6117_s24 + $0x2c1] sm:$0xff] }
 0x206   : > { %5926 = vrot.lane.b32.xlu0 %v5925_v40, %s6054_s30  ;;  %v3351_v2 = vpack.c.bf16 %v3291_v19, %v3290_v53  ;;  %v3320_v9 = vsel %vm3283_vm9, %v3255_v45, %v5638_v30  ;;  %v3128_v31 = vsel %vm3088_vm6, %v8471_v52, %v5444_v15  ;;  %v5647_v40 = vpop.permute.xlu0 %5646  ;;  %v5950_v62 = vpack.i.bf16 %v4445_v41, %v4444_v10  ;;  %v4414_v52 = vld [vmem:[%s6117_s24 + $0x179] sm:$0xff]  ;;  %v4415_v15 = vld [vmem:[%s6117_s24 + $0x181] sm:$0xff] }
 0x207   : > { %v8715_v5 = vsel %vm3023_vm3, %v8244_v23, %v9548_v22  ;;  %v3366_v23 = vpack.c.bf16 %v3321_v60, %v3320_v9  ;;  %v3192_v33 = vsel %vm3153_vm7, %v3127_v44, %v5604_v43  ;;  %v3193_v17 = vsel %vm3153_vm7, %v3128_v31, %v5608_v38  ;;  %v4477_v43 = vld [vmem:[%s6117_s24 + $0x172] sm:$0xff]  ;;  %v8765_v38 = vld [vmem:[%s6117_s24 + $0x2c2] sm:$0xff] }
 0x208   : > { %v5649_v46 = vunpack.i.h.bf16 %v5647_v40  ;;  %v5648_v7 = vunpack.i.l.bf16 %v5647_v40  ;;  %4592 = vmatmul.mubr.msk.bf16.gmra.mrb[4].mxu0 %vm3402_vm10, %v3351_v2  ;;  %v5294_v61 = vunpack.i.h.bf16 %v9535_v42  ;;  %v3257_v11 = vsel %vm3218_vm8, %v3192_v33, %v5628_v8  ;;  %v8776_v6 = vld [vmem:[%s6117_s24 + $0x182] sm:$0xff]  ;;  %v9554_v60 = vld [vmem:[#allocation30_spill] sm:$0xff] }
 0x209   : > { %5941 = vrot.lane.b32.xlu1 %v5940_v0, %s6054_s30  ;;  %v3258_v1 = vsel %vm3218_vm8, %v3193_v17, %v5629_v21  ;;  %4623 = vmatprep.mubr.msk.bf16.mxu1 %vm3402_vm10, %v3366_v23  ;;  %v5945_v26 = vpack.i.bf16 %v4413_v35, %v4412_v48  ;;  %v4509_v0 = vld [vmem:[%s6117_s24 + $0x2b2] sm:$0xff]  ;;  %v3064_v51 = vsel %vm3023_vm3, %v8255_v56, %v5288_v55  ;;  %v5374_v36 = vunpack.i.h.bf16 %v9549_v39  ;;  %v8773_v55 = vld [vmem:[%s6117_s24 + $0x17a] sm:$0xff] }
 0x20a   : > { %5936 = vrot.lane.b32.xlu0 %v5935_v20, %s6054_s30  ;;  %v3322_v58 = vsel %vm3283_vm9, %v3257_v11, %v5648_v7  ;;  %v3323_v57 = vsel %vm3283_vm9, %v3258_v1, %v5649_v46  ;;  %v5662_v20 = vpop.permute.xlu1 %5661  ;;  %v5373_v24 = vunpack.i.l.bf16 %v9549_v39  ;;  %v5369_v32 = vunpack.i.h.bf16 %v9550_v59  ;;  %v8770_v56 = vpop.permute.xlu0 %5656  ;;  %v9553_v2 = vld [vmem:[#allocation27_spill] sm:$0xff]  ;;  %v9555_v35 = vld [vmem:[#allocation33_spill] sm:$0xff] }
 0x20b   : > { %v5368_v63 = vunpack.i.l.bf16 %v9550_v59  ;;  %v3367_v28 = vpack.c.bf16 %v3323_v57, %v3322_v58  ;;  %v3065_v14 = vsel %vm3023_vm3, %v8275_v54, %v5289_v12  ;;  %v5960_v45 = vpack.i.bf16 %v4447_v37, %v4446_v3  ;;  %v9551_v12 = vld [vmem:[#allocation61_spill] sm:$0xff] }
 0x20c   : > { %v5955_v49 = vpack.i.bf16 %v4415_v15, %v4414_v52  ;;  %v5970_v29 = vpack.i.bf16 %v4509_v0, %v8747_v47  ;;  %v5449_v30 = vunpack.i.h.bf16 %v7962_v27  ;;  %v5448_v10 = vunpack.i.l.bf16 %v7962_v27  ;;  %v9552_v27 = vld [vmem:[#allocation62_spill] sm:$0xff]  ;;  %v9556_v23 = vld [vmem:[#allocation41_spill] sm:$0xff] }
 0x20d   : > { %5951 = vrot.lane.b32.xlu1 %v5950_v62, %s6056_s8  ;;  %4624 = vmatmul.mubr.msk.bf16.gmra.mrb[4].mxu1 %vm3402_vm10, %v3367_v28  ;;  %v5965_v41 = vpack.i.bf16 %v4477_v43, %v8751_v13  ;;  %v5980_v4 = vpack.i.bf16 %v8765_v38, %v8762_v34  ;;  %v5533_v54 = vunpack.i.l.bf16 %v8269_v50  ;;  %v5529_v21 = vunpack.i.h.bf16 %v9551_v12 }
 0x20e   : > { %5946 = vrot.lane.b32.xlu0 %v5945_v26, %s6056_s8  ;;  %v5528_v8 = vunpack.i.l.bf16 %v9551_v12  ;;  %v5672_v53 = vpop.permute.xlu1 %5671  ;;  %v5975_v19 = vpack.i.bf16 %v8776_v6, %v8773_v55  ;;  %v3099_v22 = vsel %vm3088_vm6, %v9552_v27, %v5373_v24  ;;  %v3100_v9 = vsel %vm3088_vm6, %v9553_v2, %v5374_v36  ;;  %v5667_v31 = vpop.permute.xlu0 %5666 }
 0x20f   : > { %v3097_v48 = vsel %vm3088_vm6, %v9554_v60, %v5368_v63  ;;  %v3098_v44 = vsel %vm3088_vm6, %v9555_v35, %v5369_v32  ;;  %v5454_v40 = vunpack.i.h.bf16 %v9556_v23  ;;  %v5453_v62 = vunpack.i.l.bf16 %v9556_v23 }
 0x210   : > { %v5664_v3 = vunpack.i.h.bf16 %v5662_v20  ;;  %v5663_v33 = vunpack.i.l.bf16 %v5662_v20  ;;  %v3129_v17 = vsel %vm3088_vm6, %v3064_v51, %v5448_v10  ;;  %v3130_v46 = vsel %vm3088_vm6, %v3065_v14, %v5449_v30 }
 0x211   : > { %5961 = vrot.lane.b32.xlu1 %v5960_v45, %s6056_s8  ;;  %v5534_v7 = vunpack.i.h.bf16 %v8269_v50  ;;  %v5609_v37 = vunpack.i.h.bf16 %v8634_v18  ;;  %v3164_v52 = vsel %vm3153_vm7, %v3099_v22, %v5533_v54  ;;  %v3162_v15 = vsel %vm3153_vm7, %v3097_v48, %v5528_v8 }
 0x212   : > { %5956 = vrot.lane.b32.xlu0 %v5955_v49, %s6056_s8  ;;  %v3163_v11 = vsel %vm3153_vm7, %v3098_v44, %v5529_v21  ;;  %v5653_v1 = vunpack.i.l.bf16 %v8719_v25  ;;  %v5682_v26 = vpop.permute.xlu1 %5681  ;;  %v5674_v47 = vunpack.i.h.bf16 %v5672_v53  ;;  %v5673_v0 = vunpack.i.l.bf16 %v5672_v53  ;;  %v5677_v39 = vpop.permute.xlu0 %5676  ;;  %v9557_v21 = vld [vmem:[#allocation25_spill] sm:$0xff] }
 0x213   : > { %v5684_v13 = vunpack.i.h.bf16 %v5682_v26  ;;  %v5683_v51 = vunpack.i.l.bf16 %v5682_v26  ;;  %v3227_v50 = vsel %vm3218_vm8, %v3162_v15, %v5663_v33  ;;  %v3228_v18 = vsel %vm3218_vm8, %v3163_v11, %v5664_v3  ;;  %v9558_v44 = vld [vmem:[#allocation9_spill] sm:$0xff]  ;;  %v9561_v26 = vld [vmem:[#allocation51_spill] sm:$0xff] }
 0x214   : > { %v5669_v36 = vunpack.i.h.bf16 %v5667_v31  ;;  %v5668_v58 = vunpack.i.l.bf16 %v5667_v31  ;;  %v3165_v57 = vsel %vm3153_vm7, %v3100_v9, %v5534_v7  ;;  %v3194_v20 = vsel %vm3153_vm7, %v3129_v17, %v5609_v37  ;;  %v9560_v37 = vld [vmem:[#allocation21_spill] sm:$0xff] }
 0x215   : > { %5971 = vrot.lane.b32.xlu1 %v5970_v29, %s6057_s9  ;;  %v3292_v43 = vsel %vm3283_vm9, %v3227_v50, %v5683_v51  ;;  %v3293_v34 = vsel %vm3283_vm9, %v3228_v18, %v5684_v13  ;;  %v5654_v38 = vunpack.i.h.bf16 %v8719_v25  ;;  %v3195_v24 = vsel %vm3153_vm7, %v3130_v46, %v5653_v1  ;;  %v6007_v13 = vld [vmem:[%s6117_s24 + $0x78] sm:$0xff]  ;;  %v9562_v18 = vld [vmem:[#allocation5_spill] sm:$0xff] }
 0x216   : > { %5966 = vrot.lane.b32.xlu0 %v5965_v41, %s6057_s9  ;;  %v5658_v59 = vunpack.i.l.bf16 %v8770_v56  ;;  %v3352_v32 = vpack.c.bf16 %v3293_v34, %v3292_v43  ;;  %v5692_v63 = vpop.permute.xlu1 %5691  ;;  %v3229_v28 = vsel %vm3218_vm8, %v3164_v52, %v5673_v0  ;;  %v3230_v55 = vsel %vm3218_vm8, %v3165_v57, %v5674_v47  ;;  %v5687_v45 = vpop.permute.xlu0 %5686  ;;  %v9563_v43 = vld [vmem:[#allocation28_spill] sm:$0xff] }
 0x217   : > { %v5694_v6 = vunpack.i.h.bf16 %v5692_v63  ;;  %v5693_v14 = vunpack.i.l.bf16 %v5692_v63  ;;  %v3259_v49 = vsel %vm3218_vm8, %v3194_v20, %v5668_v58  ;;  %v3260_v29 = vsel %vm3218_vm8, %v3195_v24, %v5669_v36 }
 0x218   : > { %v5689_v30 = vunpack.i.h.bf16 %v5687_v45  ;;  %v5688_v10 = vunpack.i.l.bf16 %v5687_v45  ;;  %4595 = vmatprep.mubr.msk.bf16.mxu0 %vm3402_vm10, %v3352_v32  ;;  %v5679_v25 = vunpack.i.h.bf16 %v5677_v39  ;;  %v5678_v41 = vunpack.i.l.bf16 %v5677_v39  ;;  %v6008_v39 = vld [vmem:[%s6117_s24 + $0x80] sm:$0xff]  ;;  %s9102_s24 = scalar_lea.vmem %s9226_s3, %s4121_s21 }
 0x219   : > { %5981 = vrot.lane.b32.xlu1 %v5980_v4, %s6057_s9  ;;  %v3294_v54 = vsel %vm3283_vm9, %v3229_v28, %v5693_v14  ;;  %v3295_v12 = vsel %vm3283_vm9, %v3230_v55, %v5694_v6  ;;  %v3067_v8 = vsel %vm3023_vm3, %v9557_v21, %v5294_v61  ;;  %v3131_v2 = vsel %vm3088_vm6, %v8715_v5, %v5453_v62 }
 0x21a   : > { %5976 = vrot.lane.b32.xlu0 %v5975_v19, %s6057_s9  ;;  %v3353_v53 = vpack.c.bf16 %v3295_v12, %v3294_v54  ;;  %v3324_v27 = vsel %vm3283_vm9, %v3259_v49, %v5688_v10  ;;  %v3325_v4 = vsel %vm3283_vm9, %v3260_v29, %v5689_v30  ;;  %v8842_v22 = vpop.permute.xlu1 %5701  ;;  %v3132_v9 = vsel %vm3088_vm6, %v3067_v8, %v5454_v40  ;;  %v5697_v48 = vpop.permute.xlu0 %5696  ;;  %v9559_v40 = vld [vmem:[#allocation42_spill] sm:$0xff] }
 0x21b   : > { %v3368_v60 = vpack.c.bf16 %v3325_v4, %v3324_v27  ;;  %v3196_v19 = vsel %vm3153_vm7, %v3131_v2, %v5654_v38  ;;  %v3197_v42 = vsel %vm3153_vm7, %v3132_v9, %v5658_v59  ;;  %v5699_v35 = vunpack.i.h.bf16 %v5697_v48 }
 0x21c   : > { %v5698_v61 = vunpack.i.l.bf16 %v5697_v48  ;;  %4596 = vmatmul.mubr.msk.bf16.gmra.mrb[8].mxu0 %vm3402_vm10, %v3353_v53  ;;  %v4739_v31 = vunpack.i.h.bf16 %v9558_v44  ;;  %v4738_v23 = vunpack.i.l.bf16 %v9558_v44  ;;  %v3261_v3 = vsel %vm3218_vm8, %v3196_v19, %v5678_v41 }
 0x21d   : > { %v3262_v5 = vsel %vm3218_vm8, %v3197_v42, %v5679_v25  ;;  %4627 = vmatprep.mubr.msk.bf16.mxu1 %vm3402_vm10, %v3368_v60  ;;  %v4899_v62 = vunpack.i.h.bf16 %v9559_v40  ;;  %v4898_v33 = vunpack.i.l.bf16 %v9559_v40  ;;  %v5059_v52 = vunpack.i.h.bf16 %v9560_v37  ;;  %v9564_v60 = vld [vmem:[#allocation45_spill] sm:$0xff]  ;;  %v9567_v40 = vld [vmem:[#allocation36_spill] sm:$0xff] }
 0x21e   : > { %v3326_v17 = vsel %vm3283_vm9, %v3261_v3, %v5698_v61  ;;  %v3327_v46 = vsel %vm3283_vm9, %v3262_v5, %v5699_v35  ;;  %v5712_v7 = vpop.permute.xlu1 %5711  ;;  %v5058_v15 = vunpack.i.l.bf16 %v9560_v37  ;;  %v8861_v1 = vpop.permute.xlu0 %5706  ;;  %v5219_v47 = vunpack.i.h.bf16 %v9561_v26  ;;  %v9565_v35 = vld [vmem:[#allocation46_spill] sm:$0xff] }
 0x21f   : > { %v3369_v11 = vpack.c.bf16 %v3327_v46, %v3326_v17  ;;  %v5218_v0 = vunpack.i.l.bf16 %v9561_v26  ;;  %v2841_v51 = vsel %vm2828_vm0, %v6007_v13, %v4738_v23  ;;  %v2842_v50 = vsel %vm2828_vm0, %v6008_v39, %v4739_v31  ;;  %v9566_v3 = vld [vmem:[#allocation34_spill] sm:$0xff] }
 0x220   : > { %v5379_v36 = vunpack.i.h.bf16 %v9562_v18  ;;  %v5378_v58 = vunpack.i.l.bf16 %v9562_v18  ;;  %v2906_v57 = vsel %vm2893_vm1, %v2841_v51, %v4898_v33  ;;  %v2907_v20 = vsel %vm2893_vm1, %v2842_v50, %v4899_v62 }
 0x221   : > { %4628 = vmatmul.mubr.msk.bf16.gmra.mrb[8].mxu1 %vm3402_vm10, %v3369_v11  ;;  %v5539_v34 = vunpack.i.h.bf16 %v9563_v43  ;;  %v5538_v38 = vunpack.i.l.bf16 %v9563_v43  ;;  %v2971_v59 = vsel %vm2958_vm2, %v2906_v57, %v5058_v15  ;;  %v2972_v32 = vsel %vm2958_vm2, %v2907_v20, %v5059_v52  ;;  %v9569_v57 = vld [vmem:[#allocation44_spill] sm:$0xff] }
 0x222   : > { %v5722_v24 = vpop.permute.xlu1 %5721  ;;  %v5717_v63 = vpop.permute.xlu0 %5716  ;;  %v3036_v28 = vsel %vm3023_vm3, %v2971_v59, %v5218_v0  ;;  %v3037_v55 = vsel %vm3023_vm3, %v2972_v32, %v5219_v47  ;;  %v5714_v6 = vunpack.i.h.bf16 %v5712_v7  ;;  %v5713_v14 = vunpack.i.l.bf16 %v5712_v7 }
 0x223   : > { %v3101_v45 = vsel %vm3088_vm6, %v3036_v28, %v5378_v58  ;;  %v3102_v49 = vsel %vm3088_vm6, %v3037_v55, %v5379_v36  ;;  %v5659_v29 = vunpack.i.h.bf16 %v8770_v56  ;;  %v5703_v25 = vunpack.i.l.bf16 %v8842_v22  ;;  %v9568_v36 = vld [vmem:[#allocation43_spill] sm:$0xff] }
 0x224   : > { %v3166_v30 = vsel %vm3153_vm7, %v3101_v45, %v5538_v38  ;;  %v3167_v10 = vsel %vm3153_vm7, %v3102_v49, %v5539_v34  ;;  %v5724_v54 = vunpack.i.h.bf16 %v5722_v24  ;;  %v5723_v12 = vunpack.i.l.bf16 %v5722_v24 }
 0x225   : > { %v3231_v27 = vsel %vm3218_vm8, %v3166_v30, %v5713_v14  ;;  %v3232_v4 = vsel %vm3218_vm8, %v3167_v10, %v5714_v6  ;;  %v5719_v2 = vunpack.i.h.bf16 %v5717_v63  ;;  %v5718_v9 = vunpack.i.l.bf16 %v5717_v63 }
 0x226   : > { %v5732_v41 = vpop.permute.xlu1 %5731  ;;  %v5727_v53 = vpop.permute.xlu0 %5726  ;;  %v3198_v56 = vsel %vm3153_vm7, %v9564_v60, %v5659_v29  ;;  %v5704_v42 = vunpack.i.h.bf16 %v8842_v22  ;;  %v3199_v61 = vsel %vm3153_vm7, %v9565_v35, %v5703_v25  ;;  %v5708_v44 = vunpack.i.l.bf16 %v8861_v1 }
 0x227   : > { %v5734_v21 = vunpack.i.h.bf16 %v5732_v41  ;;  %v5733_v8 = vunpack.i.l.bf16 %v5732_v41  ;;  %v3233_v5 = vsel %vm3218_vm8, %v9566_v3, %v5723_v12  ;;  %v3234_v62 = vsel %vm3218_vm8, %v9567_v40, %v5724_v54 }
 0x228   : > { %v3263_v7 = vsel %vm3218_vm8, %v3198_v56, %v5718_v9  ;;  %v3264_v22 = vsel %vm3218_vm8, %v3199_v61, %v5719_v2  ;;  %v5729_v15 = vunpack.i.h.bf16 %v5727_v53  ;;  %v5728_v11 = vunpack.i.l.bf16 %v5727_v53  ;;  %v9570_v53 = vld [vmem:[#allocation12_spill] sm:$0xff]  ;;  %v9572_v9 = vld [vmem:[#allocation18_spill] sm:$0xff] }
 0x229   : > { %v3296_v48 = vsel %vm3283_vm9, %v3231_v27, %v5733_v8  ;;  %v3297_v19 = vsel %vm3283_vm9, %v3232_v4, %v5734_v21  ;;  %v3200_v58 = vsel %vm3153_vm7, %v9568_v36, %v5704_v42  ;;  %v3201_v20 = vsel %vm3153_vm7, %v9569_v57, %v5708_v44  ;;  %v9571_v4 = vld [vmem:[#allocation29_spill] sm:$0xff]  ;;  %v9574_v42 = vld [vmem:[#allocation48_spill] sm:$0xff] }
 0x22a   : > { %v3354_v31 = vpack.c.bf16 %v3297_v19, %v3296_v48  ;;  %v5742_v23 = vpop.permute.xlu1 %5741  ;;  %v5737_v46 = vpop.permute.xlu0 %5736  ;;  %v3265_v38 = vsel %vm3218_vm8, %v3200_v58, %v5728_v11  ;;  %v3266_v24 = vsel %vm3218_vm8, %v3201_v20, %v5729_v15  ;;  %v5709_v45 = vunpack.i.h.bf16 %v8861_v1  ;;  %v9573_v48 = vld [vmem:[#allocation47_spill] sm:$0xff]  ;;  %v9575_v11 = vld [vmem:[#allocation8_spill] sm:$0xff] }
 0x22b   : > { %v5744_v33 = vunpack.i.h.bf16 %v5742_v23  ;;  %v5743_v17 = vunpack.i.l.bf16 %v5742_v23  ;;  %v5739_v37 = vunpack.i.h.bf16 %v5737_v46  ;;  %v5738_v52 = vunpack.i.l.bf16 %v5737_v46 }
 0x22c   : > { %4599 = vmatprep.mubr.msk.bf16.mxu0 %vm3402_vm10, %v3354_v31  ;;  %v3171_v27 = vsel %vm3153_vm7, %v9570_v53, %v5709_v45 }
 0x22d   : > { %v3298_v26 = vsel %vm3283_vm9, %v3233_v5, %v5743_v17  ;;  %v3299_v47 = vsel %vm3283_vm9, %v3234_v62, %v5744_v33  ;;  %v3328_v13 = vsel %vm3283_vm9, %v3263_v7, %v5738_v52  ;;  %v3329_v51 = vsel %vm3283_vm9, %v3264_v22, %v5739_v37 }
 0x22e   : > { %v3355_v0 = vpack.c.bf16 %v3299_v47, %v3298_v26  ;;  %v5752_v39 = vpop.permute.xlu1 %5751  ;;  %v3370_v50 = vpack.c.bf16 %v3329_v51, %v3328_v13  ;;  %v5747_v18 = vpop.permute.xlu0 %5746  ;;  %v9576_v51 = vld [vmem:[#allocation10_spill] sm:$0xff] }
 0x22f   : > { %v5749_v43 = vunpack.i.h.bf16 %v5747_v18  ;;  %v5748_v34 = vunpack.i.l.bf16 %v5747_v18  ;;  %v5754_v49 = vunpack.i.h.bf16 %v5752_v39  ;;  %v5753_v29 = vunpack.i.l.bf16 %v5752_v39 }
 0x230   : > { %4600 = vmatmul.mubr.msk.bf16.gmra.mrb[12].mxu0 %vm3402_vm10, %v3355_v0  ;;  %4631 = vmatprep.mubr.msk.bf16.mxu1 %vm3402_vm10, %v3370_v50 }
 0x231   : > { %v3330_v59 = vsel %vm3283_vm9, %v3265_v38, %v5748_v34  ;;  %v3331_v32 = vsel %vm3283_vm9, %v3266_v24, %v5749_v43  ;;  %v3202_v2 = vsel %vm3153_vm7, %v9571_v4, %v5753_v29  ;;  %v3203_v60 = vsel %vm3153_vm7, %v9572_v9, %v5754_v49 }
 0x232   : > { %v5762_v63 = vpop.permute.xlu1 %5761  ;;  %v3371_v28 = vpack.c.bf16 %v3331_v32, %v3330_v59  ;;  %v5757_v55 = vpop.permute.xlu0 %5756 }
 0x233   : > { %v5764_v30 = vunpack.i.h.bf16 %v5762_v63  ;;  %v5763_v10 = vunpack.i.l.bf16 %v5762_v63  ;;  %v5759_v1 = vunpack.i.h.bf16 %v5757_v55  ;;  %v5758_v56 = vunpack.i.l.bf16 %v5757_v55 }
 0x234   : > { %4632 = vmatmul.mubr.msk.bf16.gmra.mrb[12].mxu1 %vm3402_vm10, %v3371_v28 }
 0x235   : > { %v3204_v19 = vsel %vm3153_vm7, %v9573_v48, %v5763_v10  ;;  %v3205_v35 = vsel %vm3153_vm7, %v9574_v42, %v5764_v30  ;;  %v3172_v26 = vsel %vm3153_vm7, %v9575_v11, %v5758_v56  ;;  %v3173_v39 = vsel %vm3153_vm7, %v9576_v51, %v5759_v1  ;;  %v9577_v1 = vld [vmem:[#allocation17_spill] sm:$0xff]  ;;  %v9578_v48 = vld [vmem:[#allocation20_spill] sm:$0xff]  ;;  %v9579_v42 = vld [vmem:[#allocation26_spill] sm:$0xff] }
 0x236   : > { %v5772_v6 = vpop.permute.xlu1 %5771  ;;  %v5767_v14 = vpop.permute.xlu0 %5766 }
 0x237   : > { %v5774_v25 = vunpack.i.h.bf16 %v5772_v6  ;;  %v5773_v41 = vunpack.i.l.bf16 %v5772_v6  ;;  %v5769_v12 = vunpack.i.h.bf16 %v5767_v14  ;;  %v5768_v21 = vunpack.i.l.bf16 %v5767_v14 }
 0x239   : > { %v3267_v61 = vsel %vm3218_vm8, %v3202_v2, %v5773_v41  ;;  %v3268_v44 = vsel %vm3218_vm8, %v3203_v60, %v5774_v25  ;;  %v3235_v23 = vsel %vm3218_vm8, %v8457_v16, %v5768_v21  ;;  %v3236_v3 = vsel %vm3218_vm8, %v3171_v27, %v5769_v12 }
 0x23a   : > { %v5782_v54 = vpop.permute.xlu1 %5781  ;;  %v5777_v8 = vpop.permute.xlu0 %5776 }
 0x23b   : > { %v5784_v33 = vunpack.i.h.bf16 %v5782_v54  ;;  %v5783_v17 = vunpack.i.l.bf16 %v5782_v54  ;;  %v5779_v22 = vunpack.i.h.bf16 %v5777_v8  ;;  %v5778_v37 = vunpack.i.l.bf16 %v5777_v8 }
 0x23d   : > { %v3269_v57 = vsel %vm3218_vm8, %v3204_v19, %v5783_v17  ;;  %v3270_v20 = vsel %vm3218_vm8, %v3205_v35, %v5784_v33  ;;  %v3237_v38 = vsel %vm3218_vm8, %v3172_v26, %v5778_v37  ;;  %v3238_v24 = vsel %vm3218_vm8, %v3173_v39, %v5779_v22 }
 0x23e   : > { %v5792_v31 = vpop.permute.xlu1 %5791  ;;  %v5787_v62 = vpop.permute.xlu0 %5786 }
 0x23f   : > { %v5794_v5 = vunpack.i.h.bf16 %v5792_v31  ;;  %v5793_v40 = vunpack.i.l.bf16 %v5792_v31  ;;  %v5789_v46 = vunpack.i.h.bf16 %v5787_v62  ;;  %v5788_v7 = vunpack.i.l.bf16 %v5787_v62 }
 0x241   : > { %v3332_v52 = vsel %vm3283_vm9, %v3267_v61, %v5793_v40  ;;  %v3333_v15 = vsel %vm3283_vm9, %v3268_v44, %v5794_v5  ;;  %v3300_v16 = vsel %vm3283_vm9, %v3235_v23, %v5788_v7  ;;  %v3301_v0 = vsel %vm3283_vm9, %v3236_v3, %v5789_v46  ;;  %v9580_v61 = vld [vmem:[#allocation68_spill] sm:$0xff]  ;;  %v9581_v3 = vld [vmem:[#allocation19_spill] sm:$0xff] }
 0x242   : > { %v3372_v47 = vpack.c.bf16 %v3333_v15, %v3332_v52  ;;  %v5802_v13 = vpop.permute.xlu1 %5801  ;;  %v3356_v50 = vpack.c.bf16 %v3301_v0, %v3300_v16  ;;  %v5797_v58 = vpop.permute.xlu0 %5796  ;;  %v9582_v40 = vld [vmem:[#allocation16_spill] sm:$0xff] }
 0x243   : > { %v5804_v18 = vunpack.i.h.bf16 %v5802_v13  ;;  %v5803_v36 = vunpack.i.l.bf16 %v5802_v13  ;;  %v5799_v43 = vunpack.i.h.bf16 %v5797_v58  ;;  %v5798_v34 = vunpack.i.l.bf16 %v5797_v58 }
 0x244   : > { %4635 = vmatprep.mubr.msk.bf16.mxu1 %vm3402_vm10, %v3372_v47  ;;  %4603 = vmatprep.mubr.msk.bf16.mxu0 %vm3402_vm10, %v3356_v50  ;;  %v9583_v50 = vld [vmem:[#allocation13_spill] sm:$0xff] }
 0x245   : > { %v3334_v59 = vsel %vm3283_vm9, %v3269_v57, %v5803_v36  ;;  %v3335_v32 = vsel %vm3283_vm9, %v3270_v20, %v5804_v18  ;;  %v3302_v28 = vsel %vm3283_vm9, %v3237_v38, %v5798_v34  ;;  %v3303_v55 = vsel %vm3283_vm9, %v3238_v24, %v5799_v43  ;;  %v9584_v43 = vld [vmem:[#allocation67_spill] sm:$0xff] }
 0x246   : > { %v3373_v63 = vpack.c.bf16 %v3335_v32, %v3334_v59  ;;  %v5812_v6 = vpop.permute.xlu1 %5811  ;;  %v3357_v14 = vpack.c.bf16 %v3303_v55, %v3302_v28  ;;  %v5807_v45 = vpop.permute.xlu0 %5806 }
 0x247   : > { %v5814_v25 = vunpack.i.h.bf16 %v5812_v6  ;;  %v5813_v41 = vunpack.i.l.bf16 %v5812_v6  ;;  %v5809_v54 = vunpack.i.h.bf16 %v5807_v45  ;;  %v5808_v12 = vunpack.i.l.bf16 %v5807_v45 }
 0x248   : > { %4636 = vmatmul.mubr.msk.bf16.gmra.mrb[16].mxu1 %vm3402_vm10, %v3373_v63  ;;  %4604 = vmatmul.mubr.msk.bf16.gmra.mrb[16].mxu0 %vm3402_vm10, %v3357_v14 }
 0x249   : > { %v3206_v56 = vsel %vm3153_vm7, %v9577_v1, %v5813_v41  ;;  %v3207_v19 = vsel %vm3153_vm7, %v9578_v48, %v5814_v25  ;;  %v3174_v35 = vsel %vm3153_vm7, %v9579_v42, %v5808_v12  ;;  %v3175_v44 = vsel %vm3153_vm7, %v9580_v61, %v5809_v54 }
 0x24a   : > { %v5822_v49 = vpop.permute.xlu1 %5821  ;;  %v5817_v29 = vpop.permute.xlu0 %5816 }
 0x24b   : > { %v5824_v21 = vunpack.i.h.bf16 %v5822_v49  ;;  %v5823_v8 = vunpack.i.l.bf16 %v5822_v49  ;;  %v5819_v31 = vunpack.i.h.bf16 %v5817_v29  ;;  %v5818_v23 = vunpack.i.l.bf16 %v5817_v29 }
 0x24d   : > { %v3208_v5 = vsel %vm3153_vm7, %v9581_v3, %v5823_v8  ;;  %v3209_v62 = vsel %vm3153_vm7, %v9582_v40, %v5824_v21  ;;  %v3176_v18 = vsel %vm3153_vm7, %v9583_v50, %v5818_v23  ;;  %v3177_v34 = vsel %vm3153_vm7, %v9584_v43, %v5819_v31  ;;  %v9585_v31 = vld [vmem:[#allocation72_spill] sm:$0xff]  ;;  %v9586_v3 = vld [vmem:[#allocation58_spill] sm:$0xff]  ;;  %v9587_v40 = vld [vmem:[#allocation31_spill] sm:$0xff] }
 0x24e   : > { %v5832_v30 = vpop.permute.xlu1 %5831  ;;  %v5827_v10 = vpop.permute.xlu0 %5826 }
 0x24f   : > { %v5834_v53 = vunpack.i.h.bf16 %v5832_v30  ;;  %v5833_v27 = vunpack.i.l.bf16 %v5832_v30  ;;  %v5829_v2 = vunpack.i.h.bf16 %v5827_v10  ;;  %v5828_v9 = vunpack.i.l.bf16 %v5827_v10 }
 0x251   : > { %v3271_v33 = vsel %vm3218_vm8, %v3206_v56, %v5833_v27  ;;  %v3272_v17 = vsel %vm3218_vm8, %v3207_v19, %v5834_v53  ;;  %v3239_v7 = vsel %vm3218_vm8, %v3174_v35, %v5828_v9  ;;  %v3240_v22 = vsel %vm3218_vm8, %v3175_v44, %v5829_v2 }
 0x252   : > { %v5842_v4 = vpop.permute.xlu1 %5841  ;;  %v5837_v60 = vpop.permute.xlu0 %5836 }
 0x253   : > { %v5844_v11 = vunpack.i.h.bf16 %v5842_v4  ;;  %v5843_v26 = vunpack.i.l.bf16 %v5842_v4  ;;  %v5839_v0 = vunpack.i.h.bf16 %v5837_v60  ;;  %v5838_v13 = vunpack.i.l.bf16 %v5837_v60 }
 0x255   : > { %v3273_v63 = vsel %vm3218_vm8, %v3208_v5, %v5843_v26  ;;  %v3274_v28 = vsel %vm3218_vm8, %v3209_v62, %v5844_v11  ;;  %v3241_v14 = vsel %vm3218_vm8, %v3176_v18, %v5838_v13  ;;  %v3242_v45 = vsel %vm3218_vm8, %v3177_v34, %v5839_v0 }
 0x256   : > { %v5852_v46 = vpop.permute.xlu1 %5851  ;;  %v5847_v15 = vpop.permute.xlu0 %5846 }
 0x257   : > { %v5854_v37 = vunpack.i.h.bf16 %v5852_v46  ;;  %v5853_v52 = vunpack.i.l.bf16 %v5852_v46  ;;  %v5849_v47 = vunpack.i.h.bf16 %v5847_v15  ;;  %v5848_v16 = vunpack.i.l.bf16 %v5847_v15 }
 0x259   : > { %v3336_v51 = vsel %vm3283_vm9, %v3271_v33, %v5853_v52  ;;  %v3337_v39 = vsel %vm3283_vm9, %v3272_v17, %v5854_v37  ;;  %v3304_v58 = vsel %vm3283_vm9, %v3239_v7, %v5848_v16  ;;  %v3305_v57 = vsel %vm3283_vm9, %v3240_v22, %v5849_v47  ;;  %v9588_v33 = vld [vmem:[#allocation15_spill] sm:$0xff] }
 0x25a   : > { %v3374_v36 = vpack.c.bf16 %v3337_v39, %v3336_v51  ;;  %v5862_v20 = vpop.permute.xlu1 %5861  ;;  %v3358_v38 = vpack.c.bf16 %v3305_v57, %v3304_v58  ;;  %v5857_v32 = vpop.permute.xlu0 %5856  ;;  %v9589_v22 = vld [vmem:[#allocation23_spill] sm:$0xff] }
 0x25b   : > { %v5864_v24 = vunpack.i.h.bf16 %v5862_v20  ;;  %v5863_v59 = vunpack.i.l.bf16 %v5862_v20  ;;  %v5859_v55 = vunpack.i.h.bf16 %v5857_v32  ;;  %v5858_v6 = vunpack.i.l.bf16 %v5857_v32  ;;  %v9590_v52 = vld [vmem:[#allocation71_spill] sm:$0xff] }
 0x25c   : > { %4639 = vmatprep.mubr.msk.bf16.mxu1 %vm3402_vm10, %v3374_v36  ;;  %4607 = vmatprep.mubr.msk.bf16.mxu0 %vm3402_vm10, %v3358_v38  ;;  %v9591_v38 = vld [vmem:[#allocation14_spill] sm:$0xff] }
 0x25d   : > { %v3338_v49 = vsel %vm3283_vm9, %v3273_v63, %v5863_v59  ;;  %v3339_v29 = vsel %vm3283_vm9, %v3274_v28, %v5864_v24  ;;  %v3306_v10 = vsel %vm3283_vm9, %v3241_v14, %v5858_v6  ;;  %v3307_v25 = vsel %vm3283_vm9, %v3242_v45, %v5859_v55  ;;  %v9592_v55 = vld [vmem:[#allocation69_spill] sm:$0xff] }
 0x25e   : > { %v3375_v30 = vpack.c.bf16 %v3339_v29, %v3338_v49  ;;  %v5872_v41 = vpop.permute.xlu1 %5871  ;;  %v3359_v54 = vpack.c.bf16 %v3307_v25, %v3306_v10 }
 0x25f   : > { %v5867_v12 = vpop.permute.xlu0 %5866  ;;  %v5874_v4 = vunpack.i.h.bf16 %v5872_v41  ;;  %v5873_v2 = vunpack.i.l.bf16 %v5872_v41 }
 0x260   : > { %4640 = vmatmul.mubr.msk.bf16.gmra.mrb[20].mxu1 %vm3402_vm10, %v3375_v30  ;;  %4608 = vmatmul.mubr.msk.bf16.gmra.mrb[20].mxu0 %vm3402_vm10, %v3359_v54  ;;  %v5869_v9 = vunpack.i.h.bf16 %v5867_v12  ;;  %v5868_v60 = vunpack.i.l.bf16 %v5867_v12 }
 0x261   : > { %v3210_v23 = vsel %vm3153_vm7, %v9585_v31, %v5873_v2  ;;  %v3211_v5 = vsel %vm3153_vm7, %v9586_v3, %v5874_v4 }
 0x262   : > { %v5882_v21 = vpop.permute.xlu1 %5881  ;;  %v3178_v62 = vsel %vm3153_vm7, %v9587_v40, %v5868_v60  ;;  %v3179_v17 = vsel %vm3153_vm7, %v9588_v33, %v5869_v9 }
 0x263   : > { %v5877_v8 = vpop.permute.xlu0 %5876  ;;  %v5884_v1 = vunpack.i.h.bf16 %v5882_v21  ;;  %v5883_v56 = vunpack.i.l.bf16 %v5882_v21 }
 0x264   : > { %v5879_v46 = vunpack.i.h.bf16 %v5877_v8  ;;  %v5878_v7 = vunpack.i.l.bf16 %v5877_v8 }
 0x265   : > { %v3212_v37 = vsel %vm3153_vm7, %v9589_v22, %v5883_v56  ;;  %v3213_v15 = vsel %vm3153_vm7, %v9590_v52, %v5884_v1  ;;  %v9594_v22 = vld [vmem:[#allocation60_spill] sm:$0xff]  ;;  %v9595_v52 = vld [vmem:[#allocation38_spill] sm:$0xff] }
 0x266   : > { %v3180_v24 = vsel %vm3153_vm7, %v9591_v38, %v5878_v7  ;;  %v3181_v6 = vsel %vm3153_vm7, %v9592_v55, %v5879_v46  ;;  %v9593_v46 = vld [vmem:[#allocation59_spill] sm:$0xff] }
 0x267   : > { %v5892_v53 = vpop.permute.xlu1 %5891 }
 0x268   : > { %v5887_v27 = vpop.permute.xlu0 %5886  ;;  %v5894_v48 = vunpack.i.h.bf16 %v5892_v53  ;;  %v5893_v19 = vunpack.i.l.bf16 %v5892_v53 }
 0x269   : > { %v5889_v35 = vunpack.i.h.bf16 %v5887_v27  ;;  %v5888_v61 = vunpack.i.l.bf16 %v5887_v27 }
 0x26a   : > { %v3275_v11 = vsel %vm3218_vm8, %v3210_v23, %v5893_v19  ;;  %v3276_v26 = vsel %vm3218_vm8, %v3211_v5, %v5894_v48 }
 0x26b   : > { %v5902_v42 = vpop.permute.xlu1 %5901  ;;  %v3243_v16 = vsel %vm3218_vm8, %v3178_v62, %v5888_v61  ;;  %v3244_v0 = vsel %vm3218_vm8, %v3179_v17, %v5889_v35 }
 0x26c   : > { %v5897_v44 = vpop.permute.xlu0 %5896  ;;  %v5904_v50 = vunpack.i.h.bf16 %v5902_v42  ;;  %v5903_v18 = vunpack.i.l.bf16 %v5902_v42 }
 0x26d   : > { %v5899_v57 = vunpack.i.h.bf16 %v5897_v44  ;;  %v5898_v20 = vunpack.i.l.bf16 %v5897_v44 }
 0x26e   : > { %v3277_v30 = vsel %vm3218_vm8, %v3212_v37, %v5903_v18  ;;  %v3278_v10 = vsel %vm3218_vm8, %v3213_v15, %v5904_v50 }
 0x26f   : > { %v5912_v47 = vpop.permute.xlu1 %5911  ;;  %v3245_v54 = vsel %vm3218_vm8, %v3180_v24, %v5898_v20  ;;  %v3246_v12 = vsel %vm3218_vm8, %v3181_v6, %v5899_v57 }
 0x270   : > { %v5914_v13 = vunpack.i.h.bf16 %v5912_v47  ;;  %v5913_v51 = vunpack.i.l.bf16 %v5912_v47  ;;  %v5907_v39 = vpop.permute.xlu0 %5906 }
 0x271   : > { %v5909_v36 = vunpack.i.h.bf16 %v5907_v39  ;;  %v5908_v58 = vunpack.i.l.bf16 %v5907_v39 }
 0x272   : > { %v3340_v43 = vsel %vm3283_vm9, %v3275_v11, %v5913_v51  ;;  %v3341_v34 = vsel %vm3283_vm9, %v3276_v26, %v5914_v13  ;;  %v9596_v11 = vld [vmem:[#allocation70_spill] sm:$0xff]  ;;  %v9598_v51 = vld [vmem:[#allocation24_spill] sm:$0xff] }
 0x273   : > { %v3376_v59 = vpack.c.bf16 %v3341_v34, %v3340_v43  ;;  %v3308_v32 = vsel %vm3283_vm9, %v3243_v16, %v5908_v58  ;;  %v3309_v63 = vsel %vm3283_vm9, %v3244_v0, %v5909_v36  ;;  %v5922_v28 = vpop.permute.xlu1 %5921  ;;  %v9597_v0 = vld [vmem:[#allocation22_spill] sm:$0xff] }
 0x274   : > { %v3360_v14 = vpack.c.bf16 %v3309_v63, %v3308_v32  ;;  %v5924_v45 = vunpack.i.h.bf16 %v5922_v28  ;;  %v5923_v49 = vunpack.i.l.bf16 %v5922_v28  ;;  %v5917_v29 = vpop.permute.xlu0 %5916 }
 0x275   : > { %v5919_v25 = vunpack.i.h.bf16 %v5917_v29  ;;  %v5918_v41 = vunpack.i.l.bf16 %v5917_v29  ;;  %4643 = vmatprep.mubr.msk.bf16.mxu1 %vm3402_vm10, %v3376_v59 }
 0x276   : > { %v3342_v21 = vsel %vm3283_vm9, %v3277_v30, %v5923_v49  ;;  %v3343_v8 = vsel %vm3283_vm9, %v3278_v10, %v5924_v45  ;;  %4611 = vmatprep.mubr.msk.bf16.mxu0 %vm3402_vm10, %v3360_v14  ;;  %v9599_v14 = vld [vmem:[#allocation32_spill] sm:$0xff] }
 0x277   : > { %v3377_v53 = vpack.c.bf16 %v3343_v8, %v3342_v21  ;;  %v3310_v27 = vsel %vm3283_vm9, %v3245_v54, %v5918_v41  ;;  %v3311_v4 = vsel %vm3283_vm9, %v3246_v12, %v5919_v25  ;;  %v5932_v2 = vpop.permute.xlu1 %5931  ;;  %v9600_v25 = vld [vmem:[#allocation35_spill] sm:$0xff] }
 0x278   : > { %v3361_v9 = vpack.c.bf16 %v3311_v4, %v3310_v27  ;;  %v5927_v60 = vpop.permute.xlu0 %5926  ;;  %v5934_v42 = vunpack.i.h.bf16 %v5932_v2  ;;  %v5933_v35 = vunpack.i.l.bf16 %v5932_v2 }
 0x279   : > { %4644 = vmatmul.mubr.msk.bf16.gmra.mrb[24].mxu1 %vm3402_vm10, %v3377_v53  ;;  %v5929_v61 = vunpack.i.h.bf16 %v5927_v60  ;;  %v5928_v44 = vunpack.i.l.bf16 %v5927_v60 }
 0x27a   : > { %4612 = vmatmul.mubr.msk.bf16.gmra.mrb[24].mxu0 %vm3402_vm10, %v3361_v9  ;;  %v3214_v7 = vsel %vm3153_vm7, %v9593_v46, %v5933_v35  ;;  %v3215_v37 = vsel %vm3153_vm7, %v9594_v22, %v5934_v42 }
 0x27b   : > { %v5942_v1 = vpop.permute.xlu1 %5941  ;;  %v3182_v15 = vsel %vm3153_vm7, %v9595_v52, %v5928_v44  ;;  %v3183_v26 = vsel %vm3153_vm7, %v9596_v11, %v5929_v61 }
 0x27c   : > { %v5937_v56 = vpop.permute.xlu0 %5936  ;;  %v5944_v31 = vunpack.i.h.bf16 %v5942_v1  ;;  %v5943_v23 = vunpack.i.l.bf16 %v5942_v1 }
 0x27d   : > { %v5939_v47 = vunpack.i.h.bf16 %v5937_v56  ;;  %v5938_v16 = vunpack.i.l.bf16 %v5937_v56 }
 0x27e   : > { %v3216_v13 = vsel %vm3153_vm7, %v9597_v0, %v5943_v23  ;;  %v3217_v39 = vsel %vm3153_vm7, %v9598_v51, %v5944_v31 }
 0x27f   : > { %v5952_v48 = vpop.permute.xlu1 %5951  ;;  %v3184_v45 = vsel %vm3153_vm7, %v9599_v14, %v5938_v16  ;;  %v3185_v41 = vsel %vm3153_vm7, %v9600_v25, %v5939_v47 }
 0x280   : > { %v5947_v19 = vpop.permute.xlu0 %5946  ;;  %v5954_v3 = vunpack.i.h.bf16 %v5952_v48  ;;  %v5953_v5 = vunpack.i.l.bf16 %v5952_v48 }
 0x281   : > { %v5949_v62 = vunpack.i.h.bf16 %v5947_v19  ;;  %v5948_v33 = vunpack.i.l.bf16 %v5947_v19 }
 0x282   : > { %v3279_v50 = vsel %vm3218_vm8, %v3214_v7, %v5953_v5  ;;  %v3280_v18 = vsel %vm3218_vm8, %v3215_v37, %v5954_v3 }
 0x283   : > { %v5962_v40 = vpop.permute.xlu1 %5961  ;;  %v3247_v58 = vsel %vm3218_vm8, %v3182_v15, %v5948_v33  ;;  %v3248_v57 = vsel %vm3218_vm8, %v3183_v26, %v5949_v62  ;;  %v9065_v33 = vld [vmem:[%s9225_s2] ss:$0 sm:$0xff] }
 0x284   : > { %v5957_v17 = vpop.permute.xlu0 %5956  ;;  %v5964_v38 = vunpack.i.h.bf16 %v5962_v40  ;;  %v5963_v24 = vunpack.i.l.bf16 %v5962_v40 }
 0x285   : > { %v5959_v63 = vunpack.i.h.bf16 %v5957_v17  ;;  %v5958_v28 = vunpack.i.l.bf16 %v5957_v17 }
 0x286   : > { %v3281_v53 = vsel %vm3218_vm8, %v3216_v13, %v5963_v24  ;;  %v3282_v27 = vsel %vm3218_vm8, %v3217_v39, %v5964_v38 }
 0x287   : > { %v5972_v36 = vpop.permute.xlu1 %5971  ;;  %v3249_v9 = vsel %vm3218_vm8, %v3184_v45, %v5958_v28  ;;  %v3250_v60 = vsel %vm3218_vm8, %v3185_v41, %v5959_v63 }
 0x288   : > { %v5974_v20 = vunpack.i.h.bf16 %v5972_v36  ;;  %v5973_v43 = vunpack.i.l.bf16 %v5972_v36  ;;  %v5967_v34 = vpop.permute.xlu0 %5966 }
 0x289   : > { %v5969_v59 = vunpack.i.h.bf16 %v5967_v34  ;;  %v5968_v32 = vunpack.i.l.bf16 %v5967_v34 }
 0x28a   : > { %v3344_v55 = vsel %vm3283_vm9, %v3279_v50, %v5973_v43  ;;  %v3345_v6 = vsel %vm3283_vm9, %v3280_v18, %v5974_v20 }
 0x28b   : > { %v3378_v49 = vpack.c.bf16 %v3345_v6, %v3344_v55  ;;  %v3312_v29 = vsel %vm3283_vm9, %v3247_v58, %v5968_v32  ;;  %v3313_v30 = vsel %vm3283_vm9, %v3248_v57, %v5969_v59  ;;  %v5982_v10 = vpop.permute.xlu1 %5981 }
 0x28c   : > { %v3362_v54 = vpack.c.bf16 %v3313_v30, %v3312_v29  ;;  %v5984_v12 = vunpack.i.h.bf16 %v5982_v10  ;;  %v5983_v21 = vunpack.i.l.bf16 %v5982_v10  ;;  %v5977_v8 = vpop.permute.xlu0 %5976 }
 0x28d   : > { %v5979_v4 = vunpack.i.h.bf16 %v5977_v8  ;;  %v5978_v2 = vunpack.i.l.bf16 %v5977_v8  ;;  %4647 = vmatprep.mubr.msk.bf16.mxu1 %vm3402_vm10, %v3378_v49 }
 0x28e   : > { %v3346_v1 = vsel %vm3283_vm9, %v3281_v53, %v5983_v21  ;;  %v3347_v56 = vsel %vm3283_vm9, %v3282_v27, %v5984_v12  ;;  %4615 = vmatprep.mubr.msk.bf16.mxu0 %vm3402_vm10, %v3362_v54 }
 0x28f   : > { %v3379_v48 = vpack.c.bf16 %v3347_v56, %v3346_v1  ;;  %v3314_v19 = vsel %vm3283_vm9, %v3249_v9, %v5978_v2  ;;  %v3315_v42 = vsel %vm3283_vm9, %v3250_v60, %v5979_v4 }
 0x290   : > { %v3363_v35 = vpack.c.bf16 %v3315_v42, %v3314_v19 }
 0x291   : > { %4648 = vmatmul.mubr.msk.bf16.gmra.mrb[28].mxu1 %vm3402_vm10, %v3379_v48 }
 0x292   : > { %4616 = vmatmul.mubr.msk.bf16.gmra.mrb[28].mxu0 %vm3402_vm10, %v3363_v35 }
 0x2c6   : > { %v4589_v61 = vpop.f32.mrb[0].mxu0 }
 0x2c7   : > { %v3540_v44 = vpop.f32.mrb[1].mxu0  ;;  %v3549_v17 = vadd.f32 %v4589_v61, %v9065_v33 }
 0x2c8   : > { %v4590_v31 = vpop.f32.mrb[2].mxu0  ;;  %v3541_v46 = vadd.f32 %v9065_v33, %v3540_v44 }
 0x2c9   : > { %v3543_v23 = vpop.f32.mrb[3].mxu0  ;;  %v3552_v7 = vadd.f32 %v4590_v31, %v9065_v33  ;;  %v3797_v47 = vmax.f32 %v3549_v17, 0.0 }
 0x2ca   : > { %v3544_v37 = vadd.f32 %v9065_v33, %v3543_v23  ;;  %v3795_v16 = vmax.f32 %v3541_v46, 0.0 }
 0x2cb   : > { %v3798_v39 = vmax.f32 %v3552_v7, 0.0 }
 0x2cc   : > { %v4621_v3 = vpop.f32.mrb[0].mxu1  ;;  %v3796_v58 = vmax.f32 %v3544_v37, 0.0 }
 0x2cd   : > { %v3668_v5 = vpop.f32.mrb[1].mxu1  ;;  %v3677_v50 = vadd.f32 %v4621_v3, %v9065_v33 }
 0x2ce   : > { %v4622_v40 = vpop.f32.mrb[2].mxu1  ;;  %v3669_v57 = vadd.f32 %v9065_v33, %v3668_v5 }
 0x2cf   : > { %v3671_v62 = vpop.f32.mrb[3].mxu1  ;;  %v3680_v38 = vadd.f32 %v4622_v40, %v9065_v33  ;;  %v3829_v45 = vmax.f32 %v3677_v50, 0.0 }
 0x2d0   : > { %v3672_v28 = vadd.f32 %v9065_v33, %v3671_v62  ;;  %v3827_v25 = vmax.f32 %v3669_v57, 0.0 }
 0x2d1   : > { %v3830_v12 = vmax.f32 %v3680_v38, 0.0 }
 0x2d2   : > { %v3828_v53 = vmax.f32 %v3672_v28, 0.0 }
 0x2db   : > { %v4593_v22 = vpop.f32.mrb[4].mxu0 }
 0x2dc   : > { %v3565_v52 = vadd.f32 %v4593_v22, %v9065_v33  ;;  %v3556_v15 = vpop.f32.mrb[5].mxu0 }
 0x2dd   : > { %v3557_v11 = vadd.f32 %v9065_v33, %v3556_v15  ;;  %v4594_v26 = vpop.f32.mrb[6].mxu0 }
 0x2de   : > { %v3801_v0 = vmax.f32 %v3565_v52, 0.0  ;;  %v3568_v13 = vadd.f32 %v4594_v26, %v9065_v33  ;;  %v3559_v51 = vpop.f32.mrb[7].mxu0 }
 0x2df   : > { %v3799_v18 = vmax.f32 %v3557_v11, 0.0  ;;  %v3560_v36 = vadd.f32 %v9065_v33, %v3559_v51 }
 0x2e0   : > { %v3861_v20 = vmax.f32 %v3797_v47, %v3801_v0  ;;  %v3802_v43 = vmax.f32 %v3568_v13, 0.0  ;;  %v4625_v34 = vpop.f32.mrb[4].mxu1 }
 0x2e1   : > { %v3859_v24 = vmax.f32 %v3795_v16, %v3799_v18  ;;  %v3800_v59 = vmax.f32 %v3560_v36, 0.0  ;;  %v3693_v32 = vadd.f32 %v4625_v34, %v9065_v33  ;;  %v3684_v63 = vpop.f32.mrb[5].mxu1 }
 0x2e2   : > { %3894 = vst.msk [vmem:[#allocation2 + $0x10] sm:$0xff] %vm3891_vm11, %v3861_v20  ;;  %v3862_v55 = vmax.f32 %v3798_v39, %v3802_v43  ;;  %v3685_v6 = vadd.f32 %v9065_v33, %v3684_v63  ;;  %v4626_v14 = vpop.f32.mrb[6].mxu1 }
 0x2e3   : > { %3892 = vst.msk [vmem:[#allocation2] sm:$0xff] %vm3891_vm11, %v3859_v24  ;;  %v3860_v49 = vmax.f32 %v3796_v58, %v3800_v59  ;;  %v3833_v29 = vmax.f32 %v3693_v32, 0.0  ;;  %v3696_v30 = vadd.f32 %v4626_v14, %v9065_v33  ;;  %v3687_v10 = vpop.f32.mrb[7].mxu1 }
 0x2e4   : > { %3895 = vst.msk [vmem:[#allocation2 + $0x18] sm:$0xff] %vm3891_vm11, %v3862_v55  ;;  %v3831_v41 = vmax.f32 %v3685_v6, 0.0  ;;  %v3688_v54 = vadd.f32 %v9065_v33, %v3687_v10 }
 0x2e5   : > { %3893 = vst.msk [vmem:[#allocation2 + $0x8] sm:$0xff] %vm3891_vm11, %v3860_v49  ;;  %v3877_v21 = vmax.f32 %v3829_v45, %v3833_v29  ;;  %v3834_v8 = vmax.f32 %v3696_v30, 0.0 }
 0x2e6   : > { %v3875_v27 = vmax.f32 %v3827_v25, %v3831_v41  ;;  %v3832_v4 = vmax.f32 %v3688_v54, 0.0 }
 0x2e7   : > { %3910 = vst.msk [vmem:[#allocation2 + $0x90] sm:$0xff] %vm3891_vm11, %v3877_v21  ;;  %v3878_v2 = vmax.f32 %v3830_v12, %v3834_v8 }
 0x2e8   : > { %3908 = vst.msk [vmem:[#allocation2 + $0x80] sm:$0xff] %vm3891_vm11, %v3875_v27  ;;  %v3876_v9 = vmax.f32 %v3828_v53, %v3832_v4 }
 0x2e9   : > { %3911 = vst.msk [vmem:[#allocation2 + $0x98] sm:$0xff] %vm3891_vm11, %v3878_v2 }
 0x2ea   : > { %3909 = vst.msk [vmem:[#allocation2 + $0x88] sm:$0xff] %vm3891_vm11, %v3876_v9 }
 0x2eb   : > { %v3926_v60 = vld [vmem:[#allocation2 + $0x10] ss:$2 sm:$0xff]  ;;  %v3958_v1 = vld [vmem:[#allocation2 + $0x11] ss:$2 sm:$0xff] }
 0x2ec   : > { %v3988_v56 = vmax.f32 %v3926_v60, %v3958_v1  ;;  %v3924_v48 = vld [vmem:[#allocation2] ss:$2 sm:$0xff]  ;;  %v3956_v19 = vld [vmem:[#allocation2 + $0x1] ss:$2 sm:$0xff] }
 0x2ed   : > { %v3987_v42 = vmax.f32 %v3924_v48, %v3956_v19 }
 0x2ee   : > { %4004 = vst.msk [vmem:[%s9102_s24 + $0x8] sm:$0xff] %vm3891_vm11, %v3988_v56 }
 0x2ef   : > { %4003 = vst.msk [vmem:[%s9102_s24] sm:$0xff] %vm3891_vm11, %v3987_v42  ;;  %v4597_v35 = vpop.f32.mrb[8].mxu0 }
 0x2f0   : > { %v3942_v61 = vld [vmem:[#allocation2 + $0x90] ss:$2 sm:$0xff]  ;;  %v3974_v44 = vld [vmem:[#allocation2 + $0x91] ss:$2 sm:$0xff]  ;;  %v3572_v31 = vpop.f32.mrb[9].mxu0  ;;  %v3581_v52 = vadd.f32 %v4597_v35, %v9065_v33 }
 0x2f1   : > { %v3996_v23 = vmax.f32 %v3942_v61, %v3974_v44  ;;  %v3940_v3 = vld [vmem:[#allocation2 + $0x80] ss:$2 sm:$0xff]  ;;  %v3972_v5 = vld [vmem:[#allocation2 + $0x81] ss:$2 sm:$0xff]  ;;  %v4598_v40 = vpop.f32.mrb[10].mxu0  ;;  %v3573_v15 = vadd.f32 %v9065_v33, %v3572_v31 }
 0x2f2   : > { %v3995_v62 = vmax.f32 %v3940_v3, %v3972_v5  ;;  %v3575_v17 = vpop.f32.mrb[11].mxu0  ;;  %v3584_v11 = vadd.f32 %v4598_v40, %v9065_v33  ;;  %v3805_v39 = vmax.f32 %v3581_v52, 0.0 }
 0x2f3   : > { %4012 = vst.msk [vmem:[%s9102_s24 + $0x48] sm:$0xff] %vm3891_vm11, %v3996_v23  ;;  %v3576_v47 = vadd.f32 %v9065_v33, %v3575_v17  ;;  %v3803_v50 = vmax.f32 %v3573_v15, 0.0 }
 0x2f4   : > { %4011 = vst.msk [vmem:[%s9102_s24 + $0x40] sm:$0xff] %vm3891_vm11, %v3995_v62  ;;  %v4629_v46 = vpop.f32.mrb[8].mxu1  ;;  %v3806_v57 = vmax.f32 %v3584_v11, 0.0 }
 0x2f5   : > { %v3700_v7 = vpop.f32.mrb[9].mxu1  ;;  %v3709_v20 = vadd.f32 %v4629_v46, %v9065_v33  ;;  %v3804_v38 = vmax.f32 %v3576_v47, 0.0 }
 0x2f6   : > { %v4630_v22 = vpop.f32.mrb[10].mxu1  ;;  %v3701_v24 = vadd.f32 %v9065_v33, %v3700_v7 }
 0x2f7   : > { %v3703_v37 = vpop.f32.mrb[11].mxu1  ;;  %v3712_v28 = vadd.f32 %v4630_v22, %v9065_v33  ;;  %v3837_v25 = vmax.f32 %v3709_v20, 0.0 }
 0x2f8   : > { %v3704_v49 = vadd.f32 %v9065_v33, %v3703_v37  ;;  %v3835_v8 = vmax.f32 %v3701_v24, 0.0 }
 0x2f9   : > { %v3838_v4 = vmax.f32 %v3712_v28, 0.0 }
 0x2fa   : > { %v3836_v60 = vmax.f32 %v3704_v49, 0.0 }
 0x303   : > { %v4601_v26 = vpop.f32.mrb[12].mxu0 }
 0x304   : > { %v3597_v16 = vadd.f32 %v4601_v26, %v9065_v33  ;;  %v3588_v0 = vpop.f32.mrb[13].mxu0 }
 0x305   : > { %v3589_v13 = vadd.f32 %v9065_v33, %v3588_v0  ;;  %v4602_v51 = vpop.f32.mrb[14].mxu0 }
 0x306   : > { %v3809_v18 = vmax.f32 %v3597_v16, 0.0  ;;  %v3600_v36 = vadd.f32 %v4602_v51, %v9065_v33  ;;  %v3591_v58 = vpop.f32.mrb[15].mxu0 }
 0x307   : > { %v3807_v43 = vmax.f32 %v3589_v13, 0.0  ;;  %v3592_v34 = vadd.f32 %v9065_v33, %v3591_v58  ;;  %v4633_v63 = vpop.f32.mrb[12].mxu1 }
 0x308   : > { %v3865_v59 = vmax.f32 %v3805_v39, %v3809_v18  ;;  %v3810_v32 = vmax.f32 %v3600_v36, 0.0  ;;  %v3725_v14 = vadd.f32 %v4633_v63, %v9065_v33  ;;  %v3716_v45 = vpop.f32.mrb[13].mxu1 }
 0x309   : > { %v3863_v55 = vmax.f32 %v3803_v50, %v3807_v43  ;;  %v3808_v6 = vmax.f32 %v3592_v34, 0.0  ;;  %v3717_v30 = vadd.f32 %v9065_v33, %v3716_v45  ;;  %v4634_v10 = vpop.f32.mrb[14].mxu1 }
 0x30a   : > { %3898 = vst.msk [vmem:[#allocation2 + $0x30] sm:$0xff] %vm3891_vm11, %v3865_v59  ;;  %v3866_v29 = vmax.f32 %v3806_v57, %v3810_v32  ;;  %v3841_v54 = vmax.f32 %v3725_v14, 0.0  ;;  %v3728_v12 = vadd.f32 %v4634_v10, %v9065_v33  ;;  %v3719_v21 = vpop.f32.mrb[15].mxu1 }
 0x30b   : > { %3896 = vst.msk [vmem:[#allocation2 + $0x20] sm:$0xff] %vm3891_vm11, %v3863_v55  ;;  %v3864_v41 = vmax.f32 %v3804_v38, %v3808_v6  ;;  %v3839_v53 = vmax.f32 %v3717_v30, 0.0  ;;  %v3720_v27 = vadd.f32 %v9065_v33, %v3719_v21 }
 0x30c   : > { %3899 = vst.msk [vmem:[#allocation2 + $0x38] sm:$0xff] %vm3891_vm11, %v3866_v29  ;;  %v3881_v2 = vmax.f32 %v3837_v25, %v3841_v54  ;;  %v3842_v9 = vmax.f32 %v3728_v12, 0.0 }
 0x30d   : > { %3897 = vst.msk [vmem:[#allocation2 + $0x28] sm:$0xff] %vm3891_vm11, %v3864_v41  ;;  %v3879_v1 = vmax.f32 %v3835_v8, %v3839_v53  ;;  %v3840_v56 = vmax.f32 %v3720_v27, 0.0 }
 0x30e   : > { %3914 = vst.msk [vmem:[#allocation2 + $0xb0] sm:$0xff] %vm3891_vm11, %v3881_v2  ;;  %v3882_v48 = vmax.f32 %v3838_v4, %v3842_v9 }
 0x30f   : > { %3912 = vst.msk [vmem:[#allocation2 + $0xa0] sm:$0xff] %vm3891_vm11, %v3879_v1  ;;  %v3880_v19 = vmax.f32 %v3836_v60, %v3840_v56 }
 0x310   : > { %3915 = vst.msk [vmem:[#allocation2 + $0xb8] sm:$0xff] %vm3891_vm11, %v3882_v48 }
 0x311   : > { %3913 = vst.msk [vmem:[#allocation2 + $0xa8] sm:$0xff] %vm3891_vm11, %v3880_v19 }
 0x313   : > { %v3930_v42 = vld [vmem:[#allocation2 + $0x30] ss:$2 sm:$0xff]  ;;  %v3962_v35 = vld [vmem:[#allocation2 + $0x31] ss:$2 sm:$0xff] }
 0x314   : > { %v3990_v61 = vmax.f32 %v3930_v42, %v3962_v35  ;;  %v3928_v44 = vld [vmem:[#allocation2 + $0x20] ss:$2 sm:$0xff]  ;;  %v3960_v31 = vld [vmem:[#allocation2 + $0x21] ss:$2 sm:$0xff] }
 0x315   : > { %v3989_v23 = vmax.f32 %v3928_v44, %v3960_v31 }
 0x316   : > { %4006 = vst.msk [vmem:[%s9102_s24 + $0x18] sm:$0xff] %vm3891_vm11, %v3990_v61 }
 0x317   : > { %4005 = vst.msk [vmem:[%s9102_s24 + $0x10] sm:$0xff] %vm3891_vm11, %v3989_v23  ;;  %v3946_v3 = vld [vmem:[#allocation2 + $0xb0] ss:$2 sm:$0xff]  ;;  %v3978_v5 = vld [vmem:[#allocation2 + $0xb1] ss:$2 sm:$0xff] }
 0x318   : > { %v3998_v40 = vmax.f32 %v3946_v3, %v3978_v5  ;;  %v3944_v62 = vld [vmem:[#allocation2 + $0xa0] ss:$2 sm:$0xff]  ;;  %v3976_v17 = vld [vmem:[#allocation2 + $0xa1] ss:$2 sm:$0xff] }
 0x319   : > { %v3997_v46 = vmax.f32 %v3944_v62, %v3976_v17 }
 0x31a   : > { %4014 = vst.msk [vmem:[%s9102_s24 + $0x58] sm:$0xff] %vm3891_vm11, %v3998_v40 }
 0x31b   : > { %v4637_v7 = vpop.f32.mrb[16].mxu1  ;;  %4013 = vst.msk [vmem:[%s9102_s24 + $0x50] sm:$0xff] %vm3891_vm11, %v3997_v46  ;;  %v4605_v22 = vpop.f32.mrb[16].mxu0 }
 0x31c   : > { %v3732_v37 = vpop.f32.mrb[17].mxu1  ;;  %v3604_v52 = vpop.f32.mrb[17].mxu0  ;;  %v3613_v16 = vadd.f32 %v4605_v22, %v9065_v33  ;;  %v3741_v0 = vadd.f32 %v4637_v7, %v9065_v33 }
 0x31d   : > { %v4638_v15 = vpop.f32.mrb[18].mxu1  ;;  %v4606_v11 = vpop.f32.mrb[18].mxu0  ;;  %v3605_v13 = vadd.f32 %v9065_v33, %v3604_v52  ;;  %v3733_v51 = vadd.f32 %v9065_v33, %v3732_v37 }
 0x31e   : > { %v3735_v26 = vpop.f32.mrb[19].mxu1  ;;  %v3607_v47 = vpop.f32.mrb[19].mxu0  ;;  %v3744_v39 = vadd.f32 %v4638_v15, %v9065_v33  ;;  %v3616_v50 = vadd.f32 %v4606_v11, %v9065_v33  ;;  %v3813_v36 = vmax.f32 %v3613_v16, 0.0  ;;  %v3845_v58 = vmax.f32 %v3741_v0, 0.0 }
 0x31f   : > { %v3736_v18 = vadd.f32 %v9065_v33, %v3735_v26  ;;  %v3811_v20 = vmax.f32 %v3605_v13, 0.0  ;;  %v3843_v43 = vmax.f32 %v3733_v51, 0.0  ;;  %v3608_v63 = vadd.f32 %v9065_v33, %v3607_v47 }
 0x320   : > { %v3846_v34 = vmax.f32 %v3744_v39, 0.0  ;;  %v3814_v32 = vmax.f32 %v3616_v50, 0.0 }
 0x321   : > { %v3844_v45 = vmax.f32 %v3736_v18, 0.0  ;;  %v3812_v48 = vmax.f32 %v3608_v63, 0.0 }
 0x333   : > { %v4641_v57 = vpop.f32.mrb[20].mxu1  ;;  %v4609_v38 = vpop.f32.mrb[20].mxu0 }
 0x334   : > { %v3757_v24 = vadd.f32 %v4641_v57, %v9065_v33  ;;  %v3748_v59 = vpop.f32.mrb[21].mxu1  ;;  %v3629_v28 = vadd.f32 %v4609_v38, %v9065_v33  ;;  %v3620_v55 = vpop.f32.mrb[21].mxu0 }
 0x335   : > { %v3749_v6 = vadd.f32 %v9065_v33, %v3748_v59  ;;  %v4642_v14 = vpop.f32.mrb[22].mxu1  ;;  %v3621_v29 = vadd.f32 %v9065_v33, %v3620_v55  ;;  %v4610_v30 = vpop.f32.mrb[22].mxu0 }
 0x336   : > { %v3849_v49 = vmax.f32 %v3757_v24, 0.0  ;;  %v3760_v10 = vadd.f32 %v4642_v14, %v9065_v33  ;;  %v3751_v25 = vpop.f32.mrb[23].mxu1  ;;  %v3817_v41 = vmax.f32 %v3629_v28, 0.0  ;;  %v3632_v12 = vadd.f32 %v4610_v30, %v9065_v33  ;;  %v3623_v21 = vpop.f32.mrb[23].mxu0 }
 0x337   : > { %v3847_v54 = vmax.f32 %v3749_v6, 0.0  ;;  %v3752_v8 = vadd.f32 %v9065_v33, %v3751_v25  ;;  %v3815_v27 = vmax.f32 %v3621_v29, 0.0  ;;  %v3624_v2 = vadd.f32 %v9065_v33, %v3623_v21 }
 0x338   : > { %v3885_v53 = vmax.f32 %v3845_v58, %v3849_v49  ;;  %v3850_v4 = vmax.f32 %v3760_v10, 0.0  ;;  %v3869_v9 = vmax.f32 %v3813_v36, %v3817_v41  ;;  %v3818_v1 = vmax.f32 %v3632_v12, 0.0 }
 0x339   : > { %v3883_v60 = vmax.f32 %v3843_v43, %v3847_v54  ;;  %v3848_v56 = vmax.f32 %v3752_v8, 0.0  ;;  %v3867_v19 = vmax.f32 %v3811_v20, %v3815_v27  ;;  %v3816_v35 = vmax.f32 %v3624_v2, 0.0 }
 0x33a   : > { %3918 = vst.msk [vmem:[#allocation2 + $0xd0] sm:$0xff] %vm3891_vm11, %v3885_v53  ;;  %v3886_v42 = vmax.f32 %v3846_v34, %v3850_v4  ;;  %3902 = vst.msk [vmem:[#allocation2 + $0x50] sm:$0xff] %vm3891_vm11, %v3869_v9  ;;  %v3870_v61 = vmax.f32 %v3814_v32, %v3818_v1 }
 0x33b   : > { %3916 = vst.msk [vmem:[#allocation2 + $0xc0] sm:$0xff] %vm3891_vm11, %v3883_v60  ;;  %v3884_v44 = vmax.f32 %v3844_v45, %v3848_v56  ;;  %3900 = vst.msk [vmem:[#allocation2 + $0x40] sm:$0xff] %vm3891_vm11, %v3867_v19  ;;  %v3868_v31 = vmax.f32 %v3812_v48, %v3816_v35 }
 0x33c   : > { %3919 = vst.msk [vmem:[#allocation2 + $0xd8] sm:$0xff] %vm3891_vm11, %v3886_v42  ;;  %3903 = vst.msk [vmem:[#allocation2 + $0x58] sm:$0xff] %vm3891_vm11, %v3870_v61 }
 0x33d   : > { %3917 = vst.msk [vmem:[#allocation2 + $0xc8] sm:$0xff] %vm3891_vm11, %v3884_v44  ;;  %3901 = vst.msk [vmem:[#allocation2 + $0x48] sm:$0xff] %vm3891_vm11, %v3868_v31 }
 0x343   : > { %v3950_v23 = vld [vmem:[#allocation2 + $0xd0] ss:$2 sm:$0xff]  ;;  %v3982_v3 = vld [vmem:[#allocation2 + $0xd1] ss:$2 sm:$0xff] }
 0x344   : > { %v3934_v5 = vld [vmem:[#allocation2 + $0x50] ss:$2 sm:$0xff]  ;;  %v3966_v40 = vld [vmem:[#allocation2 + $0x51] ss:$2 sm:$0xff]  ;;  %v4000_v62 = vmax.f32 %v3950_v23, %v3982_v3  ;;  %v3948_v17 = vld [vmem:[#allocation2 + $0xc0] ss:$2 sm:$0xff] }
 0x345   : > { %v3992_v46 = vmax.f32 %v3934_v5, %v3966_v40  ;;  %v3932_v7 = vld [vmem:[#allocation2 + $0x40] ss:$2 sm:$0xff]  ;;  %v3964_v22 = vld [vmem:[#allocation2 + $0x41] ss:$2 sm:$0xff] }
 0x346   : > { %v3980_v37 = vld [vmem:[#allocation2 + $0xc1] ss:$2 sm:$0xff]  ;;  %4016 = vst.msk [vmem:[%s9102_s24 + $0x68] sm:$0xff] %vm3891_vm11, %v4000_v62  ;;  %v3991_v52 = vmax.f32 %v3932_v7, %v3964_v22 }
 0x347   : > { %v3999_v15 = vmax.f32 %v3948_v17, %v3980_v37  ;;  %4008 = vst.msk [vmem:[%s9102_s24 + $0x28] sm:$0xff] %vm3891_vm11, %v3992_v46 }
 0x348   : > { %4007 = vst.msk [vmem:[%s9102_s24 + $0x20] sm:$0xff] %vm3891_vm11, %v3991_v52 }
 0x349   : > { %4015 = vst.msk [vmem:[%s9102_s24 + $0x60] sm:$0xff] %vm3891_vm11, %v3999_v15 }
 0x34c   : > { %v4645_v11 = vpop.f32.mrb[24].mxu1 }
 0x34d   : > { %v4613_v26 = vpop.f32.mrb[24].mxu0  ;;  %v3764_v47 = vpop.f32.mrb[25].mxu1  ;;  %v3773_v18 = vadd.f32 %v4645_v11, %v9065_v33 }
 0x34e   : > { %v3636_v16 = vpop.f32.mrb[25].mxu0  ;;  %v4646_v0 = vpop.f32.mrb[26].mxu1  ;;  %v3645_v50 = vadd.f32 %v4613_v26, %v9065_v33  ;;  %v3765_v58 = vadd.f32 %v9065_v33, %v3764_v47 }
 0x34f   : > { %v4614_v13 = vpop.f32.mrb[26].mxu0  ;;  %v3767_v51 = vpop.f32.mrb[27].mxu1  ;;  %v3637_v36 = vadd.f32 %v9065_v33, %v3636_v16  ;;  %v3776_v57 = vadd.f32 %v4646_v0, %v9065_v33  ;;  %v3853_v38 = vmax.f32 %v3773_v18, 0.0 }
 0x350   : > { %v3639_v39 = vpop.f32.mrb[27].mxu0  ;;  %v3648_v20 = vadd.f32 %v4614_v13, %v9065_v33  ;;  %v3768_v43 = vadd.f32 %v9065_v33, %v3767_v51  ;;  %v3821_v34 = vmax.f32 %v3645_v50, 0.0  ;;  %v3851_v32 = vmax.f32 %v3765_v58, 0.0 }
 0x351   : > { %v3819_v59 = vmax.f32 %v3637_v36, 0.0  ;;  %v3854_v63 = vmax.f32 %v3776_v57, 0.0  ;;  %v3640_v45 = vadd.f32 %v9065_v33, %v3639_v39 }
 0x352   : > { %v3822_v14 = vmax.f32 %v3648_v20, 0.0  ;;  %v3852_v25 = vmax.f32 %v3768_v43, 0.0 }
 0x353   : > { %v3820_v44 = vmax.f32 %v3640_v45, 0.0 }
 0x364   : > { %v4649_v24 = vpop.f32.mrb[28].mxu1 }
 0x365   : > { %v4617_v28 = vpop.f32.mrb[28].mxu0  ;;  %v3789_v55 = vadd.f32 %v4649_v24, %v9065_v33  ;;  %v3780_v6 = vpop.f32.mrb[29].mxu1 }
 0x366   : > { %v3661_v49 = vadd.f32 %v4617_v28, %v9065_v33  ;;  %v3652_v29 = vpop.f32.mrb[29].mxu0  ;;  %v3781_v30 = vadd.f32 %v9065_v33, %v3780_v6  ;;  %v4650_v10 = vpop.f32.mrb[30].mxu1 }
 0x367   : > { %v3857_v41 = vmax.f32 %v3789_v55, 0.0  ;;  %v3653_v54 = vadd.f32 %v9065_v33, %v3652_v29  ;;  %v4618_v12 = vpop.f32.mrb[30].mxu0  ;;  %v3792_v21 = vadd.f32 %v4650_v10, %v9065_v33  ;;  %v3783_v8 = vpop.f32.mrb[31].mxu1 }
 0x368   : > { %v3825_v53 = vmax.f32 %v3661_v49, 0.0  ;;  %v3855_v27 = vmax.f32 %v3781_v30, 0.0  ;;  %v3664_v4 = vadd.f32 %v4618_v12, %v9065_v33  ;;  %v3655_v2 = vpop.f32.mrb[31].mxu0  ;;  %v3784_v9 = vadd.f32 %v9065_v33, %v3783_v8 }
 0x369   : > { %v3889_v60 = vmax.f32 %v3853_v38, %v3857_v41  ;;  %v3823_v1 = vmax.f32 %v3653_v54, 0.0  ;;  %v3858_v56 = vmax.f32 %v3792_v21, 0.0  ;;  %v3656_v48 = vadd.f32 %v9065_v33, %v3655_v2 }
 0x36a   : > { %v3873_v19 = vmax.f32 %v3821_v34, %v3825_v53  ;;  %v3887_v42 = vmax.f32 %v3851_v32, %v3855_v27  ;;  %v3826_v35 = vmax.f32 %v3664_v4, 0.0  ;;  %v3856_v61 = vmax.f32 %v3784_v9, 0.0 }
 0x36b   : > { %3922 = vst.msk [vmem:[#allocation2 + $0xf0] sm:$0xff] %vm3891_vm11, %v3889_v60  ;;  %v3871_v31 = vmax.f32 %v3819_v59, %v3823_v1  ;;  %v3890_v23 = vmax.f32 %v3854_v63, %v3858_v56  ;;  %v3824_v3 = vmax.f32 %v3656_v48, 0.0 }
 0x36c   : > { %3906 = vst.msk [vmem:[#allocation2 + $0x70] sm:$0xff] %vm3891_vm11, %v3873_v19  ;;  %3920 = vst.msk [vmem:[#allocation2 + $0xe0] sm:$0xff] %vm3891_vm11, %v3887_v42  ;;  %v3874_v5 = vmax.f32 %v3822_v14, %v3826_v35  ;;  %v3888_v40 = vmax.f32 %v3852_v25, %v3856_v61 }
 0x36d   : > { %3904 = vst.msk [vmem:[#allocation2 + $0x60] sm:$0xff] %vm3891_vm11, %v3871_v31  ;;  %3923 = vst.msk [vmem:[#allocation2 + $0xf8] sm:$0xff] %vm3891_vm11, %v3890_v23  ;;  %v3872_v33 = vmax.f32 %v3820_v44, %v3824_v3 }
 0x36e   : > { %3907 = vst.msk [vmem:[#allocation2 + $0x78] sm:$0xff] %vm3891_vm11, %v3874_v5  ;;  %3921 = vst.msk [vmem:[#allocation2 + $0xe8] sm:$0xff] %vm3891_vm11, %v3888_v40 }
 0x36f   : > { %3905 = vst.msk [vmem:[#allocation2 + $0x68] sm:$0xff] %vm3891_vm11, %v3872_v33 }
 0x374   : > { %v3954_v62 = vld [vmem:[#allocation2 + $0xf0] ss:$2 sm:$0xff]  ;;  %v3986_v17 = vld [vmem:[#allocation2 + $0xf1] ss:$2 sm:$0xff] }
 0x375   : > { %v3938_v46 = vld [vmem:[#allocation2 + $0x70] ss:$2 sm:$0xff]  ;;  %v3970_v7 = vld [vmem:[#allocation2 + $0x71] ss:$2 sm:$0xff]  ;;  %v4002_v22 = vmax.f32 %v3954_v62, %v3986_v17  ;;  %v3952_v37 = vld [vmem:[#allocation2 + $0xe0] ss:$2 sm:$0xff] }
 0x376   : > { %v3994_v52 = vmax.f32 %v3938_v46, %v3970_v7  ;;  %v3936_v15 = vld [vmem:[#allocation2 + $0x60] ss:$2 sm:$0xff]  ;;  %v3968_v11 = vld [vmem:[#allocation2 + $0x61] ss:$2 sm:$0xff] }
 0x377   : > { %v3984_v26 = vld [vmem:[#allocation2 + $0xe1] ss:$2 sm:$0xff]  ;;  %4018 = vst.msk [vmem:[%s9102_s24 + $0x78] sm:$0xff] %vm3891_vm11, %v4002_v22  ;;  %v3993_v47 = vmax.f32 %v3936_v15, %v3968_v11 }
 0x378   : > { %v4001_v16 = vmax.f32 %v3952_v37, %v3984_v26  ;;  %4010 = vst.msk [vmem:[%s9102_s24 + $0x38] sm:$0xff] %vm3891_vm11, %v3994_v52 }
 0x379   : > { %4009 = vst.msk [vmem:[%s9102_s24 + $0x30] sm:$0xff] %vm3891_vm11, %v3993_v47 }
 0x37a   : > { %4017 = vst.msk [vmem:[%s9102_s24 + $0x70] sm:$0xff] %vm3891_vm11, %v4001_v16 }
 0x37b PF: > { %s13_s16 = sadd.s32 1, %s6047_s16   ;;  %s9602_s12 = smov %s6039_s14 }
 0x37c   : > { %p10_p7 = scmp.ge.s32.totalorder %s13_s16, 6   ;;  %s9603_s13 = smov %s6043_s15 }
 0x37d   : > { %s9604_s14 = smov %s9607_s17  ;;  %s9605_s15 = smov %s9611_s18 }
 0x37e   :  { %12 = sbr.rel (!%p10_p7) target bundleno = 3 (0x3), region = 96 }

</bundles_post_ra>
